<compile_context>
chip_gen: v5e
topology: v5e:2x2
jax: 0.10.0
libtpu: 0.0.40
codegen_flags: <defaults>
</compile_context>

<pallas_src>
import jax
import jax.numpy as jnp
from jax.experimental import pallas as pl
from jax.experimental.pallas import tpu as pltpu

BN_EPS = 1e-5


def _round_up(x, m):
    return ((x + m - 1) // m) * m


# ----------------------------------------------------------------------------
# Kernel: whole network for one batch tile; all weights resident in VMEM.
# ----------------------------------------------------------------------------
def _dual_branch_kernel(
    xb_ref, xm_ref,
    bw0_ref, bw1_ref, bw2_ref, bw3_ref,
    mw0_ref, mw1_ref,
    fwa_ref, fwb_ref, fw1_ref,
    bias_ref,
    o_ref,
):
    biases = bias_ref[...]                                # (8, 768) f32

    def layer(h, w_ref, bias_row, width):
        # bf16 MXU feed, f32 accumulate, f32 bias + ReLU epilogue.
        acc = jnp.dot(h.astype(jnp.bfloat16), w_ref[...],
                      preferred_element_type=jnp.float32)
        b = biases[bias_row:bias_row + 1, :width]
        return jnp.maximum(acc + b, 0.0)

    # bert branch: 768 -> 768 -> 512 -> 256 -> 64 (padded to 128 lanes)
    h = layer(xb_ref[...], bw0_ref, 0, 768)
    h = layer(h, bw1_ref, 1, 512)
    h = layer(h, bw2_ref, 2, 256)
    bert = layer(h, bw3_ref, 3, 128)

    # meta branch: 64 -> 128 -> 64 (padded to 128 lanes)
    h = layer(xm_ref[...], mw0_ref, 4, 128)
    meta = layer(h, mw1_ref, 5, 128)

    # concat + head (128 -> 64, padded to 128) without a concatenate:
    #   concat(bert, meta) @ W == bert @ W[:64] + meta @ W[64:]
    acc = jnp.dot(bert.astype(jnp.bfloat16), fwa_ref[...],
                  preferred_element_type=jnp.float32)
    acc = acc + jnp.dot(meta.astype(jnp.bfloat16), fwb_ref[...],
                        preferred_element_type=jnp.float32)
    h = jnp.maximum(acc + biases[6:7, :128], 0.0)          # (TB, 128) f32

    # final 64 -> 1: VPU multiply + lane reduction (no N=1 MXU matmul)
    w_last = fw1_ref[...].astype(jnp.float32)              # (1, 128)
    out = jnp.sum(h * w_last, axis=-1, keepdims=True) + biases[7:8, 0:1]
    o_ref[...] = jnp.maximum(out, 0.0).astype(o_ref.dtype)


# ----------------------------------------------------------------------------
# Wrapper: batch tiling, resident weights, bf16 inputs.
# ----------------------------------------------------------------------------
def dual_branch_forward(params, x_bert, x_meta, *, block_b=256):
    (bw0, bw1, bw2, bw3, mw0, mw1, fwa, fwb, fw1_row, biases) = params
    B, Db = x_bert.shape
    Dm = x_meta.shape[1]

    TB = _round_up(min(block_b, _round_up(B, 8)), 8)       # batch tile (mult of 8)
    Bp = _round_up(B, TB)
    if Bp != B:
        x_bert = jnp.pad(x_bert, ((0, Bp - B), (0, 0)))
        x_meta = jnp.pad(x_meta, ((0, Bp - B), (0, 0)))
    xb = x_bert.astype(jnp.bfloat16)
    xm = x_meta.astype(jnp.bfloat16)

    def batch_spec(d):
        return pl.BlockSpec((TB, d), lambda i: (i, 0))

    def resident_spec(arr):
        nd = arr.ndim
        return pl.BlockSpec(arr.shape, lambda i: (0,) * nd)

    weights = (bw0, bw1, bw2, bw3, mw0, mw1, fwa, fwb, fw1_row, biases)

    out = pl.pallas_call(
        _dual_branch_kernel,
        out_shape=jax.ShapeDtypeStruct((Bp, 1), jnp.float32),
        grid=(Bp // TB,),
        in_specs=[batch_spec(Db), batch_spec(Dm)]
                 + [resident_spec(w) for w in weights],
        out_specs=pl.BlockSpec((TB, 1), lambda i: (i, 0)),
        compiler_params=pltpu.CompilerParams(
            dimension_semantics=("parallel",)),
    )(xb, xm, *weights)
    return out[:B]


# ----------------------------------------------------------------------------
# Deterministic synthetic parameters (no checkpoint loading).
# ----------------------------------------------------------------------------
def _init_layer(key, in_dim, out_dim, with_bn=True):
    ks = jax.random.split(key, 6)
    p = dict(
        w=jax.random.normal(ks[0], (in_dim, out_dim), jnp.float32) * 0.05,
        b=jax.random.normal(ks[1], (out_dim,), jnp.float32) * 0.01,
    )
    if with_bn:
        p["gamma"] = 1.0 + 0.1 * jax.random.normal(ks[2], (out_dim,), jnp.float32)
        p["beta"] = 0.05 * jax.random.normal(ks[3], (out_dim,), jnp.float32)
        p["mean"] = 0.01 * jax.random.normal(ks[4], (out_dim,), jnp.float32)
        p["var"] = 1.0 + 0.1 * jnp.abs(
            jax.random.normal(ks[5], (out_dim,), jnp.float32))
    return p


def build_raw_params(key, input_dim_bert=768, input_dim_meta=64):
    ks = jax.random.split(key, 8)
    return dict(
        b0=_init_layer(ks[0], input_dim_bert, 768),
        b1=_init_layer(ks[1], 768, 512),
        b2=_init_layer(ks[2], 512, 256),
        b3=_init_layer(ks[3], 256, 64),
        m0=_init_layer(ks[4], input_dim_meta, 128),
        m1=_init_layer(ks[5], 128, 64),
        f0=_init_layer(ks[6], 128, 64),
        f1=_init_layer(ks[7], 64, 1, with_bn=False),
    )


def _fold_bn(p):
    """Fold eval-mode BatchNorm into the preceding Linear (exact)."""
    w, b = p["w"], p["b"]
    if "gamma" in p:
        scale = p["gamma"] / jnp.sqrt(p["var"] + BN_EPS)
        w = w * scale[None, :]
        b = (b - p["mean"]) * scale + p["beta"]
    return w, b


def _pad_out(w, b, out_pad):
    pad = out_pad - w.shape[1]
    if pad > 0:
        w = jnp.pad(w, ((0, 0), (0, pad)))
        b = jnp.pad(b, ((0, pad),))
    return w, b


def build_kernel_params(raw):
    bw0, bb0 = _fold_bn(raw["b0"])
    bw1, bb1 = _fold_bn(raw["b1"])
    bw2, bb2 = _fold_bn(raw["b2"])
    bw3, bb3 = _pad_out(*_fold_bn(raw["b3"]), 128)
    mw0, mb0 = _fold_bn(raw["m0"])
    mw1, mb1 = _pad_out(*_fold_bn(raw["m1"]), 128)
    fw0, fb0 = _fold_bn(raw["f0"])
    fw1, fb1 = _fold_bn(raw["f1"])

    # Split head weight (concat order: [bert, meta]) and pad to 128x128.
    fwa = jnp.pad(fw0[:64, :], ((0, 64), (0, 64)))
    fwb = jnp.pad(fw0[64:, :], ((0, 64), (0, 64)))
    fb0p = jnp.pad(fb0, ((0, 64),))
    # Final 64->1 weight as a lane-dense (1, 128) row vector.
    fw1_row = jnp.pad(fw1[:, 0], ((0, 64),)).reshape(1, 128)

    # Pack all biases into one (8, 768) f32 array (one DMA descriptor).
    biases = jnp.zeros((8, 768), jnp.float32)
    biases = biases.at[0, :768].set(bb0)
    biases = biases.at[1, :512].set(bb1)
    biases = biases.at[2, :256].set(bb2)
    biases = biases.at[3, :128].set(bb3)
    biases = biases.at[4, :128].set(mb0)
    biases = biases.at[5, :128].set(mb1)
    biases = biases.at[6, :128].set(fb0p)
    biases = biases.at[7, 0].set(fb1[0])

    bf = lambda a: a.astype(jnp.bfloat16)
    return (bf(bw0), bf(bw1), bf(bw2), bf(bw3), bf(mw0), bf(mw1),
            bf(fwa), bf(fwb), bf(fw1_row), biases)


# ----------------------------------------------------------------------------
# References.
# ----------------------------------------------------------------------------
def reference_forward_kernel_precision(params, x_bert, x_meta):
    """Pure-JAX mirror of the kernel's bf16-feed / f32-accumulate scheme."""
    (bw0, bw1, bw2, bw3, mw0, mw1, fwa, fwb, fw1_row, biases) = params

    def layer(h, w, row, width):
        acc = jnp.dot(h.astype(jnp.bfloat16), w,
                      preferred_element_type=jnp.float32)
        return jnp.maximum(acc + biases[row:row + 1, :width], 0.0)

    h = layer(x_bert, bw0, 0, 768)
    h = layer(h, bw1, 1, 512)
    h = layer(h, bw2, 2, 256)
    bert = layer(h, bw3, 3, 128)

    h = layer(x_meta, mw0, 4, 128)
    meta = layer(h, mw1, 5, 128)

    acc = (jnp.dot(bert.astype(jnp.bfloat16), fwa,
                   preferred_element_type=jnp.float32)
           + jnp.dot(meta.astype(jnp.bfloat16), fwb,
                     preferred_element_type=jnp.float32))
    h = jnp.maximum(acc + biases[6:7, :128], 0.0)
    out = (jnp.sum(h * fw1_row.astype(jnp.float32), axis=-1, keepdims=True)
           + biases[7:8, 0:1])
    return jnp.maximum(out, 0.0)


def reference_forward_f32(raw, x_bert, x_meta):
    """Exact f32 eval-mode forward of the original PyTorch module."""
    def block(h, p):
        h = h @ p["w"] + p["b"]
        if "gamma" in p:
            h = ((h - p["mean"]) / jnp.sqrt(p["var"] + BN_EPS) * p["gamma"]
                 + p["beta"])
        return jnp.maximum(h, 0.0)

    h = block(x_bert, raw["b0"])
    h = block(h, raw["b1"])
    h = block(h, raw["b2"])
    bert = block(h, raw["b3"])
    h = block(x_meta, raw["m0"])
    meta = block(h, raw["m1"])
    combined = jnp.concatenate([bert, meta], axis=1)
    h = block(combined, raw["f0"])
    return block(h, raw["f1"])          # Linear + ReLU (no BN)


# ----------------------------------------------------------------------------
if __name__ == "__main__":
    key = jax.random.PRNGKey(0)
    k_raw, k_b, k_m = jax.random.split(key, 3)

    batch = 20                           # deliberately not a multiple of the tile
    input_dim_bert, input_dim_meta = 768, 64

    raw = build_raw_params(k_raw, input_dim_bert, input_dim_meta)
    params = build_kernel_params(raw)

    x_bert = jax.random.normal(k_b, (batch, input_dim_bert), jnp.float32)
    x_meta = jax.random.normal(k_m, (batch, input_dim_meta), jnp.float32)

    # Small batch tile to exercise the multi-tile grid + batch-padding path.
    out = jax.block_until_ready(
        dual_branch_forward(params, x_bert, x_meta, block_b=8))

    assert out.shape == (batch, 1), out.shape
    assert out.dtype == jnp.float32
    assert bool(jnp.all(jnp.isfinite(out)))
    assert bool(jnp.all(out >= 0.0))     # final ReLU

    # Tight check vs a pure-JAX mirror of the kernel's precision scheme.
    ref_mirror = jax.block_until_ready(
        reference_forward_kernel_precision(params, x_bert, x_meta))
    assert bool(jnp.allclose(out, ref_mirror, rtol=1e-2, atol=1e-2)), (
        float(jnp.max(jnp.abs(out - ref_mirror))))

    # Looser check vs the exact f32 eval-mode forward (bounds the bf16 error
    # of 7 chained bf16-weight matmuls against the original model semantics).
    ref_f32 = jax.block_until_ready(reference_forward_f32(raw, x_bert, x_meta))
    assert bool(jnp.allclose(out, ref_f32, rtol=5e-2, atol=5e-2)), (
        float(jnp.max(jnp.abs(out - ref_f32))))

    print("KERNEL_OK")
</pallas_src>

<mosaic_0001>
module attributes {stable_mosaic.version = 11 : i64} {
  func.func @_dual_branch_kernel(%arg0: i32, %arg1: memref<8x768xbf16, #tpu.memory_space<vmem>>, %arg2: memref<8x64xbf16, #tpu.memory_space<vmem>>, %arg3: memref<768x768xbf16, #tpu.memory_space<vmem>>, %arg4: memref<768x512xbf16, #tpu.memory_space<vmem>>, %arg5: memref<512x256xbf16, #tpu.memory_space<vmem>>, %arg6: memref<256x128xbf16, #tpu.memory_space<vmem>>, %arg7: memref<64x128xbf16, #tpu.memory_space<vmem>>, %arg8: memref<128x128xbf16, #tpu.memory_space<vmem>>, %arg9: memref<128x128xbf16, #tpu.memory_space<vmem>>, %arg10: memref<128x128xbf16, #tpu.memory_space<vmem>>, %arg11: memref<1x128xbf16, #tpu.memory_space<vmem>>, %arg12: memref<8x768xf32, #tpu.memory_space<vmem>>, %arg13: memref<8x1xf32, #tpu.memory_space<vmem>>) attributes {dimension_semantics = [#tpu.dimension_semantics<parallel>], iteration_bounds = array<i64: 3>, scalar_prefetch = 0 : i64, scratch_operands = 0 : i64, tpu.core_type = #tpu.core_type<tc>, window_params = [{transform_indices = @transform_0, window_bounds = array<i64: 8, 768>}, {transform_indices = @transform_1, window_bounds = array<i64: 8, 64>}, {pipeline_mode = #tpu.pipeline_mode<synchronous>, transform_indices = @transform_2, window_bounds = array<i64: 768, 768>}, {pipeline_mode = #tpu.pipeline_mode<synchronous>, transform_indices = @transform_3, window_bounds = array<i64: 768, 512>}, {pipeline_mode = #tpu.pipeline_mode<synchronous>, transform_indices = @transform_4, window_bounds = array<i64: 512, 256>}, {pipeline_mode = #tpu.pipeline_mode<synchronous>, transform_indices = @transform_5, window_bounds = array<i64: 256, 128>}, {pipeline_mode = #tpu.pipeline_mode<synchronous>, transform_indices = @transform_6, window_bounds = array<i64: 64, 128>}, {pipeline_mode = #tpu.pipeline_mode<synchronous>, transform_indices = @transform_7, window_bounds = array<i64: 128, 128>}, {pipeline_mode = #tpu.pipeline_mode<synchronous>, transform_indices = @transform_8, window_bounds = array<i64: 128, 128>}, {pipeline_mode = #tpu.pipeline_mode<synchronous>, transform_indices = @transform_9, window_bounds = array<i64: 128, 128>}, {pipeline_mode = #tpu.pipeline_mode<synchronous>, transform_indices = @transform_10, window_bounds = array<i64: 1, 128>}, {pipeline_mode = #tpu.pipeline_mode<synchronous>, transform_indices = @transform_11, window_bounds = array<i64: 8, 768>}, {transform_indices = @transform_12, window_bounds = array<i64: 8, 1>}]} {
    %c0 = arith.constant 0 : index
    %c0_0 = arith.constant 0 : index
    %0 = vector.load %arg12[%c0, %c0_0] : memref<8x768xf32, #tpu.memory_space<vmem>>, vector<8x768xf32>
    %c0_1 = arith.constant 0 : index
    %c0_2 = arith.constant 0 : index
    %1 = vector.load %arg1[%c0_1, %c0_2] : memref<8x768xbf16, #tpu.memory_space<vmem>>, vector<8x768xbf16>
    %c0_3 = arith.constant 0 : index
    %c0_4 = arith.constant 0 : index
    %2 = vector.load %arg3[%c0_3, %c0_4] : memref<768x768xbf16, #tpu.memory_space<vmem>>, vector<768x768xbf16>
    %cst = arith.constant dense<0.000000e+00> : vector<8x768xf32>
    %3 = tpu.matmul %1, %2, %cst {dimension_numbers = #tpu.dot_dimension_numbers<[1], [0], [0], [1], [0, 0, 1, 1], [], []>} : vector<8x768xbf16>, vector<768x768xbf16>, vector<8x768xf32> -> vector<8x768xf32>
    %4 = vector.extract_strided_slice %0 {offsets = [0, 0], sizes = [1, 768], strides = [1, 1]} : vector<8x768xf32> to vector<1x768xf32>
    %5 = vector.broadcast %4 : vector<1x768xf32> to vector<8x768xf32>
    %6 = arith.addf %3, %5 : vector<8x768xf32>
    %cst_5 = arith.constant 0.000000e+00 : f32
    %7 = vector.broadcast %cst_5 : f32 to vector<8x768xf32>
    %8 = arith.maximumf %6, %7 : vector<8x768xf32>
    %9 = arith.truncf %8 : vector<8x768xf32> to vector<8x768xbf16>
    %c0_6 = arith.constant 0 : index
    %c0_7 = arith.constant 0 : index
    %10 = vector.load %arg4[%c0_6, %c0_7] : memref<768x512xbf16, #tpu.memory_space<vmem>>, vector<768x512xbf16>
    %cst_8 = arith.constant dense<0.000000e+00> : vector<8x512xf32>
    %11 = tpu.matmul %9, %10, %cst_8 {dimension_numbers = #tpu.dot_dimension_numbers<[1], [0], [0], [1], [0, 0, 1, 1], [], []>} : vector<8x768xbf16>, vector<768x512xbf16>, vector<8x512xf32> -> vector<8x512xf32>
    %12 = vector.extract_strided_slice %0 {offsets = [1, 0], sizes = [1, 512], strides = [1, 1]} : vector<8x768xf32> to vector<1x512xf32>
    %13 = vector.broadcast %12 : vector<1x512xf32> to vector<8x512xf32>
    %14 = arith.addf %11, %13 : vector<8x512xf32>
    %cst_9 = arith.constant 0.000000e+00 : f32
    %15 = vector.broadcast %cst_9 : f32 to vector<8x512xf32>
    %16 = arith.maximumf %14, %15 : vector<8x512xf32>
    %17 = arith.truncf %16 : vector<8x512xf32> to vector<8x512xbf16>
    %c0_10 = arith.constant 0 : index
    %c0_11 = arith.constant 0 : index
    %18 = vector.load %arg5[%c0_10, %c0_11] : memref<512x256xbf16, #tpu.memory_space<vmem>>, vector<512x256xbf16>
    %cst_12 = arith.constant dense<0.000000e+00> : vector<8x256xf32>
    %19 = tpu.matmul %17, %18, %cst_12 {dimension_numbers = #tpu.dot_dimension_numbers<[1], [0], [0], [1], [0, 0, 1, 1], [], []>} : vector<8x512xbf16>, vector<512x256xbf16>, vector<8x256xf32> -> vector<8x256xf32>
    %20 = vector.extract_strided_slice %0 {offsets = [2, 0], sizes = [1, 256], strides = [1, 1]} : vector<8x768xf32> to vector<1x256xf32>
    %21 = vector.broadcast %20 : vector<1x256xf32> to vector<8x256xf32>
    %22 = arith.addf %19, %21 : vector<8x256xf32>
    %cst_13 = arith.constant 0.000000e+00 : f32
    %23 = vector.broadcast %cst_13 : f32 to vector<8x256xf32>
    %24 = arith.maximumf %22, %23 : vector<8x256xf32>
    %25 = arith.truncf %24 : vector<8x256xf32> to vector<8x256xbf16>
    %c0_14 = arith.constant 0 : index
    %c0_15 = arith.constant 0 : index
    %26 = vector.load %arg6[%c0_14, %c0_15] : memref<256x128xbf16, #tpu.memory_space<vmem>>, vector<256x128xbf16>
    %cst_16 = arith.constant dense<0.000000e+00> : vector<8x128xf32>
    %27 = tpu.matmul %25, %26, %cst_16 {dimension_numbers = #tpu.dot_dimension_numbers<[1], [0], [0], [1], [0, 0, 1, 1], [], []>} : vector<8x256xbf16>, vector<256x128xbf16>, vector<8x128xf32> -> vector<8x128xf32>
    %28 = vector.extract_strided_slice %0 {offsets = [3, 0], sizes = [1, 128], strides = [1, 1]} : vector<8x768xf32> to vector<1x128xf32>
    %29 = vector.broadcast %28 : vector<1x128xf32> to vector<8x128xf32>
    %30 = arith.addf %27, %29 : vector<8x128xf32>
    %cst_17 = arith.constant 0.000000e+00 : f32
    %31 = vector.broadcast %cst_17 : f32 to vector<8x128xf32>
    %32 = arith.maximumf %30, %31 : vector<8x128xf32>
    %c0_18 = arith.constant 0 : index
    %c0_19 = arith.constant 0 : index
    %33 = vector.load %arg2[%c0_18, %c0_19] : memref<8x64xbf16, #tpu.memory_space<vmem>>, vector<8x64xbf16>
    %c0_20 = arith.constant 0 : index
    %c0_21 = arith.constant 0 : index
    %34 = vector.load %arg7[%c0_20, %c0_21] : memref<64x128xbf16, #tpu.memory_space<vmem>>, vector<64x128xbf16>
    %cst_22 = arith.constant dense<0.000000e+00> : vector<8x128xf32>
    %35 = tpu.matmul %33, %34, %cst_22 {dimension_numbers = #tpu.dot_dimension_numbers<[1], [0], [0], [1], [0, 0, 1, 1], [], []>} : vector<8x64xbf16>, vector<64x128xbf16>, vector<8x128xf32> -> vector<8x128xf32>
    %36 = vector.extract_strided_slice %0 {offsets = [4, 0], sizes = [1, 128], strides = [1, 1]} : vector<8x768xf32> to vector<1x128xf32>
    %37 = vector.broadcast %36 : vector<1x128xf32> to vector<8x128xf32>
    %38 = arith.addf %35, %37 : vector<8x128xf32>
    %cst_23 = arith.constant 0.000000e+00 : f32
    %39 = vector.broadcast %cst_23 : f32 to vector<8x128xf32>
    %40 = arith.maximumf %38, %39 : vector<8x128xf32>
    %41 = arith.truncf %40 : vector<8x128xf32> to vector<8x128xbf16>
    %c0_24 = arith.constant 0 : index
    %c0_25 = arith.constant 0 : index
    %42 = vector.load %arg8[%c0_24, %c0_25] : memref<128x128xbf16, #tpu.memory_space<vmem>>, vector<128x128xbf16>
    %cst_26 = arith.constant dense<0.000000e+00> : vector<8x128xf32>
    %43 = tpu.matmul %41, %42, %cst_26 {dimension_numbers = #tpu.dot_dimension_numbers<[1], [0], [0], [1], [0, 0, 1, 1], [], []>} : vector<8x128xbf16>, vector<128x128xbf16>, vector<8x128xf32> -> vector<8x128xf32>
    %44 = vector.extract_strided_slice %0 {offsets = [5, 0], sizes = [1, 128], strides = [1, 1]} : vector<8x768xf32> to vector<1x128xf32>
    %45 = vector.broadcast %44 : vector<1x128xf32> to vector<8x128xf32>
    %46 = arith.addf %43, %45 : vector<8x128xf32>
    %cst_27 = arith.constant 0.000000e+00 : f32
    %47 = vector.broadcast %cst_27 : f32 to vector<8x128xf32>
    %48 = arith.maximumf %46, %47 : vector<8x128xf32>
    %49 = arith.truncf %32 : vector<8x128xf32> to vector<8x128xbf16>
    %c0_28 = arith.constant 0 : index
    %c0_29 = arith.constant 0 : index
    %50 = vector.load %arg9[%c0_28, %c0_29] : memref<128x128xbf16, #tpu.memory_space<vmem>>, vector<128x128xbf16>
    %cst_30 = arith.constant dense<0.000000e+00> : vector<8x128xf32>
    %51 = tpu.matmul %49, %50, %cst_30 {dimension_numbers = #tpu.dot_dimension_numbers<[1], [0], [0], [1], [0, 0, 1, 1], [], []>} : vector<8x128xbf16>, vector<128x128xbf16>, vector<8x128xf32> -> vector<8x128xf32>
    %52 = arith.truncf %48 : vector<8x128xf32> to vector<8x128xbf16>
    %c0_31 = arith.constant 0 : index
    %c0_32 = arith.constant 0 : index
    %53 = vector.load %arg10[%c0_31, %c0_32] : memref<128x128xbf16, #tpu.memory_space<vmem>>, vector<128x128xbf16>
    %cst_33 = arith.constant dense<0.000000e+00> : vector<8x128xf32>
    %54 = tpu.matmul %52, %53, %cst_33 {dimension_numbers = #tpu.dot_dimension_numbers<[1], [0], [0], [1], [0, 0, 1, 1], [], []>} : vector<8x128xbf16>, vector<128x128xbf16>, vector<8x128xf32> -> vector<8x128xf32>
    %55 = arith.addf %51, %54 : vector<8x128xf32>
    %56 = vector.extract_strided_slice %0 {offsets = [6, 0], sizes = [1, 128], strides = [1, 1]} : vector<8x768xf32> to vector<1x128xf32>
    %57 = vector.broadcast %56 : vector<1x128xf32> to vector<8x128xf32>
    %58 = arith.addf %55, %57 : vector<8x128xf32>
    %cst_34 = arith.constant 0.000000e+00 : f32
    %59 = vector.broadcast %cst_34 : f32 to vector<8x128xf32>
    %60 = arith.maximumf %58, %59 : vector<8x128xf32>
    %c0_35 = arith.constant 0 : index
    %c0_36 = arith.constant 0 : index
    %61 = vector.load %arg11[%c0_35, %c0_36] : memref<1x128xbf16, #tpu.memory_space<vmem>>, vector<1x128xbf16>
    %62 = arith.extf %61 : vector<1x128xbf16> to vector<1x128xf32>
    %63 = vector.broadcast %62 : vector<1x128xf32> to vector<8x128xf32>
    %64 = arith.mulf %60, %63 : vector<8x128xf32>
    %cst_37 = arith.constant dense<0.000000e+00> : vector<8xf32>
    %65 = vector.multi_reduction <add>, %64, %cst_37 [1] : vector<8x128xf32> to vector<8xf32>
    %66 = vector.shape_cast %65 : vector<8xf32> to vector<8x1xf32>
    %67 = vector.extract_strided_slice %0 {offsets = [7, 0], sizes = [1, 1], strides = [1, 1]} : vector<8x768xf32> to vector<1x1xf32>
    %68 = vector.broadcast %67 : vector<1x1xf32> to vector<8x1xf32>
    %69 = arith.addf %66, %68 : vector<8x1xf32>
    %cst_38 = arith.constant 0.000000e+00 : f32
    %70 = vector.broadcast %cst_38 : f32 to vector<8x1xf32>
    %71 = arith.maximumf %69, %70 : vector<8x1xf32>
    %c0_39 = arith.constant 0 : index
    %c0_40 = arith.constant 0 : index
    %72 = vector.load %arg13[%c0_39, %c0_40] : memref<8x1xf32, #tpu.memory_space<vmem>>, vector<8x1xf32>
    tpu.vector_store %arg13[%c0_39, %c0_40], %71 {strides = array<i32>} : memref<8x1xf32, #tpu.memory_space<vmem>>, vector<8x1xf32>,
    return
  }
  func.func @transform_0(%arg0: i32) -> (i32, i32) {
    %c0_i32 = arith.constant 0 : i32
    %c0_i32_0 = arith.constant 0 : i32
    return %arg0, %c0_i32 : i32, i32
  }
  func.func @transform_1(%arg0: i32) -> (i32, i32) {
    %c0_i32 = arith.constant 0 : i32
    %c0_i32_0 = arith.constant 0 : i32
    return %arg0, %c0_i32 : i32, i32
  }
  func.func @transform_2(%arg0: i32) -> (i32, i32) {
    %c0_i32 = arith.constant 0 : i32
    %c0_i32_0 = arith.constant 0 : i32
    %c0_i32_1 = arith.constant 0 : i32
    return %c0_i32, %c0_i32_0 : i32, i32
  }
  func.func @transform_3(%arg0: i32) -> (i32, i32) {
    %c0_i32 = arith.constant 0 : i32
    %c0_i32_0 = arith.constant 0 : i32
    %c0_i32_1 = arith.constant 0 : i32
    return %c0_i32, %c0_i32_0 : i32, i32
  }
  func.func @transform_4(%arg0: i32) -> (i32, i32) {
    %c0_i32 = arith.constant 0 : i32
    %c0_i32_0 = arith.constant 0 : i32
    %c0_i32_1 = arith.constant 0 : i32
    return %c0_i32, %c0_i32_0 : i32, i32
  }
  func.func @transform_5(%arg0: i32) -> (i32, i32) {
    %c0_i32 = arith.constant 0 : i32
    %c0_i32_0 = arith.constant 0 : i32
    %c0_i32_1 = arith.constant 0 : i32
    return %c0_i32, %c0_i32_0 : i32, i32
  }
  func.func @transform_6(%arg0: i32) -> (i32, i32) {
    %c0_i32 = arith.constant 0 : i32
    %c0_i32_0 = arith.constant 0 : i32
    %c0_i32_1 = arith.constant 0 : i32
    return %c0_i32, %c0_i32_0 : i32, i32
  }
  func.func @transform_7(%arg0: i32) -> (i32, i32) {
    %c0_i32 = arith.constant 0 : i32
    %c0_i32_0 = arith.constant 0 : i32
    %c0_i32_1 = arith.constant 0 : i32
    return %c0_i32, %c0_i32_0 : i32, i32
  }
  func.func @transform_8(%arg0: i32) -> (i32, i32) {
    %c0_i32 = arith.constant 0 : i32
    %c0_i32_0 = arith.constant 0 : i32
    %c0_i32_1 = arith.constant 0 : i32
    return %c0_i32, %c0_i32_0 : i32, i32
  }
  func.func @transform_9(%arg0: i32) -> (i32, i32) {
    %c0_i32 = arith.constant 0 : i32
    %c0_i32_0 = arith.constant 0 : i32
    %c0_i32_1 = arith.constant 0 : i32
    return %c0_i32, %c0_i32_0 : i32, i32
  }
  func.func @transform_10(%arg0: i32) -> (i32, i32) {
    %c0_i32 = arith.constant 0 : i32
    %c0_i32_0 = arith.constant 0 : i32
    %c0_i32_1 = arith.constant 0 : i32
    return %c0_i32, %c0_i32_0 : i32, i32
  }
  func.func @transform_11(%arg0: i32) -> (i32, i32) {
    %c0_i32 = arith.constant 0 : i32
    %c0_i32_0 = arith.constant 0 : i32
    %c0_i32_1 = arith.constant 0 : i32
    return %c0_i32, %c0_i32_0 : i32, i32
  }
  func.func @transform_12(%arg0: i32) -> (i32, i32) {
    %c0_i32 = arith.constant 0 : i32
    %c0_i32_0 = arith.constant 0 : i32
    return %arg0, %c0_i32 : i32, i32
  }
}

</mosaic_0001>

<bundles_post_ra>
// kernel: tpu_custom_call.1
= control target key start
LH: loop header
LB: loop body
LE: loop exit
PB: predicated region body
PF: predicated region fallthrough
CT: control target
= control target key end

     0   :  { %s9544_s0 = inlined_call_operand.hbm [shape: bf16[24,768], index: 0, kind: input, shape index: {}]   ;;  %s9545_s1 = inlined_call_operand.hbm [shape: bf16[24,64], index: 1, kind: input, shape index: {}]   ;;  %s9546_s2 = inlined_call_operand.hbm [shape: bf16[768,768], index: 2, kind: input, shape index: {}]   ;;  %s9547_s3 = inlined_call_operand.hbm [shape: bf16[768,512], index: 3, kind: input, shape index: {}]   ;;  %s9548_s4 = inlined_call_operand.hbm [shape: bf16[512,256], index: 4, kind: input, shape index: {}]   ;;  %s9549_s5 = inlined_call_operand.hbm [shape: bf16[256,128], index: 5, kind: input, shape index: {}]   ;;  %s9550_s6 = inlined_call_operand.hbm [shape: bf16[64,128], index: 6, kind: input, shape index: {}]   ;;  %s9551_s7 = inlined_call_operand.hbm [shape: bf16[128,128], index: 7, kind: input, shape index: {}]   ;;  %s9552_s8 = inlined_call_operand.hbm [shape: bf16[128,128], index: 8, kind: input, shape index: {}]   ;;  %s9553_s9 = inlined_call_operand.hbm [shape: bf16[128,128], index: 9, kind: input, shape index: {}]   ;;  %s9554_s10 = inlined_call_operand.hbm [shape: bf16[1,128], index: 10, kind: input, shape index: {}]   ;;  %s9555_s11 = inlined_call_operand.hbm [shape: f32[8,768], index: 11, kind: input, shape index: {}]   ;;  %s9556_s12 = inlined_call_operand.vmem [shape: f32[24,1], index: 12, kind: output, shape index: {}]  }
   0x1   :  { %9559 = sst [smem:[#allocation30_spill]] %s9545_s1 }
   0x2   :  { %9560 = sst [smem:[#allocation31_spill]] %s9546_s2 }
   0x3   :  { %9561 = sst [smem:[#allocation32_spill]] %s9547_s3 }
   0x4   :  { %9562 = sst [smem:[#allocation33_spill]] %s9548_s4 }
   0x5   :  { %9563 = sst [smem:[#allocation34_spill]] %s9549_s5 }
   0x6   :  { %9564 = sst [smem:[#allocation35_spill]] %s9550_s6 }
   0x7   :  { %9565 = sst [smem:[#allocation36_spill]] %s9556_s12 }
   0x8   :  { %17 = vsyncpa [#allocation3], 0 }
   0x9   :  { %19 = vsyncpa [#allocation3 + $0x1], 0 }
   0xa   :  { %20 = vsyncpa [#allocation5], 0 }
   0xb   :  { %22 = vsyncpa [#allocation5 + $0x1], 0 }
   0xc   :  { %23 = vsyncpa [#allocation8], 0 }
   0xd   :  { %24 = vsyncpa [#allocation11], 0 }
   0xe   :  { %25 = vsyncpa [#allocation14], 0 }
   0xf   :  { %26 = vsyncpa [#allocation17], 0 }
  0x10   :  { %27 = vsyncpa [#allocation20], 0  ;;  %s9128_s21 = smov 0   ;;  %s9130_s22 = smov 0  }
  0x11   :  { %s9132_s23 = smov 0   ;;  %s9134_s24 = smov 0  }
  0x12 LB: > { %s9566_s2 = sld [smem:[#allocation31_spill]]  ;;  %s9152_s28 = sadd.s32 4294967295, %s9043_s24   ;;  %s9043_s24 = sphi %s9134_s24, %s9582_s24   ;;  %s9039_s23 = sphi %s9132_s23, %s9581_s23   ;;  %s9035_s22 = sphi %s9130_s22, %s9580_s22   ;;  %s9031_s21 = sphi %s9128_s21, %s9579_s21  }
  0x13   : > { %p5489_p0 = scmp.ge.s32.totalorder %s9043_s24, 1  ;;  %p54_p1 = scmp.eq.s32.totalorder %s9152_s28, 0 }
  0x14   : > { %p326_p2 = scmp.lt.s32.totalorder %s9043_s24, 4  ;;  %s9045_s30 = smov [#allocation6]  }
  0x15   : > { %s339_s13 = sshll.u32 %s9045_s30, 4  ;;  %s9569_s3 = sld [smem:[#allocation32_spill]]  ;;  %s340_s13 = int_to_ptr.vmem [resolvable:$true] %s339_s13 }
  0x16   : > { %p9157_p3 = pnand %p5489_p0, %p326_p2  ;;  %s9046_s18 = smov [#allocation7]  }
  0x17   : > { %s353_s19 = sshll.u32 %s9046_s18, 4  ;;  %s9047_s20 = smov 384   ;;  %s354_s19 = int_to_ptr.vmem [resolvable:$true] %s353_s19 }
  0x18   : > { %s337_s27 = sshll.u32 %s9566_s2, 4  ;;  %p8507_p4 = pneg %p9157_p3  ;;  %s338_s27 = int_to_ptr.hbm [resolvable:$true] %s337_s27 }
  0x19   : > { %s9567_s29 = scalar_select %p9157_p3, 1, 0 }
  0x1a   : > { %p9168_p5 = pnand %p8507_p4, %p54_p1  ;;  %s9048_s25 = smov 24  }
  0x1b   : > { %9568 = sst [smem:[#allocation29_spill]] %s9567_s29  ;;  %s351_s16 = sshll.u32 %s9569_s3, 4  ;;  %s352_s16 = int_to_ptr.hbm [resolvable:$true] %s351_s16 }
  0x1c   : > { %8510 = dma.hbm_to_vmem [thread:$0]  (!%p9168_p5), %s338_s27, 36864, %s340_s13, [#allocation5], %s9047_s20, %s9047_s20, %s9048_s25  }
  0x1d   : > { %s9049_s26 = smov 256   ;;  %s9050_s30 = smov 16  }
  0x1e   : > { %8513 = dma.hbm_to_vmem [thread:$0]  (!%p9168_p5), %s352_s16, 24576, %s354_s19, [#allocation8], %s9049_s26, %s9049_s26, %s9050_s30  }
  0x1f   : > { %s9571_s5 = sld [smem:[#allocation34_spill]]  ;;  %s9051_s3 = smov [#allocation10]  }
  0x20   : > { %s381_s12 = sshll.u32 %s9051_s3, 4  ;;  %s407_s1 = sshll.u32 %s9551_s7, 4  ;;  %s382_s12 = int_to_ptr.vmem [resolvable:$true] %s381_s12  ;;  %s408_s1 = int_to_ptr.hbm [resolvable:$true] %s407_s1 }
  0x21   : > { %s9052_s27 = smov 64   ;;  %s9053_s13 = smov 4  }
  0x22   : > { %s9054_s16 = smov [#allocation13]   ;;  %s435_s3 = sshll.u32 %s9553_s9, 4  ;;  %s436_s3 = int_to_ptr.hbm [resolvable:$true] %s435_s3 }
  0x23   : > { %s409_s19 = sshll.u32 %s9054_s16, 4  ;;  %s9572_s4 = sld [smem:[#allocation33_spill]]  ;;  %s410_s19 = int_to_ptr.vmem [resolvable:$true] %s409_s19 }
  0x24   : > { %8525 = dma.hbm_to_vmem [thread:$0]  (!%p9168_p5), %s408_s1, 1024, %s410_s19, [#allocation14], %s9052_s27, %s9052_s27, %s9053_s13  }
  0x25   : > { %s379_s2 = sshll.u32 %s9571_s5, 4  ;;  %s9056_s14 = smov [#allocation9]   ;;  %s380_s2 = int_to_ptr.hbm [resolvable:$true] %s379_s2 }
  0x26   : > { %8519 = dma.hbm_to_vmem [thread:$0]  (!%p9168_p5), %s380_s2, 2048, %s382_s12, [#allocation11], %s9052_s27, %s9052_s27, %s9053_s13  }
  0x27   : > { %s9055_s2 = smov [#allocation16]   ;;  %s367_s15 = sshll.u32 %s9056_s14, 4  ;;  %s368_s15 = int_to_ptr.vmem [resolvable:$true] %s367_s15 }
  0x28   : > { %s437_s12 = sshll.u32 %s9055_s2, 4  ;;  %s9057_s18 = smov 128   ;;  %s438_s12 = int_to_ptr.vmem [resolvable:$true] %s437_s12 }
  0x29   : > { %s365_s30 = sshll.u32 %s9572_s4, 4  ;;  %s9058_s1 = smov 8   ;;  %s366_s30 = int_to_ptr.hbm [resolvable:$true] %s365_s30 }
  0x2a   : > { %8531 = dma.hbm_to_vmem [thread:$0]  (!%p9168_p5), %s436_s3, 1024, %s438_s12, [#allocation17], %s9052_s27, %s9052_s27, %s9053_s13  }
  0x2b   : > { %8516 = dma.hbm_to_vmem [thread:$0]  (!%p9168_p5), %s366_s30, 8192, %s368_s15, [#allocation8], %s9057_s18, %s9057_s18, %s9058_s1  }
  0x2c   : > { %s9573_s6 = sld [smem:[#allocation35_spill]]  ;;  %s9059_s25 = smov [#allocation12]  }
  0x2d   : > { %s395_s29 = sshll.u32 %s9059_s25, 4  ;;  %s421_s3 = sshll.u32 %s9552_s8, 4  ;;  %s396_s29 = int_to_ptr.vmem [resolvable:$true] %s395_s29  ;;  %s422_s3 = int_to_ptr.hbm [resolvable:$true] %s421_s3 }
  0x2e   : > { %s9060_s30 = smov [#allocation15]   ;;  %s450_s18 = sshll.u32 %s9554_s10, 4  ;;  %s451_s18 = int_to_ptr.hbm [resolvable:$true] %s450_s18 }
  0x2f   : > { %s423_s12 = sshll.u32 %s9060_s30, 4  ;;  %s462_s19 = sshll.u32 %s9555_s11, 4  ;;  %s424_s12 = int_to_ptr.vmem [resolvable:$true] %s423_s12  ;;  %s463_s19 = int_to_ptr.hbm [resolvable:$true] %s462_s19 }
  0x30   : > { %8528 = dma.hbm_to_vmem [thread:$0]  (!%p9168_p5), %s422_s3, 1024, %s424_s12, [#allocation14], %s9052_s27, %s9052_s27, %s9053_s13  }
  0x31   : > { %s40_s26 = sadd.s32 1, %s9039_s23  ;;  %p47_p6 = scmp.ne.s32.totalorder %s9039_s23, %s9035_s22 }
  0x32   : > { %s393_s20 = sshll.u32 %s9573_s6, 4  ;;  %p48_p8 = scmp.eq.s32.totalorder %s9043_s24, 0  ;;  %s394_s20 = int_to_ptr.hbm [resolvable:$true] %s393_s20 }
  0x33   : > { %8522 = dma.hbm_to_vmem [thread:$0]  (!%p9168_p5), %s394_s20, 512, %s396_s29, [#allocation11], %s9052_s27, %s9052_s27, %s9053_s13  }
  0x34   : > { %s9061_s20 = smov [#allocation18]   ;;  %s9062_s29 = smov [#allocation19]  }
  0x35   : > { %s452_s25 = sshll.u32 %s9061_s20, 4  ;;  %s464_s27 = sshll.u32 %s9062_s29, 4  ;;  %s453_s25 = int_to_ptr.vmem [resolvable:$true] %s452_s25  ;;  %s465_s27 = int_to_ptr.vmem [resolvable:$true] %s464_s27 }
  0x36   : > { %8534 = dma.hbm_to_vmem [thread:$0]  (!%p9168_p5), %s451_s18, 16, %s453_s25, [#allocation17]  }
  0x37   : > { %8537 = dma.hbm_to_vmem [thread:$0]  (!%p9168_p5), %s463_s19, 768, %s465_s27, [#allocation20]  }
  0x38   : > { %s9232_s13 = sadd.s32 1, %s9043_s24   ;;  %p53_p9 = scmp.ne.s32.totalorder %s9035_s22, %s9031_s21 }
  0x39   : > { %s37_s2 = ssub.s32 %s9043_s24, %s9232_s13  ;;  %p8555_p10 = scmp.lt.s32.totalorder %s9043_s24, 3 }
  0x3a   : > { %p38_p7 = scmp.eq.s32.totalorder %s37_s2, 0  ;;  %p49_p11 = por %p48_p8, %p47_p6 }
  0x3b   : > { %p9248_p12 = por %p54_p1, %p53_p9  ;;  %s475_s17 = sand.u32 1, %s9039_s23  }
  0x3c   : > { %s9244_s3 = scalar_select %p38_p7, %s9039_s23, %s40_s26  }
  0x3d   : > { %s8461_s12 = smul.u32 24, %s9043_s24  ;;  %p9257_p13 = pnand %p8555_p10, %p49_p11 }
  0x3e   : > { %s8460_s14 = smul.u32 24, %s475_s17  ;;  %s476_s25 = scalar_lea.sflag [#allocation3], %s475_s17 }
  0x3f   : > { %s484_s1 = scalar_lea.hbm %s9544_s0, %s8461_s12  ;;  %p8925_p2 = pneg %p9257_p13 }
  0x40   : > { %s486_s21 = sshll.u32 %s484_s1, 4  ;;  %s479_s19 = scalar_lea.vmem [#allocation2], %s8460_s14  ;;  %s487_s21 = int_to_ptr.hbm [resolvable:$true] %s486_s21 }
  0x41   : > { %s488_s20 = sshll.u32 %s479_s19, 4  ;;  %s8921_s29 = sshra.s32 %s487_s21, 4  ;;  %s489_s20 = int_to_ptr.vmem [resolvable:$true] %s488_s20  ;;  %s8922_s29 = int_to_ptr.hbm [resolvable:$true] %s8921_s29 }
  0x42   : > { %s8923_s27 = scalar_lea.hbm %s8922_s29, 24  ;;  %s8928_s12 = scalar_lea.hbm %s9544_s0, 72 }
  0x43   : > { %p8924_p0 = scmp.ne.s32.totalorder %s8922_s29, %s8923_s27  ;;  %p8929_p6 = scmp.lt.s32.totalorder %s8922_s29, %s9544_s0 }
  0x44   : > { %p8930_p7 = scmp.lt.s32.totalorder %s8928_s12, %s8923_s27 }
  0x45   : > { %p8926_p4 = pnand %p8925_p2, %p8924_p0 }
  0x46   : > { %p8931_p8 = por %p8930_p7, %p8929_p6 }
  0x47   : > { %p8927_p5 = pneg %p8926_p4 }
  0x49   : > { %p8932_p9 = pnand %p8931_p8, %p8927_p5 }
  0x4b   : > { %8935 = shalt.err (!%p8932_p9)
}
  0x4c   : > { %8541 = dma.hbm_to_vmem [thread:$0]  (!%p9257_p13), %s487_s21, 384, %s489_s20, %s476_s25  }
  0x4d   : > { %s495_s14 = sand.u32 1, %s9043_s24   ;;  %s5502_s1 = sshll.u32 %s475_s17, 2 }
  0x4e   : > { %s5503_s19 = sshll.u32 %s9043_s24, 2  ;;  %s499_s4 = scalar_lea.vmem [#allocation4], %s5502_s1 }
  0x4f   : > { %s507_s26 = sshll.u32 %s499_s4, 4  ;;  %s9576_s6 = sld [smem:[#allocation30_spill]]  ;;  %s508_s26 = int_to_ptr.vmem [resolvable:$true] %s507_s26 }
  0x50   : > { %s496_s27 = scalar_lea.sflag [#allocation5], %s495_s14 }
  0x55   : > { %s503_s15 = scalar_lea.hbm %s9576_s6, %s5503_s19  ;;  %s8958_s4 = scalar_lea.hbm %s9576_s6, 12 }
  0x56   : > { %s505_s29 = sshll.u32 %s503_s15, 4  ;;  %s506_s29 = int_to_ptr.hbm [resolvable:$true] %s505_s29 }
  0x57   : > { %s8951_s12 = sshra.s32 %s506_s29, 4  ;;  %s8952_s12 = int_to_ptr.hbm [resolvable:$true] %s8951_s12 }
  0x58   : > { %s8953_s18 = scalar_lea.hbm %s8952_s12, 4  ;;  %p8959_p4 = scmp.lt.s32.totalorder %s8952_s12, %s9576_s6 }
  0x59   : > { %p8954_p10 = scmp.ne.s32.totalorder %s8952_s12, %s8953_s18  ;;  %p8960_p5 = scmp.lt.s32.totalorder %s8958_s4, %s8953_s18 }
  0x5b   : > { %p8956_p11 = pnand %p8954_p10, %p8925_p2  ;;  %p8961_p6 = por %p8960_p5, %p8959_p4 }
  0x5d   : > { %p8957_p0 = pneg %p8956_p11 }
  0x5f   : > { %p8962_p7 = pnand %p8961_p6, %p8957_p0 }
  0x61   : > { %8965 = shalt.err (!%p8962_p7)
}
  0x62   : > { %8544 = dma.hbm_to_vmem [thread:$0]  (!%p9257_p13), %s506_s29, 64, %s508_s26, %s496_s27  }
  0x63   : > { %516 = sbr.rel (%p9157_p3) target bundleno = 1326 (0x52e), region = 68  ;;  %s518_s25 = sand.u32 (!%p9157_p3), 1, %s9035_s22  }
  0x64   : > { %s8462_s14 = smul.u32 (!%p9157_p3), 24, %s518_s25  ;;  %s519_s1 = scalar_lea.sflag (!%p9157_p3), [#allocation3], %s518_s25 }
  0x66   : > { %s9293_s19 = scalar_lea.vmem (!%p9157_p3), [#allocation2], %s8462_s14 }
  0x68   : > { %8998 = dma.done.wait (%p9248_p12), %s519_s1, 384  }
  0x69   : > { %9000 = vsyncadd (%p9248_p12), %s519_s1, 4294966912  ;;  %s528_s2 = sand.u32 1, %s9152_s28   ;;  %s5505_s16 = sshll.u32 %s518_s25, 2 }
  0x6a   : > { %s529_s26 = scalar_lea.sflag [#allocation5], %s528_s2  ;;  %s9300_s15 = scalar_lea.vmem [#allocation4], %s5505_s16 }
  0x6b   : > { %9002 = dma.done.wait (%p9248_p12), %s529_s26, 64  }
  0x6c   : > { %9004 = vsyncadd (%p9248_p12), %s529_s26, 4294967232 }
  0x6d   : > { %9006 = dma.done.wait (%p54_p1), [#allocation5], 36864  }
  0x6e   : > { %9008 = vsyncadd (%p54_p1), [#allocation5], 4294930432 }
  0x6f   : > { %9010 = dma.done.wait (%p54_p1), [#allocation8], 32768  }
  0x70   : > { %9012 = vsyncadd (%p54_p1), [#allocation8], 4294934528 }
  0x71   : > { %9014 = dma.done.wait (%p54_p1), [#allocation11], 2560  }
  0x72   : > { %9016 = vsyncadd (%p54_p1), [#allocation11], 4294964736 }
  0x73   : > { %9018 = dma.done.wait (%p54_p1), [#allocation14], 2048  }
  0x74   : > { %9020 = vsyncadd (%p54_p1), [#allocation14], 4294965248 }
  0x75   : > { %9022 = dma.done.wait (%p54_p1), [#allocation17], 1040  }
  0x76   : > { %9024 = vsyncadd (%p54_p1), [#allocation17], 4294966256 }
  0x77   : > { %9026 = dma.done.wait (%p54_p1), [#allocation20], 768  }
  0x78   : > { %9028 = vsyncadd (%p54_p1), [#allocation20], 4294966528  ;;  %v5687_v0 = vld [vmem:[#allocation6 + $0x150] sm:$0xf]  ;;  %v7917_v1 = vld [vmem:[#allocation6 + $0x164] sm:$0xf0] }
  0x79   : > { %v5879_v2 = vld [vmem:[#allocation6 + $0x2d0] sm:$0xf]  ;;  %v5688_v3 = vor.u32 %v7917_v1, %v5687_v0  ;;  %v7965_v4 = vld [vmem:[#allocation6 + $0x2e4] sm:$0xf0]  ;;  %v5663_v11 = vld [vmem:[#allocation6 + $0x120] sm:$0xf] }
  0x7a   : > { %v6071_v5 = vld [vmem:[#allocation6 + $0x450] sm:$0xf]  ;;  %v8013_v6 = vld [vmem:[#allocation6 + $0x464] sm:$0xf0]  ;;  %v5880_v7 = vor.u32 %v7965_v4, %v5879_v2  ;;  %v7911_v13 = vld [vmem:[#allocation6 + $0x134] sm:$0xf0] }
  0x7b   : > { %v6072_v8 = vor.u32 %v8013_v6, %v6071_v5  ;;  %v6263_v9 = vld [vmem:[#allocation6 + $0x5d0] sm:$0xf]  ;;  %v8061_v10 = vld [vmem:[#allocation6 + $0x5e4] sm:$0xf0]  ;;  %2397 = vmatpush.bf16.msra.mxu0 %v5688_v3  ;;  %v5855_v14 = vld [vmem:[#allocation6 + $0x2a0] sm:$0xf]  ;;  %v5664_v16 = vor.u32 %v7911_v13, %v5663_v11 }
  0x7c   : > { %v6264_v12 = vor.u32 %v8061_v10, %v6263_v9  ;;  %v7959_v15 = vld [vmem:[#allocation6 + $0x2b4] sm:$0xf0]  ;;  %2410 = vmatpush.bf16.msra.mxu1 %v5880_v7  ;;  %v6047_v18 = vld [vmem:[#allocation6 + $0x420] sm:$0xf]  ;;  %v5639_v23 = vld [vmem:[#allocation6 + $0xf0] sm:$0xf] }
  0x7d   : > { %2423 = vmatpush.bf16.msra.mxu2 %v6072_v8  ;;  %v5856_v17 = vor.u32 %v7959_v15, %v5855_v14  ;;  %v8007_v19 = vld [vmem:[#allocation6 + $0x434] sm:$0xf0]  ;;  %v6239_v20 = vld [vmem:[#allocation6 + $0x5a0] sm:$0xf]  ;;  %v7905_v24 = vld [vmem:[#allocation6 + $0x104] sm:$0xf0] }
  0x7e   : > { %2436 = vmatpush.bf16.msra.mxu3 %v6264_v12  ;;  %v6048_v21 = vor.u32 %v8007_v19, %v6047_v18  ;;  %v8055_v22 = vld [vmem:[#allocation6 + $0x5b4] sm:$0xf0]  ;;  %v5831_v26 = vld [vmem:[#allocation6 + $0x270] sm:$0xf]  ;;  %v7953_v27 = vld [vmem:[#allocation6 + $0x284] sm:$0xf0]  ;;  %v5640_v29 = vor.u32 %v7905_v24, %v5639_v23 }
  0x7f   : > { %v6240_v25 = vor.u32 %v8055_v22, %v6239_v20  ;;  %v6023_v28 = vld [vmem:[#allocation6 + $0x3f0] sm:$0xf]  ;;  %2398 = vmatpush.bf16.msra.mxu0 %v5664_v16  ;;  %v8001_v30 = vld [vmem:[#allocation6 + $0x404] sm:$0xf0]  ;;  %v5832_v33 = vor.u32 %v7953_v27, %v5831_v26  ;;  %v5615_v35 = vld [vmem:[#allocation6 + $0xc0] sm:$0xf] }
  0x80   : > { %v6215_v31 = vld [vmem:[#allocation6 + $0x570] sm:$0xf]  ;;  %v8049_v32 = vld [vmem:[#allocation6 + $0x584] sm:$0xf0]  ;;  %2411 = vmatpush.bf16.msra.mxu1 %v5856_v17  ;;  %v6024_v34 = vor.u32 %v8001_v30, %v6023_v28  ;;  %v7899_v36 = vld [vmem:[#allocation6 + $0xd4] sm:$0xf0] }
  0x81   : > { %2424 = vmatpush.bf16.msra.mxu2 %v6048_v21  ;;  %v5807_v37 = vld [vmem:[#allocation6 + $0x240] sm:$0xf]  ;;  %v6216_v38 = vor.u32 %v8049_v32, %v6215_v31  ;;  %v7947_v39 = vld [vmem:[#allocation6 + $0x254] sm:$0xf0]  ;;  %v5616_v44 = vor.u32 %v7899_v36, %v5615_v35  ;;  %v5591_v47 = vld [vmem:[#allocation6 + $0x90] sm:$0xf] }
  0x82   : > { %2437 = vmatpush.bf16.msra.mxu3 %v6240_v25  ;;  %v5999_v40 = vld [vmem:[#allocation6 + $0x3c0] sm:$0xf]  ;;  %v7995_v41 = vld [vmem:[#allocation6 + $0x3d4] sm:$0xf0]  ;;  %v5808_v45 = vor.u32 %v7947_v39, %v5807_v37  ;;  %v7893_v48 = vld [vmem:[#allocation6 + $0xa4] sm:$0xf0] }
  0x83   : > { %v6191_v42 = vld [vmem:[#allocation6 + $0x540] sm:$0xf]  ;;  %v8043_v43 = vld [vmem:[#allocation6 + $0x554] sm:$0xf0]  ;;  %2399 = vmatpush.bf16.msra.mxu0 %v5640_v29  ;;  %v6000_v46 = vor.u32 %v7995_v41, %v5999_v40  ;;  %v5783_v49 = vld [vmem:[#allocation6 + $0x210] sm:$0xf]  ;;  %v5592_v56 = vor.u32 %v7893_v48, %v5591_v47 }
  0x84   : > { %2412 = vmatpush.bf16.msra.mxu1 %v5832_v33  ;;  %v6192_v50 = vor.u32 %v8043_v43, %v6191_v42  ;;  %v7941_v51 = vld [vmem:[#allocation6 + $0x224] sm:$0xf0]  ;;  %v5975_v52 = vld [vmem:[#allocation6 + $0x390] sm:$0xf]  ;;  %v5567_v59 = vld [vmem:[#allocation6 + $0x60] sm:$0xf] }
  0x85   : > { %2425 = vmatpush.bf16.msra.mxu2 %v6024_v34  ;;  %v7989_v53 = vld [vmem:[#allocation6 + $0x3a4] sm:$0xf0]  ;;  %v6167_v54 = vld [vmem:[#allocation6 + $0x510] sm:$0xf]  ;;  %v5784_v57 = vor.u32 %v7941_v51, %v5783_v49  ;;  %v7887_v60 = vld [vmem:[#allocation6 + $0x74] sm:$0xf0] }
  0x86   : > { %2438 = vmatpush.bf16.msra.mxu3 %v6216_v38  ;;  %v8037_v55 = vld [vmem:[#allocation6 + $0x524] sm:$0xf0]  ;;  %v5976_v58 = vor.u32 %v7989_v53, %v5975_v52  ;;  %v5759_v61 = vld [vmem:[#allocation6 + $0x1e0] sm:$0xf]  ;;  %v7935_v63 = vld [vmem:[#allocation6 + $0x1f4] sm:$0xf0]  ;;  %v5568_v4 = vor.u32 %v7887_v60, %v5567_v59 }
  0x87   : > { %2400 = vmatpush.bf16.msra.mxu0 %v5616_v44  ;;  %v6168_v62 = vor.u32 %v8037_v55, %v6167_v54  ;;  %v5951_v0 = vld [vmem:[#allocation6 + $0x360] sm:$0xf]  ;;  %v7983_v1 = vld [vmem:[#allocation6 + $0x374] sm:$0xf0]  ;;  %v5760_v5 = vor.u32 %v7935_v63, %v5759_v61  ;;  %v5543_v7 = vld [vmem:[#allocation6 + $0x30] sm:$0xf] }
  0x88   : > { %2413 = vmatpush.bf16.msra.mxu1 %v5808_v45  ;;  %v6143_v2 = vld [vmem:[#allocation6 + $0x4e0] sm:$0xf]  ;;  %v8031_v3 = vld [vmem:[#allocation6 + $0x4f4] sm:$0xf0]  ;;  %v5952_v6 = vor.u32 %v7983_v1, %v5951_v0  ;;  %v7881_v8 = vld [vmem:[#allocation6 + $0x44] sm:$0xf0] }
  0x89   : > { %2426 = vmatpush.bf16.msra.mxu2 %v6000_v46  ;;  %v5735_v9 = vld [vmem:[#allocation6 + $0x1b0] sm:$0xf]  ;;  %v6144_v10 = vor.u32 %v8031_v3, %v6143_v2  ;;  %v7929_v11 = vld [vmem:[#allocation6 + $0x1c4] sm:$0xf0]  ;;  %v5544_v16 = vor.u32 %v7881_v8, %v5543_v7  ;;  %v5519_v17 = vld [vmem:[#allocation6] sm:$0xf] }
  0x8a   : > { %2439 = vmatpush.bf16.msra.mxu3 %v6192_v50  ;;  %v5927_v12 = vld [vmem:[#allocation6 + $0x330] sm:$0xf]  ;;  %v7977_v13 = vld [vmem:[#allocation6 + $0x344] sm:$0xf0]  ;;  %v7875_v18 = vld [vmem:[#allocation6 + $0x14] sm:$0xf0]  ;;  %v5736_v19 = vor.u32 %v7929_v11, %v5735_v9 }
  0x8b   : > { %2401 = vmatpush.bf16.msra.mxu0 %v5592_v56  ;;  %v6119_v14 = vld [vmem:[#allocation6 + $0x4b0] sm:$0xf]  ;;  %v8025_v15 = vld [vmem:[#allocation6 + $0x4c4] sm:$0xf0]  ;;  %v5928_v20 = vor.u32 %v7977_v13, %v5927_v12  ;;  %v5711_v21 = vld [vmem:[#allocation6 + $0x180] sm:$0xf]  ;;  %v5520_v31 = vor.u32 %v7875_v18, %v5519_v17 }
  0x8c   : > { %2414 = vmatpush.bf16.msra.mxu1 %v5784_v57  ;;  %v7923_v22 = vld [vmem:[#allocation6 + $0x194] sm:$0xf0]  ;;  %v5903_v23 = vld [vmem:[#allocation6 + $0x300] sm:$0xf]  ;;  %v6120_v24 = vor.u32 %v8025_v15, %v6119_v14  ;;  %v6455_v28 = vld [vmem:[#allocation6 + $0x750] sm:$0xf] }
  0x8d   : > { %2427 = vmatpush.bf16.msra.mxu2 %v5976_v58  ;;  %v7971_v25 = vld [vmem:[#allocation6 + $0x314] sm:$0xf0]  ;;  %v6095_v26 = vld [vmem:[#allocation6 + $0x480] sm:$0xf]  ;;  %v8109_v29 = vld [vmem:[#allocation6 + $0x764] sm:$0xf0]  ;;  %v5712_v35 = vor.u32 %v7923_v22, %v5711_v21 }
  0x8e   : > { %2440 = vmatpush.bf16.msra.mxu3 %v6168_v62  ;;  %v8019_v27 = vld [vmem:[#allocation6 + $0x494] sm:$0xf0]  ;;  %v6647_v30 = vld [vmem:[#allocation6 + $0x8d0] sm:$0xf]  ;;  %v8157_v32 = vld [vmem:[#allocation6 + $0x8e4] sm:$0xf0]  ;;  %v5904_v36 = vor.u32 %v7971_v25, %v5903_v23  ;;  %v6456_v40 = vor.u32 %v8109_v29, %v6455_v28 }
  0x8f   : > { %2402 = vmatpush.bf16.msra.mxu0 %v5568_v4  ;;  %v7914_v33 = vld [vmem:[#allocation6 + $0x154] sm:$0xf]  ;;  %v5689_v34 = vld [vmem:[#allocation6 + $0x168] sm:$0xf0]  ;;  %v6096_v39 = vor.u32 %v8019_v27, %v6095_v26  ;;  %v6648_v41 = vor.u32 %v8157_v32, %v6647_v30  ;;  %v6431_v43 = vld [vmem:[#allocation6 + $0x720] sm:$0xf] }
  0x90   : > { %2415 = vmatpush.bf16.msra.mxu1 %v5760_v5  ;;  %v7962_v37 = vld [vmem:[#allocation6 + $0x2d4] sm:$0xf]  ;;  %v5881_v38 = vld [vmem:[#allocation6 + $0x2e8] sm:$0xf0]  ;;  %v5692_v42 = vor.u32 %v7914_v33, %v5689_v34  ;;  %v8103_v44 = vld [vmem:[#allocation6 + $0x734] sm:$0xf0] }
  0x91   : > { %2428 = vmatpush.bf16.msra.mxu2 %v5952_v6  ;;  %v6623_v45 = vld [vmem:[#allocation6 + $0x8a0] sm:$0xf]  ;;  %v5884_v46 = vor.u32 %v7962_v37, %v5881_v38  ;;  %v8151_v47 = vld [vmem:[#allocation6 + $0x8b4] sm:$0xf0]  ;;  %v7908_v48 = vld [vmem:[#allocation6 + $0x124] sm:$0xf]  ;;  %v6432_v52 = vor.u32 %v8103_v44, %v6431_v43 }
  0x92   : > { %2441 = vmatpush.bf16.msra.mxu3 %v6144_v10  ;;  %v5665_v49 = vld [vmem:[#allocation6 + $0x138] sm:$0xf0]  ;;  %v7956_v50 = vld [vmem:[#allocation6 + $0x2a4] sm:$0xf]  ;;  %v6407_v53 = vld [vmem:[#allocation6 + $0x6f0] sm:$0xf]  ;;  %v6624_v54 = vor.u32 %v8151_v47, %v6623_v45 }
  0x93   : > { %2403 = vmatpush.bf16.msra.mxu0 %v5544_v16  ;;  %v5857_v51 = vld [vmem:[#allocation6 + $0x2b8] sm:$0xf0]  ;;  %v5668_v55 = vor.u32 %v7908_v48, %v5665_v49  ;;  %v8097_v56 = vld [vmem:[#allocation6 + $0x704] sm:$0xf0]  ;;  %v6599_v57 = vld [vmem:[#allocation6 + $0x870] sm:$0xf] }
  0x94   : > { %2416 = vmatpush.bf16.msra.mxu1 %v5736_v19  ;;  %v8145_v58 = vld [vmem:[#allocation6 + $0x884] sm:$0xf0]  ;;  %v5860_v59 = vor.u32 %v7956_v50, %v5857_v51  ;;  %v7902_v60 = vld [vmem:[#allocation6 + $0xf4] sm:$0xf]  ;;  %v5641_v61 = vld [vmem:[#allocation6 + $0x108] sm:$0xf0]  ;;  %v6408_v0 = vor.u32 %v8097_v56, %v6407_v53 }
  0x95   : > { %2429 = vmatpush.bf16.msra.mxu2 %v5928_v20  ;;  %v7950_v62 = vld [vmem:[#allocation6 + $0x274] sm:$0xf]  ;;  %v5833_v63 = vld [vmem:[#allocation6 + $0x288] sm:$0xf0]  ;;  %v6600_v1 = vor.u32 %v8145_v58, %v6599_v57  ;;  %v5644_v4 = vor.u32 %v7902_v60, %v5641_v61  ;;  %v6383_v5 = vld [vmem:[#allocation6 + $0x6c0] sm:$0xf] }
  0x96   : > { %2442 = vmatpush.bf16.msra.mxu3 %v6120_v24  ;;  %v640_v2 = vld [vmem:[%s9293_s19 + $0x8] sm:$0xff]  ;;  %v639_v3 = vld [vmem:[%s9293_s19] sm:$0xff]  ;;  %v8091_v6 = vld [vmem:[#allocation6 + $0x6d4] sm:$0xf0]  ;;  %v5836_v11 = vor.u32 %v7950_v62, %v5833_v63  ;;  %vm5037_vm0 = vcmask 523264   ;;  %p628_p1 = scmp.lt.s32.totalorder %s9152_s28, 2 }
  0x97   : > { %2404 = vmatpush.bf16.msra.mxu0 %v5520_v31  ;;  %v6575_v7 = vld [vmem:[#allocation6 + $0x840] sm:$0xf]  ;;  %v941_v8 = vunpack.c.l.b16 %v640_v2  ;;  %v939_v9 = vunpack.c.l.b16 %v639_v3  ;;  %v942_v10 = vunpack.c.h.b16 %v640_v2  ;;  %v8139_v12 = vld [vmem:[#allocation6 + $0x854] sm:$0xf0]  ;;  %v7896_v13 = vld [vmem:[#allocation6 + $0xc4] sm:$0xf]  ;;  %v940_v15 = vunpack.c.h.b16 %v639_v3 }
  0x98   : > { %2417 = vmatpush.bf16.msra.mxu1 %v5712_v35  ;;  %v5617_v14 = vld [vmem:[#allocation6 + $0xd8] sm:$0xf0]  ;;  %v7944_v16 = vld [vmem:[#allocation6 + $0x244] sm:$0xf]  ;;  %v6384_v21 = vor.u32 %v8091_v6, %v6383_v5  ;;  %v6576_v23 = vor.u32 %v8139_v12, %v6575_v7  ;;  %v6359_v25 = vld [vmem:[#allocation6 + $0x690] sm:$0xf] }
  0x99   : > { %2430 = vmatpush.bf16.msra.mxu2 %v5904_v36  ;;  %v5809_v17 = vld [vmem:[#allocation6 + $0x258] sm:$0xf0]  ;;  %v9332_v18 = vpack.c.b16 %v941_v8, %v941_v8  ;;  %v9334_v19 = vpack.c.b16 %v939_v9, %v939_v9  ;;  %v9336_v20 = vpack.c.b16 %v942_v10, %v942_v10  ;;  %v9338_v22 = vpack.c.b16 %v940_v15, %v940_v15  ;;  %v8085_v26 = vld [vmem:[#allocation6 + $0x6a4] sm:$0xf0]  ;;  %v6551_v27 = vld [vmem:[#allocation6 + $0x810] sm:$0xf] }
  0x9a   : > { %2443 = vmatpush.bf16.msra.mxu3 %v6096_v39  ;;  %v5620_v24 = vor.u32 %v7896_v13, %v5617_v14  ;;  %v5812_v28 = vor.u32 %v7944_v16, %v5809_v17  ;;  %v8133_v29 = vld [vmem:[#allocation6 + $0x824] sm:$0xf0]  ;;  %v7890_v30 = vld [vmem:[#allocation6 + $0x94] sm:$0xf]  ;;  %v5593_v31 = vld [vmem:[#allocation6 + $0xa8] sm:$0xf0]  ;;  %v6360_v34 = vor.u32 %v8085_v26, %v6359_v25 }
  0x9b   : > { %2449 = vmatpush.bf16.msrb.mxu0 %v6456_v40  ;;  %v7938_v32 = vld [vmem:[#allocation6 + $0x214] sm:$0xf]  ;;  %v5785_v33 = vld [vmem:[#allocation6 + $0x228] sm:$0xf0]  ;;  %2418 = vmatmul.bf16.vlgmr.msra.gmra.mxu1 %v9338_v22  ;;  %v6552_v35 = vor.u32 %v8133_v29, %v6551_v27  ;;  %v5596_v36 = vor.u32 %v7890_v30, %v5593_v31  ;;  %v6335_v37 = vld [vmem:[#allocation6 + $0x660] sm:$0xf] }
  0x9c   : > { %2462 = vmatpush.bf16.msrb.mxu1 %v6648_v41  ;;  %2431 = vmatmul.bf16.vlgmr.msra.gmra.mxu2 %v9332_v18  ;;  %v8079_v38 = vld [vmem:[#allocation6 + $0x674] sm:$0xf0]  ;;  %v6527_v39 = vld [vmem:[#allocation6 + $0x7e0] sm:$0xf]  ;;  %v5788_v40 = vor.u32 %v7938_v32, %v5785_v33  ;;  %v5569_v43 = vld [vmem:[#allocation6 + $0x78] sm:$0xf0] }
  0x9d   : > { %2475 = vmatpush.bf16.msrb.mxu2 %v5692_v42  ;;  %2405 = vmatmul.bf16.vlgmr.msra.gmra.mxu0 %v9334_v19  ;;  %v8127_v41 = vld [vmem:[#allocation6 + $0x7f4] sm:$0xf0]  ;;  %v7884_v42 = vld [vmem:[#allocation6 + $0x64] sm:$0xf]  ;;  %v5761_v45 = vld [vmem:[#allocation6 + $0x1f8] sm:$0xf0] }
  0x9e   : > { %2488 = vmatpush.bf16.msrb.mxu3 %v5884_v46  ;;  %v7932_v44 = vld [vmem:[#allocation6 + $0x1e4] sm:$0xf]  ;;  %v6336_v46 = vor.u32 %v8079_v38, %v6335_v37  ;;  %v6528_v47 = vor.u32 %v8127_v41, %v6527_v39  ;;  %v5572_v48 = vor.u32 %v7884_v42, %v5569_v43  ;;  %v6311_v49 = vld [vmem:[#allocation6 + $0x630] sm:$0xf]  ;;  %v8073_v50 = vld [vmem:[#allocation6 + $0x644] sm:$0xf0] }
  0x9f   : > { %2450 = vmatpush.bf16.msrb.mxu0 %v6432_v52  ;;  %2444 = vmatmul.bf16.vlgmr.msra.gmra.mxu3 %v9336_v20  ;;  %v6503_v51 = vld [vmem:[#allocation6 + $0x7b0] sm:$0xf]  ;;  %v5764_v52 = vor.u32 %v7932_v44, %v5761_v45  ;;  %v8121_v53 = vld [vmem:[#allocation6 + $0x7c4] sm:$0xf0]  ;;  %v7926_v56 = vld [vmem:[#allocation6 + $0x1b4] sm:$0xf]  ;;  %v6312_v58 = vor.u32 %v8073_v50, %v6311_v49 }
  0xa0   : > { %2463 = vmatpush.bf16.msrb.mxu1 %v6624_v54  ;;  %v7878_v54 = vld [vmem:[#allocation6 + $0x34] sm:$0xf]  ;;  %v5737_v57 = vld [vmem:[#allocation6 + $0x1c8] sm:$0xf0]  ;;  %v8067_v60 = vld [vmem:[#allocation6 + $0x614] sm:$0xf0]  ;;  %v6504_v62 = vor.u32 %v8121_v53, %v6503_v51 }
  0xa1   : > { %2476 = vmatpush.bf16.msrb.mxu2 %v5668_v55  ;;  %v5545_v55 = vld [vmem:[#allocation6 + $0x48] sm:$0xf0]  ;;  %v6479_v61 = vld [vmem:[#allocation6 + $0x780] sm:$0xf]  ;;  %v641_v2 = vld [vmem:[%s9293_s19 + $0x10] sm:$0xff]  ;;  %v5740_v3 = vor.u32 %v7926_v56, %v5737_v57  ;;  %s9584_s28 = smov (!%p628_p1, %s9152_s28), 2 }
  0xa2   : > { %2489 = vmatpush.bf16.msrb.mxu3 %v5860_v59  ;;  %v6287_v59 = vld [vmem:[#allocation6 + $0x600] sm:$0xf]  ;;  %v5548_v63 = vor.u32 %v7878_v54, %v5545_v55  ;;  %v7920_v5 = vld [vmem:[#allocation6 + $0x184] sm:$0xf]  ;;  %v5713_v6 = vld [vmem:[#allocation6 + $0x198] sm:$0xf0]  ;;  %v943_v14 = vunpack.c.l.b16 %v641_v2 }
  0xa3   : > { %2451 = vmatpush.bf16.msrb.mxu0 %v6408_v0  ;;  %v8115_v0 = vld [vmem:[#allocation6 + $0x794] sm:$0xf0]  ;;  %v8010_v7 = vld [vmem:[#allocation6 + $0x454] sm:$0xf]  ;;  %v6073_v8 = vld [vmem:[#allocation6 + $0x468] sm:$0xf0]  ;;  %v6288_v10 = vor.u32 %v8067_v60, %v6287_v59 }
  0xa4   : > { %2464 = vmatpush.bf16.msrb.mxu1 %v6600_v1  ;;  %v7872_v1 = vld [vmem:[#allocation6 + $0x4] sm:$0xf]  ;;  %v8058_v9 = vld [vmem:[#allocation6 + $0x5d4] sm:$0xf]  ;;  %v6457_v13 = vld [vmem:[#allocation6 + $0x768] sm:$0xf0]  ;;  %v6480_v15 = vor.u32 %v8115_v0, %v6479_v61  ;;  %v6076_v25 = vor.u32 %v8010_v7, %v6073_v8 }
  0xa5   : > { %2477 = vmatpush.bf16.msrb.mxu2 %v5644_v4  ;;  %v5521_v4 = vld [vmem:[#allocation6 + $0x18] sm:$0xf0]  ;;  %v8106_v12 = vld [vmem:[#allocation6 + $0x754] sm:$0xf]  ;;  %v8052_v30 = vld [vmem:[#allocation6 + $0x5a4] sm:$0xf] }
  0xa6   : > { %2490 = vmatpush.bf16.msrb.mxu3 %v5836_v11  ;;  %v6265_v11 = vld [vmem:[#allocation6 + $0x5e8] sm:$0xf0]  ;;  %v5524_v16 = vor.u32 %v7872_v1, %v5521_v4  ;;  %v8154_v17 = vld [vmem:[#allocation6 + $0x8d4] sm:$0xf]  ;;  %v6460_v27 = vor.u32 %v8106_v12, %v6457_v13  ;;  %v6049_v29 = vld [vmem:[#allocation6 + $0x438] sm:$0xf0] }
  0xa7   : > { %2452 = vmatpush.bf16.msrb.mxu0 %v6384_v21  ;;  %v6649_v21 = vld [vmem:[#allocation6 + $0x8e8] sm:$0xf0]  ;;  %v6268_v26 = vor.u32 %v8058_v9, %v6265_v11  ;;  %v6241_v32 = vld [vmem:[#allocation6 + $0x5b8] sm:$0xf0]  ;;  %v8100_v33 = vld [vmem:[#allocation6 + $0x724] sm:$0xf] }
  0xa8   : > { %2465 = vmatpush.bf16.msrb.mxu1 %v6576_v23  ;;  %v944_v23 = vunpack.c.h.b16 %v641_v2  ;;  %v6652_v31 = vor.u32 %v8154_v17, %v6649_v21  ;;  %v6625_v37 = vld [vmem:[#allocation6 + $0x8b8] sm:$0xf0]  ;;  %v7998_v42 = vld [vmem:[#allocation6 + $0x3f4] sm:$0xf]  ;;  %v6025_v43 = vld [vmem:[#allocation6 + $0x408] sm:$0xf0] }
  0xa9   : > { %2478 = vmatpush.bf16.msrb.mxu2 %v5620_v24  ;;  %v5716_v24 = vor.u32 %v7920_v5, %v5713_v6  ;;  %v8046_v44 = vld [vmem:[#allocation6 + $0x574] sm:$0xf]  ;;  %v6601_v50 = vld [vmem:[#allocation6 + $0x888] sm:$0xf0]  ;;  %v6028_v51 = vor.u32 %v7998_v42, %v6025_v43  ;;  %v7992_v54 = vld [vmem:[#allocation6 + $0x3c4] sm:$0xf] }
  0xaa   : > { %2491 = vmatpush.bf16.msrb.mxu3 %v5812_v28  ;;  %v8004_v28 = vld [vmem:[#allocation6 + $0x424] sm:$0xf]  ;;  %v9347_v38 = vpack.c.b16 %v944_v23, %v944_v23  ;;  %v8142_v49 = vld [vmem:[#allocation6 + $0x874] sm:$0xf]  ;;  %v6001_v55 = vld [vmem:[#allocation6 + $0x3d8] sm:$0xf0] }
  0xab   : > { %2453 = vmatpush.bf16.msrb.mxu0 %v6360_v34  ;;  %v6433_v34 = vld [vmem:[#allocation6 + $0x738] sm:$0xf0]  ;;  %v6052_v39 = vor.u32 %v8004_v28, %v6049_v29  ;;  %v8040_v56 = vld [vmem:[#allocation6 + $0x544] sm:$0xf]  ;;  %v6604_v57 = vor.u32 %v8142_v49, %v6601_v50  ;;  %v7986_v2 = vld [vmem:[#allocation6 + $0x394] sm:$0xf] }
  0xac   : > { %2466 = vmatpush.bf16.msrb.mxu1 %v6552_v35  ;;  %v9345_v35 = vpack.c.b16 %v943_v14, %v943_v14  ;;  %v6436_v41 = vor.u32 %v8100_v33, %v6433_v34  ;;  %v8088_v59 = vld [vmem:[#allocation6 + $0x6c4] sm:$0xf]  ;;  %v6385_v60 = vld [vmem:[#allocation6 + $0x6d8] sm:$0xf0]  ;;  %v8034_v4 = vld [vmem:[#allocation6 + $0x514] sm:$0xf] }
  0xad   : > { %2479 = vmatpush.bf16.msrb.mxu2 %v5596_v36  ;;  %v8148_v36 = vld [vmem:[#allocation6 + $0x8a4] sm:$0xf]  ;;  %v6388_v1 = vor.u32 %v8088_v59, %v6385_v60  ;;  %v6169_v6 = vld [vmem:[#allocation6 + $0x528] sm:$0xf0]  ;;  %v8082_v7 = vld [vmem:[#allocation6 + $0x694] sm:$0xf] }
  0xae   : > { %2492 = vmatpush.bf16.msrb.mxu3 %v5788_v40  ;;  %v6244_v40 = vor.u32 %v8052_v30, %v6241_v32  ;;  %v6628_v45 = vor.u32 %v8148_v36, %v6625_v37  ;;  %v8136_v61 = vld [vmem:[#allocation6 + $0x844] sm:$0xf]  ;;  %v6361_v8 = vld [vmem:[#allocation6 + $0x6a8] sm:$0xf0]  ;;  %v8130_v9 = vld [vmem:[#allocation6 + $0x814] sm:$0xf]  ;;  %v6172_v12 = vor.u32 %v8034_v4, %v6169_v6 }
  0xaf   : > { %2454 = vmatpush.bf16.msrb.mxu0 %v6336_v46  ;;  %v6217_v46 = vld [vmem:[#allocation6 + $0x588] sm:$0xf0]  ;;  %v6364_v13 = vor.u32 %v8082_v7, %v6361_v8  ;;  %v7980_v14 = vld [vmem:[#allocation6 + $0x364] sm:$0xf]  ;;  %v6145_v21 = vld [vmem:[#allocation6 + $0x4f8] sm:$0xf0] }
  0xb0   : > { %2467 = vmatpush.bf16.msrb.mxu1 %v6528_v47  ;;  %v8094_v47 = vld [vmem:[#allocation6 + $0x6f4] sm:$0xf]  ;;  %v8076_v23 = vld [vmem:[#allocation6 + $0x664] sm:$0xf]  ;;  %v6121_v34 = vld [vmem:[#allocation6 + $0x4c8] sm:$0xf0] }
  0xb1   : > { %2480 = vmatpush.bf16.msrb.mxu2 %v5572_v48  ;;  %v6409_v48 = vld [vmem:[#allocation6 + $0x708] sm:$0xf0]  ;;  %v7974_v30 = vld [vmem:[#allocation6 + $0x334] sm:$0xf]  ;;  %v7968_v42 = vld [vmem:[#allocation6 + $0x304] sm:$0xf] }
  0xb2   : > { %2493 = vmatpush.bf16.msrb.mxu3 %v5764_v52  ;;  %v6220_v52 = vor.u32 %v8046_v44, %v6217_v46  ;;  %v6412_v53 = vor.u32 %v8094_v47, %v6409_v48  ;;  %v8022_v32 = vld [vmem:[#allocation6 + $0x4b4] sm:$0xf]  ;;  %v6313_v37 = vld [vmem:[#allocation6 + $0x648] sm:$0xf0]  ;;  %v5905_v43 = vld [vmem:[#allocation6 + $0x318] sm:$0xf0] }
  0xb3   : > { %2455 = vmatpush.bf16.msrb.mxu0 %v6312_v58  ;;  %v6193_v58 = vld [vmem:[#allocation6 + $0x558] sm:$0xf0]  ;;  %v8070_v36 = vld [vmem:[#allocation6 + $0x634] sm:$0xf]  ;;  %v6124_v44 = vor.u32 %v8022_v32, %v6121_v34  ;;  %v8016_v46 = vld [vmem:[#allocation6 + $0x484] sm:$0xf] }
  0xb4   : > { %2468 = vmatpush.bf16.msrb.mxu1 %v6504_v62  ;;  %v6577_v62 = vld [vmem:[#allocation6 + $0x858] sm:$0xf0]  ;;  %v6196_v0 = vor.u32 %v8040_v56, %v6193_v58  ;;  %v8064_v48 = vld [vmem:[#allocation6 + $0x604] sm:$0xf]  ;;  %v5908_v56 = vor.u32 %v7968_v42, %v5905_v43  ;;  %v6079_v58 = vld [vmem:[#allocation6 + $0x458] sm:$0xf] }
  0xb5   : > { %2481 = vmatpush.bf16.msrb.mxu2 %v5548_v63  ;;  %v6004_v63 = vor.u32 %v7992_v54, %v6001_v55  ;;  %v6580_v5 = vor.u32 %v8136_v61, %v6577_v62  ;;  %v6097_v47 = vld [vmem:[#allocation6 + $0x498] sm:$0xf0]  ;;  %v7918_v54 = vld [vmem:[#allocation6 + $0x16c] sm:$0xf0]  ;;  %v5887_v55 = vld [vmem:[#allocation6 + $0x2d8] sm:$0xf] }
  0xb6   : > { %2494 = vmatpush.bf16.msrb.mxu3 %v5740_v3  ;;  %v5977_v3 = vld [vmem:[#allocation6 + $0x3a8] sm:$0xf0]  ;;  %v6289_v50 = vld [vmem:[#allocation6 + $0x618] sm:$0xf0]  ;;  %v8014_v59 = vld [vmem:[#allocation6 + $0x46c] sm:$0xf0]  ;;  %v6100_v60 = vor.u32 %v8016_v46, %v6097_v47 }
  0xb7   : > { %2456 = vmatpush.bf16.msrb.mxu0 %v6288_v10  ;;  %v6553_v10 = vld [vmem:[#allocation6 + $0x828] sm:$0xf0]  ;;  %v5980_v11 = vor.u32 %v7986_v2, %v5977_v3  ;;  %v6292_v61 = vor.u32 %v8064_v48, %v6289_v50  ;;  %v6271_v62 = vld [vmem:[#allocation6 + $0x5d8] sm:$0xf]  ;;  %v6080_v3 = vor.u32 %v8014_v59, %v6079_v58  ;;  %v5671_v4 = vld [vmem:[#allocation6 + $0x128] sm:$0xf] }
  0xb8   : > { %2469 = vmatpush.bf16.msrb.mxu1 %v6480_v15  ;;  %v5953_v15 = vld [vmem:[#allocation6 + $0x378] sm:$0xf0]  ;;  %v6556_v17 = vor.u32 %v8130_v9, %v6553_v10  ;;  %v5863_v6 = vld [vmem:[#allocation6 + $0x2a8] sm:$0xf]  ;;  %v7960_v8 = vld [vmem:[#allocation6 + $0x2bc] sm:$0xf0] }
  0xb9   : > { %2482 = vmatpush.bf16.msrb.mxu2 %v5524_v16  ;;  %v8028_v16 = vld [vmem:[#allocation6 + $0x4e4] sm:$0xf]  ;;  %v6055_v9 = vld [vmem:[#allocation6 + $0x428] sm:$0xf]  ;;  %v8008_v10 = vld [vmem:[#allocation6 + $0x43c] sm:$0xf0] }
  0xba   : > { %2495 = vmatpush.bf16.msrb.mxu3 %v5716_v24  ;;  %2457 = vmatmul.bf16.vlgmr.msrb.gmra.mxu0 %v9345_v35  ;;  %v6337_v24 = vld [vmem:[#allocation6 + $0x678] sm:$0xf0]  ;;  %v6148_v28 = vor.u32 %v8028_v16, %v6145_v21  ;;  %v5647_v16 = vld [vmem:[#allocation6 + $0xf8] sm:$0xf]  ;;  %v5623_v32 = vld [vmem:[#allocation6 + $0xc8] sm:$0xf] }
  0xbb   : > { %2501 = vmatpush.bf16.msra.mxu0 %v6076_v25  ;;  %2470 = vmatmul.bf16.vlgmr.msrb.gmra.mxu1 %v9347_v38  ;;  %v8124_v25 = vld [vmem:[#allocation6 + $0x7e4] sm:$0xf]  ;;  %v6340_v29 = vor.u32 %v8076_v23, %v6337_v24  ;;  %v5839_v21 = vld [vmem:[#allocation6 + $0x278] sm:$0xf]  ;;  %v7954_v24 = vld [vmem:[#allocation6 + $0x28c] sm:$0xf0] }
  0xbc   : > { %2514 = vmatpush.bf16.msra.mxu1 %v6268_v26  ;;  %2483 = vmatmul.bf16.vlgmr.msrb.gmra.mxu2 %v9334_v19  ;;  %v6529_v26 = vld [vmem:[#allocation6 + $0x7f8] sm:$0xf0]  ;;  %v5815_v34 = vld [vmem:[#allocation6 + $0x248] sm:$0xf]  ;;  %v8044_v42 = vld [vmem:[#allocation6 + $0x55c] sm:$0xf0] }
  0xbd   : > { %2527 = vmatpush.bf16.msra.mxu2 %v6460_v27  ;;  %2496 = vmatmul.bf16.vlgmr.msrb.gmra.mxu3 %v9338_v22  ;;  %v5956_v27 = vor.u32 %v7980_v14, %v5953_v15  ;;  %v6532_v33 = vor.u32 %v8124_v25, %v6529_v26  ;;  %v5864_v14 = vor.u32 %v7960_v8, %v5863_v6  ;;  %v6031_v25 = vld [vmem:[#allocation6 + $0x3f8] sm:$0xf]  ;;  %v8002_v26 = vld [vmem:[#allocation6 + $0x40c] sm:$0xf0]  ;;  %v5575_v58 = vld [vmem:[#allocation6 + $0x68] sm:$0xf] }
  0xbe   : > { %2540 = vmatpush.bf16.msra.mxu3 %v6652_v31  ;;  %v5929_v31 = vld [vmem:[#allocation6 + $0x348] sm:$0xf0]  ;;  %v6056_v15 = vor.u32 %v8008_v10, %v6055_v9  ;;  %v5599_v46 = vld [vmem:[#allocation6 + $0x98] sm:$0xf]  ;;  %v7894_v47 = vld [vmem:[#allocation6 + $0xac] sm:$0xf0] }
  0xbf   : > { %2502 = vmatpush.bf16.msra.mxu0 %v6052_v39  ;;  %v8118_v39 = vld [vmem:[#allocation6 + $0x7b4] sm:$0xf]  ;;  %v5791_v48 = vld [vmem:[#allocation6 + $0x218] sm:$0xf]  ;;  %v7942_v50 = vld [vmem:[#allocation6 + $0x22c] sm:$0xf0] }
  0xc0   : > { %2515 = vmatpush.bf16.msra.mxu1 %v6244_v40  ;;  %v6505_v40 = vld [vmem:[#allocation6 + $0x7c8] sm:$0xf0]  ;;  %v7888_v59 = vld [vmem:[#allocation6 + $0x7c] sm:$0xf0]  ;;  %v5551_v6 = vld [vmem:[#allocation6 + $0x38] sm:$0xf] }
  0xc1   : > { %2528 = vmatpush.bf16.msra.mxu2 %v6436_v41  ;;  %v5932_v41 = vor.u32 %v7974_v30, %v5929_v31  ;;  %v6508_v49 = vor.u32 %v8118_v39, %v6505_v40  ;;  %v5840_v30 = vor.u32 %v7954_v24, %v5839_v21  ;;  %v6032_v31 = vor.u32 %v8002_v26, %v6031_v25  ;;  %v6007_v39 = vld [vmem:[#allocation6 + $0x3c8] sm:$0xf]  ;;  %v7996_v40 = vld [vmem:[#allocation6 + $0x3dc] sm:$0xf0]  ;;  %v5743_v8 = vld [vmem:[#allocation6 + $0x1b8] sm:$0xf] }
  0xc2   : > { %2541 = vmatpush.bf16.msra.mxu3 %v6628_v45  ;;  %v6316_v45 = vor.u32 %v8070_v36, %v6313_v37  ;;  %v7948_v37 = vld [vmem:[#allocation6 + $0x25c] sm:$0xf0]  ;;  %v7930_v10 = vld [vmem:[#allocation6 + $0x1cc] sm:$0xf0]  ;;  %v5719_v24 = vld [vmem:[#allocation6 + $0x188] sm:$0xf] }
  0xc3   : > { %2503 = vmatpush.bf16.msra.mxu0 %v6028_v51  ;;  %v8112_v51 = vld [vmem:[#allocation6 + $0x784] sm:$0xf]  ;;  %v5744_v21 = vor.u32 %v7930_v10, %v5743_v8  ;;  %v7924_v25 = vld [vmem:[#allocation6 + $0x19c] sm:$0xf0]  ;;  %v5911_v26 = vld [vmem:[#allocation6 + $0x308] sm:$0xf] }
  0xc4   : > { %2516 = vmatpush.bf16.msra.mxu1 %v6220_v52  ;;  %v6481_v52 = vld [vmem:[#allocation6 + $0x798] sm:$0xf0]  ;;  %v6391_v8 = vld [vmem:[#allocation6 + $0x6c8] sm:$0xf]  ;;  %s5516_s30 = sshll.u32 %s9584_s28, 3  ;;  %s9578_s12 = sld [smem:[#allocation36_spill]] }
  0xc5   : > { %2529 = vmatpush.bf16.msra.mxu2 %v6412_v53  ;;  %v5695_v53 = vld [vmem:[#allocation6 + $0x158] sm:$0xf]  ;;  %v6583_v10 = vld [vmem:[#allocation6 + $0x848] sm:$0xf]  ;;  %vm5303_vm1 = vcmask 7168  }
  0xc6   : > { %2542 = vmatpush.bf16.msra.mxu3 %v6604_v57  ;;  %v7966_v57 = vld [vmem:[#allocation6 + $0x2ec] sm:$0xf0] }
  0xc7   : > { %2504 = vmatpush.bf16.msra.mxu0 %v6004_v63  ;;  %v8062_v63 = vld [vmem:[#allocation6 + $0x5ec] sm:$0xf0]  ;;  %v5888_v2 = vor.u32 %v7966_v57, %v5887_v55  ;;  %v5600_v55 = vor.u32 %v7894_v47, %v5599_v46 }
  0xc8   : > { %2517 = vmatpush.bf16.msra.mxu1 %v6196_v0  ;;  %v6484_v0 = vor.u32 %v8112_v51, %v6481_v52  ;;  %v6272_v7 = vor.u32 %v8062_v63, %v6271_v62  ;;  %v5983_v51 = vld [vmem:[#allocation6 + $0x398] sm:$0xf]  ;;  %v7990_v52 = vld [vmem:[#allocation6 + $0x3ac] sm:$0xf0]  ;;  %v7936_v62 = vld [vmem:[#allocation6 + $0x1fc] sm:$0xf0] }
  0xc9   : > { %2530 = vmatpush.bf16.msra.mxu2 %v6388_v1  ;;  %v5696_v1 = vor.u32 %v7918_v54, %v5695_v53  ;;  %v6175_v53 = vld [vmem:[#allocation6 + $0x518] sm:$0xf]  ;;  %v8038_v54 = vld [vmem:[#allocation6 + $0x52c] sm:$0xf0]  ;;  %v5984_v57 = vor.u32 %v7990_v52, %v5983_v51  ;;  %v5959_v63 = vld [vmem:[#allocation6 + $0x368] sm:$0xf] }
  0xca   : > { %2543 = vmatpush.bf16.msra.mxu3 %v6580_v5  ;;  %v7912_v5 = vld [vmem:[#allocation6 + $0x13c] sm:$0xf0]  ;;  %s631_s18 = scalar_lea.vmem %s9578_s12, %s5516_s30 }
  0xcb   : > { %2505 = vmatpush.bf16.msra.mxu0 %v5980_v11  ;;  %v6247_v11 = vld [vmem:[#allocation6 + $0x5a8] sm:$0xf]  ;;  %v8152_v52 = vld [vmem:[#allocation6 + $0x8bc] sm:$0xf0] }
  0xcc   : > { %2518 = vmatpush.bf16.msra.mxu1 %v6172_v12  ;;  %v8056_v12 = vld [vmem:[#allocation6 + $0x5bc] sm:$0xf0] }
  0xcd   : > { %2531 = vmatpush.bf16.msra.mxu2 %v6364_v13  ;;  %v5672_v13 = vor.u32 %v7912_v5, %v5671_v4  ;;  %v6248_v23 = vor.u32 %v8056_v12, %v6247_v11  ;;  %v5935_v11 = vld [vmem:[#allocation6 + $0x338] sm:$0xf]  ;;  %v7978_v12 = vld [vmem:[#allocation6 + $0x34c] sm:$0xf0] }
  0xce   : > { %2544 = vmatpush.bf16.msra.mxu3 %v6556_v17  ;;  %v7906_v17 = vld [vmem:[#allocation6 + $0x10c] sm:$0xf0] }
  0xcf   : > { %2506 = vmatpush.bf16.msra.mxu0 %v5956_v27  ;;  %v6223_v27 = vld [vmem:[#allocation6 + $0x578] sm:$0xf] }
  0xd0   : > { %2519 = vmatpush.bf16.msra.mxu1 %v6148_v28  ;;  %v8050_v28 = vld [vmem:[#allocation6 + $0x58c] sm:$0xf0] }
  0xd1   : > { %2532 = vmatpush.bf16.msra.mxu2 %v6340_v29  ;;  %v5648_v29 = vor.u32 %v7906_v17, %v5647_v16  ;;  %v6224_v36 = vor.u32 %v8050_v28, %v6223_v27  ;;  %v5527_v16 = vld [vmem:[#allocation6 + $0x8] sm:$0xf]  ;;  %v7876_v17 = vld [vmem:[#allocation6 + $0x1c] sm:$0xf0] }
  0xd2   : > { %2545 = vmatpush.bf16.msra.mxu3 %v6532_v33  ;;  %v7900_v33 = vld [vmem:[#allocation6 + $0xdc] sm:$0xf0] }
  0xd3   : > { %2507 = vmatpush.bf16.msra.mxu0 %v5932_v41  ;;  %v6199_v41 = vld [vmem:[#allocation6 + $0x548] sm:$0xf]  ;;  %v5624_v43 = vor.u32 %v7900_v33, %v5623_v32  ;;  %v7972_v28 = vld [vmem:[#allocation6 + $0x31c] sm:$0xf0]  ;;  %v8110_v32 = vld [vmem:[#allocation6 + $0x76c] sm:$0xf0] }
  0xd4   : > { %2520 = vmatpush.bf16.msra.mxu1 %v6124_v44  ;;  %v5816_v44 = vor.u32 %v7948_v37, %v5815_v34  ;;  %v6655_v33 = vld [vmem:[#allocation6 + $0x8d8] sm:$0xf]  ;;  %v5528_v34 = vor.u32 %v7876_v17, %v5527_v16  ;;  %v7915_v37 = vld [vmem:[#allocation6 + $0x15c] sm:$0xf]  ;;  %v5817_v16 = vld [vmem:[#allocation6 + $0x260] sm:$0xf0] }
  0xd5   : > { %2533 = vmatpush.bf16.msra.mxu2 %v6316_v45  ;;  %v6008_v45 = vor.u32 %v7996_v40, %v6007_v39  ;;  %v5697_v39 = vld [vmem:[#allocation6 + $0x170] sm:$0xf0]  ;;  %v5720_v40 = vor.u32 %v7924_v25, %v5719_v24  ;;  %v6367_v24 = vld [vmem:[#allocation6 + $0x698] sm:$0xf]  ;;  %v8086_v25 = vld [vmem:[#allocation6 + $0x6ac] sm:$0xf0] }
  0xd6   : > { %2546 = vmatpush.bf16.msra.mxu3 %v6508_v49  ;;  %v6200_v49 = vor.u32 %v8044_v42, %v6199_v41  ;;  %v5912_v41 = vor.u32 %v7972_v28, %v5911_v26  ;;  %v7963_v42 = vld [vmem:[#allocation6 + $0x2dc] sm:$0xf]  ;;  %v5700_v47 = vor.u32 %v7915_v37, %v5697_v39  ;;  %v6559_v26 = vld [vmem:[#allocation6 + $0x818] sm:$0xf]  ;;  %v8134_v28 = vld [vmem:[#allocation6 + $0x82c] sm:$0xf0] }
  0xd7   : > { %2508 = vmatpush.bf16.msra.mxu0 %v5908_v56  ;;  %v5792_v56 = vor.u32 %v7942_v50, %v5791_v48  ;;  %v6439_v48 = vld [vmem:[#allocation6 + $0x728] sm:$0xf]  ;;  %v8080_v39 = vld [vmem:[#allocation6 + $0x67c] sm:$0xf0] }
  0xd8   : > { %2521 = vmatpush.bf16.msra.mxu1 %v6100_v60  ;;  %v5767_v60 = vld [vmem:[#allocation6 + $0x1e8] sm:$0xf] }
  0xd9   : > { %2534 = vmatpush.bf16.msra.mxu2 %v6292_v61  ;;  %v6176_v61 = vor.u32 %v8038_v54, %v6175_v53  ;;  %v5768_v4 = vor.u32 %v7936_v62, %v5767_v60  ;;  %v6631_v50 = vld [vmem:[#allocation6 + $0x8a8] sm:$0xf]  ;;  %v7909_v53 = vld [vmem:[#allocation6 + $0x12c] sm:$0xf]  ;;  %v5673_v54 = vld [vmem:[#allocation6 + $0x140] sm:$0xf0] }
  0xda   : > { %2547 = vmatpush.bf16.msra.mxu3 %v6484_v0  ;;  %2509 = vmatmul.bf16.vlgmr.msra.gmra.mxu0 %v9332_v18  ;;  %v7984_v0 = vld [vmem:[#allocation6 + $0x37c] sm:$0xf0]  ;;  %v6415_v60 = vld [vmem:[#allocation6 + $0x6f8] sm:$0xf]  ;;  %v6343_v37 = vld [vmem:[#allocation6 + $0x668] sm:$0xf] }
  0xdb   : > { %2553 = vmatpush.bf16.msrb.mxu0 %v5696_v1  ;;  %2522 = vmatmul.bf16.vlgmr.msra.gmra.mxu1 %v9336_v20  ;;  %v6151_v1 = vld [vmem:[#allocation6 + $0x4e8] sm:$0xf]  ;;  %v5960_v5 = vor.u32 %v7984_v0, %v5959_v63  ;;  %v6607_v62 = vld [vmem:[#allocation6 + $0x878] sm:$0xf]  ;;  %v8146_v0 = vld [vmem:[#allocation6 + $0x88c] sm:$0xf0] }
  0xdc   : > { %2566 = vmatpush.bf16.msrb.mxu1 %v5888_v2  ;;  %2535 = vmatmul.bf16.vlgmr.msra.gmra.mxu2 %v9345_v35  ;;  %v8032_v2 = vld [vmem:[#allocation6 + $0x4fc] sm:$0xf0] }
  0xdd   : > { %2579 = vmatpush.bf16.msrb.mxu2 %v6080_v3  ;;  %2548 = vmatmul.bf16.vlgmr.msra.gmra.mxu3 %v9347_v38  ;;  %v5576_v3 = vor.u32 %v7888_v59, %v5575_v58  ;;  %v6152_v9 = vor.u32 %v8032_v2, %v6151_v1  ;;  %v6632_v58 = vor.u32 %v8152_v52, %v6631_v50  ;;  %v7903_v1 = vld [vmem:[#allocation6 + $0xfc] sm:$0xf]  ;;  %v5649_v2 = vld [vmem:[#allocation6 + $0x110] sm:$0xf0]  ;;  %v6319_v50 = vld [vmem:[#allocation6 + $0x638] sm:$0xf] }
  0xde   : > { %2592 = vmatpush.bf16.msrb.mxu3 %v6272_v7  ;;  %v7882_v7 = vld [vmem:[#allocation6 + $0x4c] sm:$0xf0]  ;;  %v5676_v59 = vor.u32 %v7909_v53, %v5673_v54  ;;  %v6511_v52 = vld [vmem:[#allocation6 + $0x7b8] sm:$0xf] }
  0xdf   : > { %2554 = vmatpush.bf16.msrb.mxu0 %v5672_v13  ;;  %v6127_v13 = vld [vmem:[#allocation6 + $0x4b8] sm:$0xf]  ;;  %v8122_v54 = vld [vmem:[#allocation6 + $0x7cc] sm:$0xf0] }
  0xe0   : > { %2567 = vmatpush.bf16.msrb.mxu1 %v5864_v14  ;;  %v8026_v14 = vld [vmem:[#allocation6 + $0x4cc] sm:$0xf0] }
  0xe1   : > { %2580 = vmatpush.bf16.msrb.mxu2 %v6056_v15  ;;  %v5552_v15 = vor.u32 %v7882_v7, %v5551_v6  ;;  %v6128_v27 = vor.u32 %v8026_v14, %v6127_v13  ;;  %v6608_v6 = vor.u32 %v8146_v0, %v6607_v62  ;;  %v5652_v7 = vor.u32 %v7903_v1, %v5649_v2  ;;  %v7897_v13 = vld [vmem:[#allocation6 + $0xcc] sm:$0xf]  ;;  %v5625_v14 = vld [vmem:[#allocation6 + $0xe0] sm:$0xf0]  ;;  %v6487_v0 = vld [vmem:[#allocation6 + $0x788] sm:$0xf] }
  0xe2   : > { %2593 = vmatpush.bf16.msrb.mxu3 %v6248_v23  ;;  %v5936_v23 = vor.u32 %v7978_v12, %v5935_v11  ;;  %v8140_v12 = vld [vmem:[#allocation6 + $0x85c] sm:$0xf0]  ;;  %v6512_v62 = vor.u32 %v8122_v54, %v6511_v52  ;;  %v7873_v2 = vld [vmem:[#allocation6 + $0xc] sm:$0xf] }
  0xe3   : > { %2555 = vmatpush.bf16.msrb.mxu0 %v5648_v29  ;;  %v6103_v29 = vld [vmem:[#allocation6 + $0x488] sm:$0xf]  ;;  %v8116_v1 = vld [vmem:[#allocation6 + $0x79c] sm:$0xf0]  ;;  %v7993_v52 = vld [vmem:[#allocation6 + $0x3cc] sm:$0xf] }
  0xe4   : > { %2568 = vmatpush.bf16.msrb.mxu1 %v5840_v30  ;;  %v8020_v30 = vld [vmem:[#allocation6 + $0x49c] sm:$0xf0]  ;;  %v8041_v54 = vld [vmem:[#allocation6 + $0x54c] sm:$0xf] }
  0xe5   : > { %2581 = vmatpush.bf16.msrb.mxu2 %v6032_v31  ;;  %v6463_v31 = vld [vmem:[#allocation6 + $0x758] sm:$0xf] }
  0xe6   : > { %2594 = vmatpush.bf16.msrb.mxu3 %v6224_v36  ;;  %v8158_v36 = vld [vmem:[#allocation6 + $0x8ec] sm:$0xf0] }
  0xe7   : > { %2556 = vmatpush.bf16.msrb.mxu0 %v5624_v43  ;;  %v5889_v43 = vld [vmem:[#allocation6 + $0x2f0] sm:$0xf0]  ;;  %v6656_v46 = vor.u32 %v8158_v36, %v6655_v33  ;;  %v6368_v33 = vor.u32 %v8086_v25, %v6367_v24 }
  0xe8   : > { %2569 = vmatpush.bf16.msrb.mxu1 %v5816_v44  ;;  %v6104_v44 = vor.u32 %v8020_v30, %v6103_v29  ;;  %v5892_v51 = vor.u32 %v7963_v42, %v5889_v43  ;;  %v7891_v29 = vld [vmem:[#allocation6 + $0x9c] sm:$0xf]  ;;  %v5601_v30 = vld [vmem:[#allocation6 + $0xb0] sm:$0xf0]  ;;  %v8128_v42 = vld [vmem:[#allocation6 + $0x7fc] sm:$0xf0] }
  0xe9   : > { %2582 = vmatpush.bf16.msrb.mxu2 %v6008_v45  ;;  %v6464_v45 = vor.u32 %v8110_v32, %v6463_v31  ;;  %v7939_v31 = vld [vmem:[#allocation6 + $0x21c] sm:$0xf]  ;;  %v5793_v32 = vld [vmem:[#allocation6 + $0x230] sm:$0xf0]  ;;  %v5604_v36 = vor.u32 %v7891_v29, %v5601_v30  ;;  %v7885_v43 = vld [vmem:[#allocation6 + $0x6c] sm:$0xf] }
  0xea   : > { %2595 = vmatpush.bf16.msrb.mxu3 %v6200_v49  ;;  %v8104_v49 = vld [vmem:[#allocation6 + $0x73c] sm:$0xf0]  ;;  %v6249_v30 = vld [vmem:[#allocation6 + $0x5c0] sm:$0xf0] }
  0xeb   : > { %2557 = vmatpush.bf16.msrb.mxu0 %v5600_v55  ;;  %v7957_v55 = vld [vmem:[#allocation6 + $0x2ac] sm:$0xf] }
  0xec   : > { %2570 = vmatpush.bf16.msrb.mxu1 %v5792_v56  ;;  %v5865_v56 = vld [vmem:[#allocation6 + $0x2c0] sm:$0xf0] }
  0xed   : > { %2583 = vmatpush.bf16.msrb.mxu2 %v5984_v57  ;;  %v6440_v57 = vor.u32 %v8104_v49, %v6439_v48  ;;  %v5868_v63 = vor.u32 %v7957_v55, %v5865_v56  ;;  %v7879_v55 = vld [vmem:[#allocation6 + $0x3c] sm:$0xf]  ;;  %v5553_v56 = vld [vmem:[#allocation6 + $0x50] sm:$0xf0] }
  0xee   : > { %2596 = vmatpush.bf16.msrb.mxu3 %v6176_v61  ;;  %v8098_v61 = vld [vmem:[#allocation6 + $0x70c] sm:$0xf0] }
  0xef   : > { %2558 = vmatpush.bf16.msrb.mxu0 %v5576_v3  ;;  %v7951_v3 = vld [vmem:[#allocation6 + $0x27c] sm:$0xf] }
  0xf0   : > { %2571 = vmatpush.bf16.msrb.mxu1 %v5768_v4  ;;  %v5841_v4 = vld [vmem:[#allocation6 + $0x290] sm:$0xf0] }
  0xf1   : > { %2584 = vmatpush.bf16.msrb.mxu2 %v5960_v5  ;;  %v6416_v5 = vor.u32 %v8098_v61, %v6415_v60  ;;  %v5844_v11 = vor.u32 %v7951_v3, %v5841_v4  ;;  %v6295_v60 = vld [vmem:[#allocation6 + $0x608] sm:$0xf]  ;;  %v8068_v61 = vld [vmem:[#allocation6 + $0x61c] sm:$0xf0]  ;;  %v5529_v4 = vld [vmem:[#allocation6 + $0x20] sm:$0xf0] }
  0xf2   : > { %2597 = vmatpush.bf16.msrb.mxu3 %v6152_v9  ;;  %v8092_v9 = vld [vmem:[#allocation6 + $0x6dc] sm:$0xf0] }
  0xf3   : > { %2559 = vmatpush.bf16.msrb.mxu0 %v5552_v15  ;;  %v7945_v15 = vld [vmem:[#allocation6 + $0x24c] sm:$0xf]  ;;  %v6392_v17 = vor.u32 %v8092_v9, %v6391_v8  ;;  %v6081_v8 = vld [vmem:[#allocation6 + $0x470] sm:$0xf0]  ;;  %v8059_v9 = vld [vmem:[#allocation6 + $0x5dc] sm:$0xf] }
  0xf4   : > { %2572 = vmatpush.bf16.msrb.mxu1 %v5744_v21  ;;  %v6584_v21 = vor.u32 %v8140_v12, %v6583_v10  ;;  %v6296_v10 = vor.u32 %v8068_v61, %v6295_v60  ;;  %v8107_v12 = vld [vmem:[#allocation6 + $0x75c] sm:$0xf]  ;;  %v6585_v60 = vld [vmem:[#allocation6 + $0x860] sm:$0xf0] }
  0xf5   : > { %2585 = vmatpush.bf16.msrb.mxu2 %v5936_v23  ;;  %v5628_v23 = vor.u32 %v7897_v13, %v5625_v14  ;;  %v6465_v13 = vld [vmem:[#allocation6 + $0x770] sm:$0xf0]  ;;  %v6488_v14 = vor.u32 %v8116_v1, %v6487_v0 }
  0xf6   : > { %2598 = vmatpush.bf16.msrb.mxu3 %v6128_v27  ;;  %v5820_v27 = vor.u32 %v7945_v15, %v5817_v16  ;;  %v5532_v15 = vor.u32 %v7873_v2, %v5529_v4  ;;  %v8155_v16 = vld [vmem:[#allocation6 + $0x8dc] sm:$0xf]  ;;  %v6468_v25 = vor.u32 %v8107_v12, %v6465_v13  ;;  %v5985_v1 = vld [vmem:[#allocation6 + $0x3b0] sm:$0xf0] }
  0xf7   : > { %2560 = vmatpush.bf16.msrb.mxu0 %v5528_v34  ;;  %v6560_v34 = vor.u32 %v8134_v28, %v6559_v26  ;;  %v8005_v26 = vld [vmem:[#allocation6 + $0x42c] sm:$0xf]  ;;  %v8035_v2 = vld [vmem:[#allocation6 + $0x51c] sm:$0xf] }
  0xf8   : > { %2573 = vmatpush.bf16.msrb.mxu1 %v5720_v40  ;;  %v6535_v40 = vld [vmem:[#allocation6 + $0x7e8] sm:$0xf]  ;;  %v8053_v28 = vld [vmem:[#allocation6 + $0x5ac] sm:$0xf] }
  0xf9   : > { %2586 = vmatpush.bf16.msrb.mxu2 %v5912_v41  ;;  %v5796_v41 = vor.u32 %v7939_v31, %v5793_v32  ;;  %v6536_v48 = vor.u32 %v8128_v42, %v6535_v40  ;;  %v8101_v31 = vld [vmem:[#allocation6 + $0x72c] sm:$0xf]  ;;  %v6441_v32 = vld [vmem:[#allocation6 + $0x740] sm:$0xf0]  ;;  %v7999_v40 = vld [vmem:[#allocation6 + $0x3fc] sm:$0xf] }
  0xfa   : > { %2599 = vmatpush.bf16.msrb.mxu3 %v6104_v44  ;;  %2561 = vmatmul.bf16.vlgmr.msrb.gmra.mxu0 %v9334_v19  ;;  %v5577_v44 = vld [vmem:[#allocation6 + $0x80] sm:$0xf0]  ;;  %v8047_v42 = vld [vmem:[#allocation6 + $0x57c] sm:$0xf] }
  0xfb   : > { %2605 = vmatpush.bf16.msra.mxu0 %v6464_v45  ;;  %2574 = vmatmul.bf16.vlgmr.msrb.gmra.mxu1 %v9338_v22  ;;  %v7933_v45 = vld [vmem:[#allocation6 + $0x1ec] sm:$0xf]  ;;  %v5580_v49 = vor.u32 %v7885_v43, %v5577_v44  ;;  %v6225_v44 = vld [vmem:[#allocation6 + $0x590] sm:$0xf0] }
  0xfc   : > { %2618 = vmatpush.bf16.msra.mxu1 %v6656_v46  ;;  %2587 = vmatmul.bf16.vlgmr.msrb.gmra.mxu2 %v9332_v18  ;;  %v5769_v46 = vld [vmem:[#allocation6 + $0x200] sm:$0xf0] }
  0xfd   : > { %2631 = vmatpush.bf16.msra.mxu2 %v5700_v47  ;;  %2600 = vmatmul.bf16.vlgmr.msrb.gmra.mxu3 %v9336_v20  ;;  %v6344_v47 = vor.u32 %v8080_v39, %v6343_v37  ;;  %v5772_v53 = vor.u32 %v7933_v45, %v5769_v46  ;;  %v6252_v37 = vor.u32 %v8053_v28, %v6249_v30  ;;  %v8095_v45 = vld [vmem:[#allocation6 + $0x6fc] sm:$0xf]  ;;  %v6417_v46 = vld [vmem:[#allocation6 + $0x710] sm:$0xf0] }
  0xfe   : > { %2644 = vmatpush.bf16.msra.mxu3 %v5892_v51  ;;  %v8074_v51 = vld [vmem:[#allocation6 + $0x64c] sm:$0xf0]  ;;  %v6444_v39 = vor.u32 %v8101_v31, %v6441_v32  ;;  %v7975_v31 = vld [vmem:[#allocation6 + $0x33c] sm:$0xf]  ;;  %v5937_v32 = vld [vmem:[#allocation6 + $0x350] sm:$0xf0] }
  0xff   : > { %2606 = vmatpush.bf16.msra.mxu0 %v6440_v57  ;;  %v7927_v57 = vld [vmem:[#allocation6 + $0x1bc] sm:$0xf] }
 0x100   : > { %2619 = vmatpush.bf16.msra.mxu1 %v6632_v58  ;;  %v5745_v58 = vld [vmem:[#allocation6 + $0x1d0] sm:$0xf0] }
 0x101   : > { %2632 = vmatpush.bf16.msra.mxu2 %v5676_v59  ;;  %v6320_v59 = vor.u32 %v8074_v51, %v6319_v50  ;;  %v5748_v3 = vor.u32 %v7927_v57, %v5745_v58  ;;  %v6228_v50 = vor.u32 %v8047_v42, %v6225_v44  ;;  %v6420_v51 = vor.u32 %v8095_v45, %v6417_v46  ;;  %v8089_v57 = vld [vmem:[#allocation6 + $0x6cc] sm:$0xf]  ;;  %v6393_v58 = vld [vmem:[#allocation6 + $0x6e0] sm:$0xf0]  ;;  %v8119_v42 = vld [vmem:[#allocation6 + $0x7bc] sm:$0xf] }
 0x102   : > { %2645 = vmatpush.bf16.msra.mxu3 %v5868_v63  ;;  %v5556_v63 = vor.u32 %v7879_v55, %v5553_v56  ;;  %v6201_v56 = vld [vmem:[#allocation6 + $0x560] sm:$0xf0]  ;;  %v6396_v0 = vor.u32 %v8089_v57, %v6393_v58  ;;  %v5940_v45 = vor.u32 %v7975_v31, %v5937_v32  ;;  %v7969_v46 = vld [vmem:[#allocation6 + $0x30c] sm:$0xf]  ;;  %v5655_v32 = vld [vmem:[#allocation6 + $0x100] sm:$0xf] }
 0x103   : > { %2607 = vmatpush.bf16.msra.mxu0 %v6416_v5  ;;  %v7921_v5 = vld [vmem:[#allocation6 + $0x18c] sm:$0xf]  ;;  %v6489_v57 = vld [vmem:[#allocation6 + $0x7a0] sm:$0xf0] }
 0x104   : > { %2620 = vmatpush.bf16.msra.mxu1 %v6608_v6  ;;  %v5721_v6 = vld [vmem:[#allocation6 + $0x1a0] sm:$0xf0] }
 0x105   : > { %2633 = vmatpush.bf16.msra.mxu2 %v5652_v7  ;;  %v8011_v7 = vld [vmem:[#allocation6 + $0x45c] sm:$0xf] }
 0x106   : > { %2646 = vmatpush.bf16.msra.mxu3 %v5844_v11  ;;  %v6273_v11 = vld [vmem:[#allocation6 + $0x5f0] sm:$0xf0] }
 0x107   : > { %2608 = vmatpush.bf16.msra.mxu0 %v6392_v17  ;;  %v6657_v17 = vld [vmem:[#allocation6 + $0x8f0] sm:$0xf0]  ;;  %v6276_v24 = vor.u32 %v8059_v9, %v6273_v11  ;;  %v7981_v11 = vld [vmem:[#allocation6 + $0x36c] sm:$0xf] }
 0x108   : > { %2621 = vmatpush.bf16.msra.mxu1 %v6584_v21  ;;  %v5724_v21 = vor.u32 %v7921_v5, %v5721_v6  ;;  %v6660_v29 = vor.u32 %v8155_v16, %v6657_v17  ;;  %v8083_v5 = vld [vmem:[#allocation6 + $0x69c] sm:$0xf]  ;;  %v6369_v6 = vld [vmem:[#allocation6 + $0x6b0] sm:$0xf0] }
 0x109   : > { %2634 = vmatpush.bf16.msra.mxu2 %v5628_v23  ;;  %v6084_v23 = vor.u32 %v8011_v7, %v6081_v8  ;;  %v633_v7 = vld [vmem:[#allocation19] sm:$0xff]  ;;  %v8131_v8 = vld [vmem:[#allocation6 + $0x81c] sm:$0xf]  ;;  %v6561_v9 = vld [vmem:[#allocation6 + $0x830] sm:$0xf0]  ;;  %v6372_v13 = vor.u32 %v8083_v5, %v6369_v6 }
 0x10a   : > { %2647 = vmatpush.bf16.msra.mxu3 %v5820_v27  ;;  %v6057_v27 = vld [vmem:[#allocation6 + $0x440] sm:$0xf0]  ;;  %v930_v16 = vperm.slane %v633_v7, 0  ;;  %v6564_v17 = vor.u32 %v8131_v8, %v6561_v9  ;;  %v6279_v7 = vld [vmem:[#allocation6 + $0x5e0] sm:$0xf] }
 0x10b   : > { %2609 = vmatpush.bf16.msra.mxu0 %v6368_v33  ;;  %v8149_v33 = vld [vmem:[#allocation6 + $0x8ac] sm:$0xf]  ;;  %v8063_v8 = vld [vmem:[#allocation6 + $0x5f4] sm:$0xf0] }
 0x10c   : > { %2622 = vmatpush.bf16.msra.mxu1 %v6560_v34  ;;  %v6633_v34 = vld [vmem:[#allocation6 + $0x8c0] sm:$0xf0] }
 0x10d   : > { %2635 = vmatpush.bf16.msra.mxu2 %v5604_v36  ;;  %v6060_v36 = vor.u32 %v8005_v26, %v6057_v27  ;;  %v6636_v43 = vor.u32 %v8149_v33, %v6633_v34  ;;  %v6537_v26 = vld [vmem:[#allocation6 + $0x800] sm:$0xf0]  ;;  %v8023_v33 = vld [vmem:[#allocation6 + $0x4bc] sm:$0xf] }
 0x10e   : > { %2648 = vmatpush.bf16.msra.mxu3 %v5796_v41  ;;  %v6033_v41 = vld [vmem:[#allocation6 + $0x410] sm:$0xf0] }
 0x10f   : > { %2610 = vmatpush.bf16.msra.mxu0 %v6344_v47  ;;  %v8143_v47 = vld [vmem:[#allocation6 + $0x87c] sm:$0xf] }
 0x110   : > { %2623 = vmatpush.bf16.msra.mxu1 %v6536_v48  ;;  %v6609_v48 = vld [vmem:[#allocation6 + $0x890] sm:$0xf0] }
 0x111   : > { %2636 = vmatpush.bf16.msra.mxu2 %v5580_v49  ;;  %v6036_v49 = vor.u32 %v7999_v40, %v6033_v41  ;;  %v6612_v55 = vor.u32 %v8143_v47, %v6609_v48  ;;  %v8071_v40 = vld [vmem:[#allocation6 + $0x63c] sm:$0xf]  ;;  %v6321_v41 = vld [vmem:[#allocation6 + $0x650] sm:$0xf0]  ;;  %v5913_v47 = vld [vmem:[#allocation6 + $0x320] sm:$0xf0] }
 0x112   : > { %2649 = vmatpush.bf16.msra.mxu3 %v5772_v53  ;;  %v6009_v53 = vld [vmem:[#allocation6 + $0x3e0] sm:$0xf0] }
 0x113   : > { %2611 = vmatpush.bf16.msra.mxu0 %v6320_v59  ;;  %v8137_v59 = vld [vmem:[#allocation6 + $0x84c] sm:$0xf]  ;;  %v6012_v61 = vor.u32 %v7993_v52, %v6009_v53 }
 0x114   : > { %2624 = vmatpush.bf16.msra.mxu1 %v6512_v62  ;;  %v7987_v62 = vld [vmem:[#allocation6 + $0x39c] sm:$0xf]  ;;  %v6588_v4 = vor.u32 %v8137_v59, %v6585_v60  ;;  %v8065_v52 = vld [vmem:[#allocation6 + $0x60c] sm:$0xf]  ;;  %v5703_v60 = vld [vmem:[#allocation6 + $0x160] sm:$0xf] }
 0x115   : > { %2637 = vmatpush.bf16.msra.mxu2 %v5556_v63  ;;  %v6204_v63 = vor.u32 %v8041_v54, %v6201_v56  ;;  %v8113_v56 = vld [vmem:[#allocation6 + $0x78c] sm:$0xf] }
 0x116   : > { %2650 = vmatpush.bf16.msra.mxu3 %v5748_v3  ;;  %v6177_v3 = vld [vmem:[#allocation6 + $0x530] sm:$0xf0] }
 0x117   : > { %2612 = vmatpush.bf16.msra.mxu0 %v6296_v10  ;;  %v5988_v10 = vor.u32 %v7987_v62, %v5985_v1  ;;  %v6180_v12 = vor.u32 %v8035_v2, %v6177_v3  ;;  %v5895_v62 = vld [vmem:[#allocation6 + $0x2e0] sm:$0xf]  ;;  %v8015_v2 = vld [vmem:[#allocation6 + $0x474] sm:$0xf0] }
 0x118   : > { %2625 = vmatpush.bf16.msra.mxu1 %v6488_v14  ;;  %v5961_v14 = vld [vmem:[#allocation6 + $0x380] sm:$0xf0]  ;;  %v6087_v1 = vld [vmem:[#allocation6 + $0x460] sm:$0xf] }
 0x119   : > { %2638 = vmatpush.bf16.msra.mxu2 %v5532_v15  ;;  %v8029_v15 = vld [vmem:[#allocation6 + $0x4ec] sm:$0xf]  ;;  %v5964_v27 = vor.u32 %v7981_v11, %v5961_v14  ;;  %v5679_v14 = vld [vmem:[#allocation6 + $0x130] sm:$0xf] }
 0x11a   : > { %2651 = vmatpush.bf16.msra.mxu3 %v5724_v21  ;;  %2613 = vmatmul.bf16.vlgmr.msra.gmra.mxu0 %v9345_v35  ;;  %v6153_v21 = vld [vmem:[#allocation6 + $0x500] sm:$0xf0]  ;;  %v2406_v28 = vpop.f32.mrf.mxu0 }
 0x11b   : > { %2657 = vmatpush.bf16.msrb.mxu0 %v6084_v23  ;;  %2626 = vmatmul.bf16.vlgmr.msra.gmra.mxu1 %v9347_v38  ;;  %v8077_v23 = vld [vmem:[#allocation6 + $0x66c] sm:$0xf]  ;;  %v2407_v34 = vadd.f32 %v2406_v28, %v930_v16  ;;  %v5871_v16 = vld [vmem:[#allocation6 + $0x2b0] sm:$0xf] }
 0x11c   : > { %2670 = vmatpush.bf16.msrb.mxu1 %v6276_v24  ;;  %2639 = vmatmul.bf16.vlgmr.msra.gmra.mxu2 %v9334_v19  ;;  %v6345_v24 = vld [vmem:[#allocation6 + $0x680] sm:$0xf0] }
 0x11d   : > { %2683 = vmatpush.bf16.msrb.mxu2 %v6468_v25  ;;  %2652 = vmatmul.bf16.vlgmr.msra.gmra.mxu3 %v9338_v22  ;;  %v8125_v25 = vld [vmem:[#allocation6 + $0x7ec] sm:$0xf]  ;;  %v6348_v30 = vor.u32 %v8077_v23, %v6345_v24  ;;  %v6063_v23 = vld [vmem:[#allocation6 + $0x430] sm:$0xf]  ;;  %v8009_v24 = vld [vmem:[#allocation6 + $0x444] sm:$0xf0] }
 0x11e   : > { %2696 = vmatpush.bf16.msrb.mxu3 %v6660_v29  ;;  %v6156_v29 = vor.u32 %v8029_v15, %v6153_v21  ;;  %v7913_v15 = vld [vmem:[#allocation6 + $0x144] sm:$0xf0]  ;;  %v6064_v31 = vor.u32 %v8009_v24, %v6063_v23  ;;  %v6159_v24 = vld [vmem:[#allocation6 + $0x4f0] sm:$0xf] }
 0x11f   : > { %2658 = vmatpush.bf16.msrb.mxu0 %v6060_v36  ;;  %v2419_v36 = vpop.f32.mrf.mxu1  ;;  %v2432_v53 = vpop.f32.mrf.mxu2  ;;  %v7961_v21 = vld [vmem:[#allocation6 + $0x2c4] sm:$0xf0]  ;;  %v5680_v28 = vor.u32 %v7913_v15, %v5679_v14  ;;  %v5775_v14 = vld [vmem:[#allocation6 + $0x1f0] sm:$0xf] }
 0x120   : > { %2671 = vmatpush.bf16.msrb.mxu1 %v6252_v37  ;;  %v6540_v37 = vor.u32 %v8125_v25, %v6537_v26  ;;  %v2420_v44 = vadd.f32 %v2419_v36, %v2407_v34  ;;  %v6255_v25 = vld [vmem:[#allocation6 + $0x5b0] sm:$0xf]  ;;  %v8057_v26 = vld [vmem:[#allocation6 + $0x5c4] sm:$0xf0]  ;;  %v5847_v34 = vld [vmem:[#allocation6 + $0x280] sm:$0xf] }
 0x121   : > { %2684 = vmatpush.bf16.msrb.mxu2 %v6444_v39  ;;  %v6129_v39 = vld [vmem:[#allocation6 + $0x4d0] sm:$0xf0]  ;;  %v6256_v36 = vor.u32 %v8057_v26, %v6255_v25  ;;  %v8033_v25 = vld [vmem:[#allocation6 + $0x504] sm:$0xf0] }
 0x122   : > { %2697 = vmatpush.bf16.msrb.mxu3 %v6636_v43  ;;  %v6513_v43 = vld [vmem:[#allocation6 + $0x7d0] sm:$0xf0]  ;;  %v6132_v48 = vor.u32 %v8023_v33, %v6129_v39  ;;  %v2433_v58 = vadd.f32 %v2432_v53, %v2420_v44  ;;  %v2445_v59 = vpop.f32.mrf.mxu3  ;;  %v7907_v33 = vld [vmem:[#allocation6 + $0x114] sm:$0xf0]  ;;  %v6039_v39 = vld [vmem:[#allocation6 + $0x400] sm:$0xf] }
 0x123   : > { %2659 = vmatpush.bf16.msrb.mxu0 %v6036_v49  ;;  %v6324_v49 = vor.u32 %v8071_v40, %v6321_v41  ;;  %v6516_v54 = vor.u32 %v8119_v42, %v6513_v43  ;;  %v8003_v40 = vld [vmem:[#allocation6 + $0x414] sm:$0xf0]  ;;  %v6231_v41 = vld [vmem:[#allocation6 + $0x580] sm:$0xf]  ;;  %v5656_v43 = vor.u32 %v7907_v33, %v5655_v32  ;;  %v6207_v53 = vld [vmem:[#allocation6 + $0x550] sm:$0xf] }
 0x124   : > { %2672 = vmatpush.bf16.msrb.mxu1 %v6228_v50  ;;  %v8017_v50 = vld [vmem:[#allocation6 + $0x48c] sm:$0xf]  ;;  %v9365_v3 = vadd.f32 %v2445_v59, %v2433_v58  ;;  %v8051_v42 = vld [vmem:[#allocation6 + $0x594] sm:$0xf0]  ;;  %v5559_v33 = vld [vmem:[#allocation6 + $0x40] sm:$0xf] }
 0x125   : > { %2685 = vmatpush.bf16.msrb.mxu2 %v6420_v51  ;;  %v6105_v51 = vld [vmem:[#allocation6 + $0x4a0] sm:$0xf0]  ;;  %v634_v59 = vld [vmem:[#allocation19 + $0x8] sm:$0xff] }
 0x126   : > { %2698 = vmatpush.bf16.msrb.mxu3 %v6612_v55  ;;  %v6297_v55 = vld [vmem:[#allocation6 + $0x620] sm:$0xf0]  ;;  %v6108_v5 = vor.u32 %v8017_v50, %v6105_v51  ;;  %v7949_v50 = vld [vmem:[#allocation6 + $0x264] sm:$0xf0]  ;;  %v6015_v51 = vld [vmem:[#allocation6 + $0x3d0] sm:$0xf] }
 0x127   : > { %2660 = vmatpush.bf16.msrb.mxu0 %v6012_v61  ;;  %v7919_v61 = vld [vmem:[#allocation6 + $0x174] sm:$0xf0]  ;;  %v6300_v6 = vor.u32 %v8065_v52, %v6297_v55  ;;  %v2421_v9 = vpop.f32.mrf.mxu1  ;;  %v7997_v52 = vld [vmem:[#allocation6 + $0x3e4] sm:$0xf0] }
 0x128   : > { %2673 = vmatpush.bf16.msrb.mxu1 %v6204_v63  ;;  %v5916_v63 = vor.u32 %v7969_v46, %v5913_v47  ;;  %v5704_v11 = vor.u32 %v7919_v61, %v5703_v60  ;;  %v5631_v46 = vld [vmem:[#allocation6 + $0xd0] sm:$0xf]  ;;  %v7901_v47 = vld [vmem:[#allocation6 + $0xe4] sm:$0xf0]  ;;  %v6016_v61 = vor.u32 %v7997_v52, %v6015_v51  ;;  %v931_v9 = vperm.slane %v634_v59, 0 }
 0x129   : > { %2686 = vmatpush.bf16.msrb.mxu2 %v6396_v0  ;;  %v7967_v0 = vld [vmem:[#allocation6 + $0x2f4] sm:$0xf0]  ;;  %v7925_v51 = vld [vmem:[#allocation6 + $0x1a4] sm:$0xf0]  ;;  %v5919_v52 = vld [vmem:[#allocation6 + $0x310] sm:$0xf] }
 0x12a   : > { %2699 = vmatpush.bf16.msrb.mxu3 %v6588_v4  ;;  %v2408_v4 = vpop.f32.mrf.mxu0  ;;  %v8111_v59 = vld [vmem:[#allocation6 + $0x774] sm:$0xf0] }
 0x12b   : > { %2661 = vmatpush.bf16.msrb.mxu0 %v5988_v10  ;;  %v6492_v10 = vor.u32 %v8113_v56, %v6489_v57  ;;  %v5632_v56 = vor.u32 %v7901_v47, %v5631_v46  ;;  %v5991_v4 = vld [vmem:[#allocation6 + $0x3a0] sm:$0xf]  ;;  %v5535_v46 = vld [vmem:[#allocation6 + $0x10] sm:$0xf]  ;;  %v7877_v47 = vld [vmem:[#allocation6 + $0x24] sm:$0xf0] }
 0x12c   : > { %2674 = vmatpush.bf16.msrb.mxu1 %v6180_v12  ;;  %v5896_v12 = vor.u32 %v7967_v0, %v5895_v62  ;;  %v5607_v62 = vld [vmem:[#allocation6 + $0xa0] sm:$0xf] }
 0x12d   : > { %2687 = vmatpush.bf16.msrb.mxu2 %v6372_v13  ;;  %v6088_v13 = vor.u32 %v8015_v2, %v6087_v1  ;;  %v5799_v0 = vld [vmem:[#allocation6 + $0x220] sm:$0xf]  ;;  %v7943_v2 = vld [vmem:[#allocation6 + $0x234] sm:$0xf0] }
 0x12e   : > { %2700 = vmatpush.bf16.msrb.mxu3 %v6564_v17  ;;  %v6280_v17 = vor.u32 %v8063_v8, %v6279_v7  ;;  %v6183_v7 = vld [vmem:[#allocation6 + $0x520] sm:$0xf]  ;;  %v8039_v8 = vld [vmem:[#allocation6 + $0x534] sm:$0xf0] }
 0x12f   : > { %2662 = vmatpush.bf16.msrb.mxu0 %v5964_v27  ;;  %v2434_v27 = vpop.f32.mrf.mxu2  ;;  %v6184_v15 = vor.u32 %v8039_v8, %v6183_v7  ;;  %v5897_v7 = vld [vmem:[#allocation6 + $0x2f8] sm:$0xf0] }
 0x130   : > { %2675 = vmatpush.bf16.msrb.mxu1 %v6156_v29  ;;  %v2447_v29 = vpop.f32.mrf.mxu3 }
 0x131   : > { %2688 = vmatpush.bf16.msrb.mxu2 %v6348_v30  ;;  %v5872_v30 = vor.u32 %v7961_v21, %v5871_v16  ;;  %v7937_v16 = vld [vmem:[#allocation6 + $0x204] sm:$0xf0] }
 0x132   : > { %2701 = vmatpush.bf16.msrb.mxu3 %v6540_v37  ;;  %v7955_v37 = vld [vmem:[#allocation6 + $0x294] sm:$0xf0]  ;;  %v7985_v21 = vld [vmem:[#allocation6 + $0x384] sm:$0xf0] }
 0x133   : > { %2663 = vmatpush.bf16.msrb.mxu0 %v5940_v45  ;;  %v5848_v44 = vor.u32 %v7955_v37, %v5847_v34  ;;  %v6040_v45 = vor.u32 %v8003_v40, %v6039_v39  ;;  %v7883_v34 = vld [vmem:[#allocation6 + $0x54] sm:$0xf0]  ;;  %v6160_v39 = vor.u32 %v8033_v25, %v6159_v24 }
 0x134   : > { %2676 = vmatpush.bf16.msrb.mxu1 %v6132_v48  ;;  %v5823_v48 = vld [vmem:[#allocation6 + $0x250] sm:$0xf]  ;;  %v7931_v40 = vld [vmem:[#allocation6 + $0x1d4] sm:$0xf0] }
 0x135   : > { %2689 = vmatpush.bf16.msrb.mxu2 %v6324_v49  ;;  %v6232_v49 = vor.u32 %v8051_v42, %v6231_v41  ;;  %v5824_v60 = vor.u32 %v7949_v50, %v5823_v48  ;;  %v5943_v41 = vld [vmem:[#allocation6 + $0x340] sm:$0xf]  ;;  %v7979_v42 = vld [vmem:[#allocation6 + $0x354] sm:$0xf0]  ;;  %v5727_v50 = vld [vmem:[#allocation6 + $0x190] sm:$0xf] }
 0x136   : > { %2702 = vmatpush.bf16.msrb.mxu3 %v6516_v54  ;;  %v8045_v54 = vld [vmem:[#allocation6 + $0x564] sm:$0xf0] }
 0x137   : > { %2664 = vmatpush.bf16.msrb.mxu0 %v5916_v63  ;;  %v2458_v55 = vpop.f32.mrf.mxu0  ;;  %v7895_v63 = vld [vmem:[#allocation6 + $0xb4] sm:$0xf0]  ;;  %v6208_v1 = vor.u32 %v8045_v54, %v6207_v53  ;;  %v7973_v54 = vld [vmem:[#allocation6 + $0x324] sm:$0xf0] }
 0x138   : > { %2677 = vmatpush.bf16.msrb.mxu1 %v6108_v5  ;;  %v2459_v57 = vadd.f32 %v2458_v55, %v9365_v3  ;;  %v2471_v58 = vpop.f32.mrf.mxu1  ;;  %v7991_v5 = vld [vmem:[#allocation6 + $0x3b4] sm:$0xf0]  ;;  %v5608_v3 = vor.u32 %v7895_v63, %v5607_v62  ;;  %v6111_v55 = vld [vmem:[#allocation6 + $0x490] sm:$0xf]  ;;  %v5536_v62 = vor.u32 %v7877_v47, %v5535_v46  ;;  %v8141_v46 = vld [vmem:[#allocation6 + $0x864] sm:$0xf0] }
 0x139   : > { %2690 = vmatpush.bf16.msrb.mxu2 %v6300_v6  ;;  %v8159_v63 = vld [vmem:[#allocation6 + $0x8f4] sm:$0xf0]  ;;  %v7898_v47 = vld [vmem:[#allocation6 + $0xd4] sm:$0xf] }
 0x13a   : > { %2703 = vmatpush.bf16.msrb.mxu3 %v6492_v10  ;;  %2665 = vmatmul.bf16.vlgmr.msrb.gmra.mxu0 %v9332_v18  ;;  %v9372_v6 = vadd.f32 %v2471_v58, %v2459_v57  ;;  %v5800_v10 = vor.u32 %v7943_v2, %v5799_v0  ;;  %v6471_v58 = vld [vmem:[#allocation6 + $0x760] sm:$0xf]  ;;  %v7916_v0 = vld [vmem:[#allocation6 + $0x164] sm:$0xf]  ;;  %v5728_v2 = vor.u32 %v7925_v51, %v5727_v50  ;;  %v5825_v50 = vld [vmem:[#allocation6 + $0x268] sm:$0xf0] }
 0x13b   : > { %2709 = vmatpush.bf16.msra.mxu0 %v5704_v11  ;;  %2678 = vmatmul.bf16.vlgmr.msrb.gmra.mxu1 %v9336_v20  ;;  %v5992_v11 = vor.u32 %v7991_v5, %v5991_v4  ;;  %v5920_v4 = vor.u32 %v7973_v54, %v5919_v52  ;;  %v7964_v5 = vld [vmem:[#allocation6 + $0x2e4] sm:$0xf] }
 0x13c   : > { %2722 = vmatpush.bf16.msra.mxu1 %v5896_v12  ;;  %2691 = vmatmul.bf16.vlgmr.msrb.gmra.mxu2 %v9345_v35  ;;  %v5583_v12 = vld [vmem:[#allocation6 + $0x70] sm:$0xf] }
 0x13d   : > { %2735 = vmatpush.bf16.msra.mxu2 %v6088_v13  ;;  %2704 = vmatmul.bf16.vlgmr.msrb.gmra.mxu3 %v9347_v38  ;;  %v7889_v13 = vld [vmem:[#allocation6 + $0x84] sm:$0xf0] }
 0x13e   : > { %2748 = vmatpush.bf16.msra.mxu3 %v6280_v17  ;;  %v5967_v17 = vld [vmem:[#allocation6 + $0x370] sm:$0xf]  ;;  %v5584_v29 = vor.u32 %v7889_v13, %v5583_v12  ;;  %v8105_v12 = vld [vmem:[#allocation6 + $0x744] sm:$0xf0] }
 0x13f   : > { %2710 = vmatpush.bf16.msra.mxu0 %v5680_v28  ;;  %v2484_v23 = vpop.f32.mrf.mxu2  ;;  %v2460_v28 = vpop.f32.mrf.mxu0  ;;  %v5968_v32 = vor.u32 %v7985_v21, %v5967_v17  ;;  %v6639_v13 = vld [vmem:[#allocation6 + $0x8b0] sm:$0xf]  ;;  %v5681_v17 = vld [vmem:[#allocation6 + $0x148] sm:$0xf0]  ;;  %v7958_v21 = vld [vmem:[#allocation6 + $0x2b4] sm:$0xf] }
 0x140   : > { %2723 = vmatpush.bf16.msra.mxu1 %v5872_v30  ;;  %v2485_v26 = vadd.f32 %v2484_v23, %v931_v9  ;;  %v2497_v27 = vpop.f32.mrf.mxu3  ;;  %v2473_v30 = vpop.f32.mrf.mxu1  ;;  %v6472_v9 = vor.u32 %v8111_v59, %v6471_v58  ;;  %v5873_v23 = vld [vmem:[#allocation6 + $0x2c8] sm:$0xf0]  ;;  %v8099_v28 = vld [vmem:[#allocation6 + $0x714] sm:$0xf0] }
 0x141   : > { %2736 = vmatpush.bf16.msra.mxu2 %v6064_v31  ;;  %v5776_v31 = vor.u32 %v7937_v16, %v5775_v14  ;;  %v5900_v14 = vor.u32 %v7964_v5, %v5897_v7  ;;  %v7910_v16 = vld [vmem:[#allocation6 + $0x134] sm:$0xf]  ;;  %v5876_v30 = vor.u32 %v7958_v21, %v5873_v23 }
 0x142   : > { %2749 = vmatpush.bf16.msra.mxu3 %v6256_v36  ;;  %v5751_v36 = vld [vmem:[#allocation6 + $0x1c0] sm:$0xf]  ;;  %v9374_v37 = vadd.f32 %v2497_v27, %v2485_v26  ;;  %v5684_v26 = vor.u32 %v7910_v16, %v5681_v17  ;;  %v7934_v16 = vld [vmem:[#allocation6 + $0x1f4] sm:$0xf]  ;;  %v5777_v17 = vld [vmem:[#allocation6 + $0x208] sm:$0xf0] }
 0x143   : > { %2711 = vmatpush.bf16.msra.mxu0 %v5656_v43  ;;  %v6135_v43 = vld [vmem:[#allocation6 + $0x4c0] sm:$0xf]  ;;  %v5752_v48 = vor.u32 %v7931_v40, %v5751_v36  ;;  %v5849_v36 = vld [vmem:[#allocation6 + $0x298] sm:$0xf0] }
 0x144   : > { %2724 = vmatpush.bf16.msra.mxu1 %v5848_v44  ;;  %v8027_v44 = vld [vmem:[#allocation6 + $0x4d4] sm:$0xf0]  ;;  %v6423_v27 = vld [vmem:[#allocation6 + $0x700] sm:$0xf] }
 0x145   : > { %2737 = vmatpush.bf16.msra.mxu2 %v6040_v45  ;;  %v5560_v45 = vor.u32 %v7883_v34, %v5559_v33  ;;  %v6136_v53 = vor.u32 %v8027_v44, %v6135_v43  ;;  %v5657_v33 = vld [vmem:[#allocation6 + $0x118] sm:$0xf0]  ;;  %v7952_v34 = vld [vmem:[#allocation6 + $0x284] sm:$0xf]  ;;  %v8093_v43 = vld [vmem:[#allocation6 + $0x6e4] sm:$0xf0] }
 0x146   : > { %2750 = vmatpush.bf16.msra.mxu3 %v6232_v49  ;;  %v5944_v49 = vor.u32 %v7979_v42, %v5943_v41  ;;  %v6399_v42 = vld [vmem:[#allocation6 + $0x6d0] sm:$0xf] }
 0x147   : > { %2712 = vmatpush.bf16.msra.mxu0 %v5632_v56  ;;  %v8021_v56 = vld [vmem:[#allocation6 + $0x4a4] sm:$0xf0]  ;;  %v2486_v57 = vpop.f32.mrf.mxu2  ;;  %v6591_v44 = vld [vmem:[#allocation6 + $0x850] sm:$0xf]  ;;  %v6400_v51 = vor.u32 %v8093_v43, %v6399_v42 }
 0x148   : > { %2725 = vmatpush.bf16.msra.mxu1 %v5824_v60  ;;  %v6663_v60 = vld [vmem:[#allocation6 + $0x8e0] sm:$0xf]  ;;  %v6112_v8 = vor.u32 %v8021_v56, %v6111_v55  ;;  %v8087_v56 = vld [vmem:[#allocation6 + $0x6b4] sm:$0xf0]  ;;  %v8069_v42 = vld [vmem:[#allocation6 + $0x624] sm:$0xf0] }
 0x149   : > { %2738 = vmatpush.bf16.msra.mxu2 %v6016_v61  ;;  %v2499_v61 = vpop.f32.mrf.mxu3  ;;  %v6375_v55 = vld [vmem:[#allocation6 + $0x6a0] sm:$0xf] }
 0x14a   : > { %2751 = vmatpush.bf16.msra.mxu3 %v6208_v1  ;;  %v5705_v1 = vld [vmem:[#allocation6 + $0x178] sm:$0xf0]  ;;  %v6567_v57 = vld [vmem:[#allocation6 + $0x820] sm:$0xf]  ;;  %v8135_v61 = vld [vmem:[#allocation6 + $0x834] sm:$0xf0] }
 0x14b   : > { %2713 = vmatpush.bf16.msra.mxu0 %v5608_v3  ;;  %v6664_v3 = vor.u32 %v8159_v63, %v6663_v60  ;;  %v5609_v63 = vld [vmem:[#allocation6 + $0xb8] sm:$0xf0]  ;;  %v6568_v5 = vor.u32 %v8135_v61, %v6567_v57 }
 0x14c   : > { %2726 = vmatpush.bf16.msra.mxu1 %v5800_v10  ;;  %v5708_v10 = vor.u32 %v7916_v0, %v5705_v1  ;;  %v7940_v0 = vld [vmem:[#allocation6 + $0x224] sm:$0xf]  ;;  %v5801_v1 = vld [vmem:[#allocation6 + $0x238] sm:$0xf0] }
 0x14d   : > { %2739 = vmatpush.bf16.msra.mxu2 %v5992_v11  ;;  %v6447_v11 = vld [vmem:[#allocation6 + $0x730] sm:$0xf] }
 0x14e   : > { %2752 = vmatpush.bf16.msra.mxu3 %v6184_v15  ;;  %v8153_v15 = vld [vmem:[#allocation6 + $0x8c4] sm:$0xf0]  ;;  %v6448_v24 = vor.u32 %v8105_v12, %v6447_v11  ;;  %v7886_v12 = vld [vmem:[#allocation6 + $0x74] sm:$0xf] }
 0x14f   : > { %2714 = vmatpush.bf16.msra.mxu0 %v5584_v29  ;;  %v6640_v25 = vor.u32 %v8153_v15, %v6639_v13  ;;  %v6615_v29 = vld [vmem:[#allocation6 + $0x880] sm:$0xf]  ;;  %v8129_v11 = vld [vmem:[#allocation6 + $0x804] sm:$0xf0]  ;;  %v5585_v13 = vld [vmem:[#allocation6 + $0x88] sm:$0xf0] }
 0x150   : > { %2727 = vmatpush.bf16.msra.mxu1 %v5776_v31  ;;  %v8147_v31 = vld [vmem:[#allocation6 + $0x894] sm:$0xf0] }
 0x151   : > { %2740 = vmatpush.bf16.msra.mxu2 %v5968_v32  ;;  %v7904_v32 = vld [vmem:[#allocation6 + $0x104] sm:$0xf]  ;;  %v6616_v40 = vor.u32 %v8147_v31, %v6615_v29  ;;  %v6519_v29 = vld [vmem:[#allocation6 + $0x7c0] sm:$0xf]  ;;  %v5780_v31 = vor.u32 %v7934_v16, %v5777_v17 }
 0x152   : > { %2753 = vmatpush.bf16.msra.mxu3 %v6160_v39  ;;  %v6424_v39 = vor.u32 %v8099_v28, %v6423_v27  ;;  %v5660_v41 = vor.u32 %v7904_v32, %v5657_v33  ;;  %v6327_v27 = vld [vmem:[#allocation6 + $0x640] sm:$0xf]  ;;  %v8075_v28 = vld [vmem:[#allocation6 + $0x654] sm:$0xf0]  ;;  %v7880_v33 = vld [vmem:[#allocation6 + $0x44] sm:$0xf] }
 0x153   : > { %2715 = vmatpush.bf16.msra.mxu0 %v5560_v45  ;;  %v5852_v45 = vor.u32 %v7952_v34, %v5849_v36  ;;  %v8123_v32 = vld [vmem:[#allocation6 + $0x7d4] sm:$0xf0]  ;;  %v5561_v34 = vld [vmem:[#allocation6 + $0x58] sm:$0xf0]  ;;  %v7928_v36 = vld [vmem:[#allocation6 + $0x1c4] sm:$0xf] }
 0x154   : > { %2728 = vmatpush.bf16.msra.mxu1 %v5752_v48  ;;  %v5633_v48 = vld [vmem:[#allocation6 + $0xe8] sm:$0xf0]  ;;  %v6520_v43 = vor.u32 %v8123_v32, %v6519_v29  ;;  %v8000_v17 = vld [vmem:[#allocation6 + $0x404] sm:$0xf] }
 0x155   : > { %2741 = vmatpush.bf16.msra.mxu2 %v5944_v49  ;;  %v7946_v49 = vld [vmem:[#allocation6 + $0x254] sm:$0xf]  ;;  %v5636_v54 = vor.u32 %v7898_v47, %v5633_v48  ;;  %v8144_v29 = vld [vmem:[#allocation6 + $0x884] sm:$0xf] }
 0x156   : > { %2754 = vmatpush.bf16.msra.mxu3 %v6136_v53  ;;  %v6592_v53 = vor.u32 %v8141_v46, %v6591_v44  ;;  %v5828_v60 = vor.u32 %v7946_v49, %v5825_v50  ;;  %v5564_v44 = vor.u32 %v7880_v33, %v5561_v34  ;;  %v8117_v46 = vld [vmem:[#allocation6 + $0x7a4] sm:$0xf0]  ;;  %v7874_v47 = vld [vmem:[#allocation6 + $0x14] sm:$0xf]  ;;  %v5537_v50 = vld [vmem:[#allocation6 + $0x28] sm:$0xf0] }
 0x157   : > { %2716 = vmatpush.bf16.msra.mxu0 %v5536_v62  ;;  %v2510_v52 = vpop.f32.mrf.mxu0  ;;  %v7892_v62 = vld [vmem:[#allocation6 + $0xa4] sm:$0xf]  ;;  %v7994_v34 = vld [vmem:[#allocation6 + $0x3d4] sm:$0xf] }
 0x158   : > { %2729 = vmatpush.bf16.msra.mxu1 %v5728_v2  ;;  %v2511_v58 = vadd.f32 %v2510_v52, %v9374_v37  ;;  %v2523_v59 = vpop.f32.mrf.mxu1  ;;  %v5612_v7 = vor.u32 %v7892_v62, %v5609_v63  ;;  %v5804_v37 = vor.u32 %v7940_v0, %v5801_v1  ;;  %v5729_v52 = vld [vmem:[#allocation6 + $0x1a8] sm:$0xf0]  ;;  %v5540_v62 = vor.u32 %v7874_v47, %v5537_v50  ;;  %v8156_v63 = vld [vmem:[#allocation6 + $0x8e4] sm:$0xf]  ;;  %v6665_v0 = vld [vmem:[#allocation6 + $0x8f8] sm:$0xf0] }
 0x159   : > { %2742 = vmatpush.bf16.msra.mxu2 %v5920_v4  ;;  %v6376_v4 = vor.u32 %v8087_v56, %v6375_v55  ;;  %v6089_v55 = vld [vmem:[#allocation6 + $0x478] sm:$0xf0]  ;;  %v8060_v56 = vld [vmem:[#allocation6 + $0x5e4] sm:$0xf] }
 0x15a   : > { %2755 = vmatpush.bf16.msra.mxu3 %v6112_v8  ;;  %2717 = vmatmul.bf16.vlgmr.msra.gmra.mxu0 %v9334_v19  ;;  %v2524_v2 = vadd.f32 %v2523_v59, %v2511_v58  ;;  %v6351_v8 = vld [vmem:[#allocation6 + $0x670] sm:$0xf]  ;;  %v6281_v58 = vld [vmem:[#allocation6 + $0x5f8] sm:$0xf0]  ;;  %v8108_v59 = vld [vmem:[#allocation6 + $0x764] sm:$0xf] }
 0x15b   : > { %2761 = vmatpush.bf16.msrb.mxu0 %v6472_v9  ;;  %2730 = vmatmul.bf16.vlgmr.msra.gmra.mxu1 %v9338_v22  ;;  %v8081_v9 = vld [vmem:[#allocation6 + $0x684] sm:$0xf0]  ;;  %v8036_v50 = vld [vmem:[#allocation6 + $0x524] sm:$0xf] }
 0x15c   : > { %2774 = vmatpush.bf16.msrb.mxu1 %v6664_v3  ;;  %2743 = vmatmul.bf16.vlgmr.msra.gmra.mxu2 %v9332_v18  ;;  %v6543_v3 = vld [vmem:[#allocation6 + $0x7f0] sm:$0xf]  ;;  %v6352_v21 = vor.u32 %v8081_v9, %v6351_v8  ;;  %v6065_v8 = vld [vmem:[#allocation6 + $0x448] sm:$0xf0]  ;;  %v8054_v9 = vld [vmem:[#allocation6 + $0x5b4] sm:$0xf] }
 0x15d   : > { %2787 = vmatpush.bf16.msrb.mxu2 %v5708_v10  ;;  %2756 = vmatmul.bf16.vlgmr.msra.gmra.mxu3 %v9336_v20 }
 0x15e   : > { %2800 = vmatpush.bf16.msrb.mxu3 %v5900_v14 }
 0x15f   : > { %2762 = vmatpush.bf16.msrb.mxu0 %v6448_v24  ;;  %v2536_v10 = vpop.f32.mrf.mxu2  ;;  %v2512_v24 = vpop.f32.mrf.mxu0 }
 0x160   : > { %2775 = vmatpush.bf16.msrb.mxu1 %v6640_v25  ;;  %v2537_v14 = vadd.f32 %v2536_v10, %v2524_v2  ;;  %v2549_v15 = vpop.f32.mrf.mxu3  ;;  %v6544_v25 = vor.u32 %v8129_v11, %v6543_v3  ;;  %v6668_v3 = vor.u32 %v8156_v63, %v6665_v0  ;;  %v6257_v10 = vld [vmem:[#allocation6 + $0x5c8] sm:$0xf0]  ;;  %v8048_v24 = vld [vmem:[#allocation6 + $0x584] sm:$0xf]  ;;  %v8030_v63 = vld [vmem:[#allocation6 + $0x4f4] sm:$0xf] }
 0x161   : > { %2788 = vmatpush.bf16.msrb.mxu2 %v5684_v26  ;;  %v5588_v26 = vor.u32 %v7886_v12, %v5585_v13  ;;  %v6449_v11 = vld [vmem:[#allocation6 + $0x748] sm:$0xf0]  ;;  %v8150_v12 = vld [vmem:[#allocation6 + $0x8b4] sm:$0xf] }
 0x162   : > { %2801 = vmatpush.bf16.msrb.mxu3 %v5876_v30  ;;  %v9381_v23 = vadd.f32 %v2549_v15, %v2537_v14  ;;  %v2525_v30 = vpop.f32.mrf.mxu1  ;;  %v6641_v13 = vld [vmem:[#allocation6 + $0x8c8] sm:$0xf0]  ;;  %v6260_v15 = vor.u32 %v8054_v9, %v6257_v10 }
 0x163   : > { %2763 = vmatpush.bf16.msrb.mxu0 %v6424_v39  ;;  %v5753_v39 = vld [vmem:[#allocation6 + $0x1d8] sm:$0xf0]  ;;  %v6545_v9 = vld [vmem:[#allocation6 + $0x808] sm:$0xf0] }
 0x164   : > { %2776 = vmatpush.bf16.msrb.mxu1 %v6616_v40  ;;  %v6328_v40 = vor.u32 %v8075_v28, %v6327_v27  ;;  %v5756_v49 = vor.u32 %v7928_v36, %v5753_v39  ;;  %v8096_v27 = vld [vmem:[#allocation6 + $0x704] sm:$0xf]  ;;  %v6425_v28 = vld [vmem:[#allocation6 + $0x718] sm:$0xf0]  ;;  %v6017_v36 = vld [vmem:[#allocation6 + $0x3e8] sm:$0xf0] }
 0x165   : > { %2789 = vmatpush.bf16.msrb.mxu2 %v5660_v41  ;;  %v6303_v41 = vld [vmem:[#allocation6 + $0x610] sm:$0xf]  ;;  %v6617_v30 = vld [vmem:[#allocation6 + $0x898] sm:$0xf0]  ;;  %v6428_v33 = vor.u32 %v8096_v27, %v6425_v28  ;;  %v8042_v39 = vld [vmem:[#allocation6 + $0x554] sm:$0xf] }
 0x166   : > { %2802 = vmatpush.bf16.msrb.mxu3 %v5852_v45  ;;  %v6495_v45 = vld [vmem:[#allocation6 + $0x790] sm:$0xf]  ;;  %v6304_v57 = vor.u32 %v8069_v42, %v6303_v41  ;;  %v6209_v41 = vld [vmem:[#allocation6 + $0x568] sm:$0xf0]  ;;  %v8090_v42 = vld [vmem:[#allocation6 + $0x6d4] sm:$0xf] }
 0x167   : > { %2764 = vmatpush.bf16.msrb.mxu0 %v6400_v51  ;;  %v2538_v48 = vpop.f32.mrf.mxu2  ;;  %v7922_v51 = vld [vmem:[#allocation6 + $0x194] sm:$0xf]  ;;  %v6496_v61 = vor.u32 %v8117_v46, %v6495_v45  ;;  %v6020_v45 = vor.u32 %v7994_v34, %v6017_v36 }
 0x168   : > { %2777 = vmatpush.bf16.msrb.mxu1 %v6592_v53  ;;  %v2551_v53 = vpop.f32.mrf.mxu3  ;;  %v5732_v1 = vor.u32 %v7922_v51, %v5729_v52  ;;  %v7988_v48 = vld [vmem:[#allocation6 + $0x3a4] sm:$0xf]  ;;  %v7970_v28 = vld [vmem:[#allocation6 + $0x314] sm:$0xf] }
 0x169   : > { %2790 = vmatpush.bf16.msrb.mxu2 %v5636_v54  ;;  %v8012_v54 = vld [vmem:[#allocation6 + $0x464] sm:$0xf]  ;;  %v6185_v53 = vld [vmem:[#allocation6 + $0x538] sm:$0xf0]  ;;  %v8066_v34 = vld [vmem:[#allocation6 + $0x614] sm:$0xf] }
 0x16a   : > { %2803 = vmatpush.bf16.msrb.mxu3 %v5828_v60  ;;  %v6473_v60 = vld [vmem:[#allocation6 + $0x778] sm:$0xf0]  ;;  %v6092_v2 = vor.u32 %v8012_v54, %v6089_v55  ;;  %v8084_v54 = vld [vmem:[#allocation6 + $0x6a4] sm:$0xf] }
 0x16b   : > { %2765 = vmatpush.bf16.msrb.mxu0 %v6376_v4  ;;  %v6284_v4 = vor.u32 %v8060_v56, %v6281_v58  ;;  %v6377_v55 = vld [vmem:[#allocation6 + $0x6b8] sm:$0xf0]  ;;  %v8132_v56 = vld [vmem:[#allocation6 + $0x824] sm:$0xf] }
 0x16c   : > { %2778 = vmatpush.bf16.msrb.mxu1 %v6568_v5  ;;  %v6476_v5 = vor.u32 %v8108_v59, %v6473_v60  ;;  %v6188_v59 = vor.u32 %v8036_v50, %v6185_v53  ;;  %v6380_v60 = vor.u32 %v8084_v54, %v6377_v55  ;;  %v635_v53 = vld [vmem:[#allocation19 + $0x10] sm:$0xff] }
 0x16d   : > { %2791 = vmatpush.bf16.msrb.mxu2 %v5612_v7  ;;  %v8006_v7 = vld [vmem:[#allocation6 + $0x434] sm:$0xf] }
 0x16e   : > { %2804 = vmatpush.bf16.msrb.mxu3 %v5804_v37  ;;  %v8102_v37 = vld [vmem:[#allocation6 + $0x734] sm:$0xf]  ;;  %v6068_v14 = vor.u32 %v8006_v7, %v6065_v8 }
 0x16f   : > { %2766 = vmatpush.bf16.msrb.mxu0 %v6352_v21  ;;  %v6452_v16 = vor.u32 %v8102_v37, %v6449_v11  ;;  %v6041_v21 = vld [vmem:[#allocation6 + $0x418] sm:$0xf0]  ;;  %v8126_v8 = vld [vmem:[#allocation6 + $0x7f4] sm:$0xf] }
 0x170   : > { %2779 = vmatpush.bf16.msrb.mxu1 %v6544_v25  ;;  %v6644_v25 = vor.u32 %v8150_v12, %v6641_v13  ;;  %v7976_v12 = vld [vmem:[#allocation6 + $0x344] sm:$0xf]  ;;  %v5945_v13 = vld [vmem:[#allocation6 + $0x358] sm:$0xf0] }
 0x171   : > { %2792 = vmatpush.bf16.msrb.mxu2 %v5588_v26  ;;  %v6233_v26 = vld [vmem:[#allocation6 + $0x598] sm:$0xf0]  ;;  %v5948_v27 = vor.u32 %v7976_v12, %v5945_v13  ;;  %v7151_v12 = vld [vmem:[#allocation7 + $0x3c0] sm:$0xf]  ;;  %v8282_v13 = vld [vmem:[#allocation7 + $0x3cc] sm:$0xf0] }
 0x172   : > { %2805 = vmatpush.bf16.msrb.mxu3 %v5780_v31  ;;  %v6044_v31 = vor.u32 %v8000_v17, %v6041_v21  ;;  %v6236_v32 = vor.u32 %v8048_v24, %v6233_v26  ;;  %v6137_v17 = vld [vmem:[#allocation6 + $0x4d8] sm:$0xf0]  ;;  %v8072_v21 = vld [vmem:[#allocation6 + $0x644] sm:$0xf] }
 0x173   : > { %2767 = vmatpush.bf16.msrb.mxu0 %v6328_v40  ;;  %v6620_v40 = vor.u32 %v8144_v29, %v6617_v30  ;;  %v6329_v24 = vld [vmem:[#allocation6 + $0x658] sm:$0xf0]  ;;  %v5921_v29 = vld [vmem:[#allocation6 + $0x328] sm:$0xf0] }
 0x174   : > { %2780 = vmatpush.bf16.msrb.mxu1 %v6520_v43  ;;  %v6401_v43 = vld [vmem:[#allocation6 + $0x6e8] sm:$0xf0]  ;;  %v6521_v26 = vld [vmem:[#allocation6 + $0x7d8] sm:$0xf0] }
 0x175   : > { %2793 = vmatpush.bf16.msrb.mxu2 %v5564_v44  ;;  %v8138_v44 = vld [vmem:[#allocation6 + $0x854] sm:$0xf]  ;;  %v6404_v47 = vor.u32 %v8090_v42, %v6401_v43  ;;  %v6497_v42 = vld [vmem:[#allocation6 + $0x7a8] sm:$0xf0] }
 0x176   : > { %2806 = vmatpush.bf16.msrb.mxu3 %v5756_v49  ;;  %v5993_v49 = vld [vmem:[#allocation6 + $0x3b8] sm:$0xf0] }
 0x177   : > { %2768 = vmatpush.bf16.msrb.mxu0 %v6304_v57  ;;  %v9387_v46 = vpop.f32.mrf.mxu0  ;;  %v6569_v57 = vld [vmem:[#allocation6 + $0x838] sm:$0xf0]  ;;  %v5996_v58 = vor.u32 %v7988_v48, %v5993_v49  ;;  %v7039_v48 = vld [vmem:[#allocation7 + $0x2e0] sm:$0xf]  ;;  %v8254_v49 = vld [vmem:[#allocation7 + $0x2ec] sm:$0xf0] }
 0x178   : > { %2781 = vmatpush.bf16.msrb.mxu1 %v6496_v61  ;;  %v9389_v51 = vpop.f32.mrf.mxu1  ;;  %v7982_v61 = vld [vmem:[#allocation6 + $0x374] sm:$0xf] }
 0x179   : > { %2794 = vmatpush.bf16.msrb.mxu2 %v5540_v62  ;;  %v5969_v62 = vld [vmem:[#allocation6 + $0x388] sm:$0xf0] }
 0x17a   : > { %2807 = vmatpush.bf16.msrb.mxu3 %v5732_v1  ;;  %2769 = vmatmul.bf16.vlgmr.msrb.gmra.mxu0 %v9345_v35  ;;  %v6572_v1 = vor.u32 %v8132_v56, %v6569_v57  ;;  %v6767_v56 = vld [vmem:[#allocation7 + $0xc0] sm:$0xf]  ;;  %v8186_v57 = vld [vmem:[#allocation7 + $0xcc] sm:$0xf0] }
 0x17b   : > { %2813 = vmatpush.bf16.msra.mxu0 %v6092_v2  ;;  %2782 = vmatmul.bf16.vlgmr.msrb.gmra.mxu1 %v9347_v38  ;;  %v6161_v2 = vld [vmem:[#allocation6 + $0x508] sm:$0xf0] }
 0x17c   : > { %2826 = vmatpush.bf16.msra.mxu1 %v6284_v4  ;;  %2795 = vmatmul.bf16.vlgmr.msrb.gmra.mxu2 %v9334_v19  ;;  %v6593_v19 = vld [vmem:[#allocation6 + $0x868] sm:$0xf0]  ;;  %v8078_v4 = vld [vmem:[#allocation6 + $0x674] sm:$0xf]  ;;  %v6164_v37 = vor.u32 %v8030_v63, %v6161_v2  ;;  %v8286_v63 = vld [vmem:[#allocation7 + $0x3ec] sm:$0xf0] }
 0x17d   : > { %2839 = vmatpush.bf16.msra.mxu2 %v6476_v5  ;;  %2808 = vmatmul.bf16.vlgmr.msrb.gmra.mxu3 %v9338_v22  ;;  %v6212_v22 = vor.u32 %v8042_v39, %v6209_v41  ;;  %v6596_v52 = vor.u32 %v8138_v44, %v6593_v19  ;;  %v6353_v5 = vld [vmem:[#allocation6 + $0x688] sm:$0xf0]  ;;  %v8114_v41 = vld [vmem:[#allocation6 + $0x794] sm:$0xf]  ;;  %v6783_v44 = vld [vmem:[#allocation7 + $0xe0] sm:$0xf] }
 0x17e   : > { %2852 = vmatpush.bf16.msra.mxu3 %v6668_v3  ;;  %v5972_v3 = vor.u32 %v7982_v61, %v5969_v62  ;;  %v6356_v11 = vor.u32 %v8078_v4, %v6353_v5  ;;  %v8190_v19 = vld [vmem:[#allocation7 + $0xec] sm:$0xf0]  ;;  %v6500_v54 = vor.u32 %v8114_v41, %v6497_v42  ;;  %v7167_v62 = vld [vmem:[#allocation7 + $0x3e0] sm:$0xf]  ;;  %v6768_v5 = vor.u32 %v8186_v57, %v6767_v56 }
 0x17f   : > { %2814 = vmatpush.bf16.msra.mxu0 %v6068_v14  ;;  %v9391_v0 = vpop.f32.mrf.mxu2  ;;  %v2564_v10 = vpop.f32.mrf.mxu0  ;;  %v8024_v14 = vld [vmem:[#allocation6 + $0x4c4] sm:$0xf]  ;;  %v6784_v55 = vor.u32 %v8190_v19, %v6783_v44  ;;  %v8218_v61 = vld [vmem:[#allocation7 + $0x1cc] sm:$0xf0]  ;;  %v7023_v2 = vld [vmem:[#allocation7 + $0x2c0] sm:$0xf] }
 0x180   : > { %2827 = vmatpush.bf16.msra.mxu1 %v6260_v15  ;;  %v9393_v7 = vpop.f32.mrf.mxu3  ;;  %v2577_v15 = vpop.f32.mrf.mxu1  ;;  %v6140_v30 = vor.u32 %v8024_v14, %v6137_v17  ;;  %v8250_v4 = vld [vmem:[#allocation7 + $0x2cc] sm:$0xf0]  ;;  %v6847_v42 = vld [vmem:[#allocation7 + $0x160] sm:$0xf] }
 0x181   : > { %2840 = vmatpush.bf16.msra.mxu2 %v6452_v16  ;;  %v6548_v16 = vor.u32 %v8126_v8, %v6545_v9  ;;  %v6751_v8 = vld [vmem:[#allocation7 + $0xa0] sm:$0xf]  ;;  %v8182_v9 = vld [vmem:[#allocation7 + $0xac] sm:$0xf0] }
 0x182   : > { %2853 = vmatpush.bf16.msra.mxu3 %v6644_v25  ;;  %v8120_v25 = vld [vmem:[#allocation6 + $0x7c4] sm:$0xf]  ;;  %v8214_v15 = vld [vmem:[#allocation7 + $0x1ac] sm:$0xf0] }
 0x183   : > { %2815 = vmatpush.bf16.msra.mxu0 %v6044_v31  ;;  %v6332_v31 = vor.u32 %v8072_v21, %v6329_v24  ;;  %v6524_v39 = vor.u32 %v8120_v25, %v6521_v26  ;;  %v8246_v17 = vld [vmem:[#allocation7 + $0x2ac] sm:$0xf0]  ;;  %v6752_v21 = vor.u32 %v8182_v9, %v6751_v8  ;;  %v6735_v24 = vld [vmem:[#allocation7 + $0x80] sm:$0xf]  ;;  %v7152_v26 = vor.u32 %v8282_v13, %v7151_v12 }
 0x184   : > { %2828 = vmatpush.bf16.msra.mxu1 %v6236_v32  ;;  %v8018_v32 = vld [vmem:[#allocation6 + $0x494] sm:$0xf]  ;;  %v8178_v25 = vld [vmem:[#allocation7 + $0x8c] sm:$0xf0]  ;;  %v6943_v12 = vld [vmem:[#allocation7 + $0x220] sm:$0xf] }
 0x185   : > { %2841 = vmatpush.bf16.msra.mxu2 %v6428_v33  ;;  %v6113_v33 = vld [vmem:[#allocation6 + $0x4a8] sm:$0xf0]  ;;  %v8274_v44 = vld [vmem:[#allocation7 + $0x38c] sm:$0xf0] }
 0x186   : > { %2854 = vmatpush.bf16.msra.mxu3 %v6620_v40  ;;  %v6305_v40 = vld [vmem:[#allocation6 + $0x628] sm:$0xf0]  ;;  %v6116_v50 = vor.u32 %v8018_v32, %v6113_v33  ;;  %v6719_v33 = vld [vmem:[#allocation7 + $0x60] sm:$0xf]  ;;  %v8206_v19 = vld [vmem:[#allocation7 + $0x16c] sm:$0xf0] }
 0x187   : > { %2816 = vmatpush.bf16.msra.mxu0 %v6020_v45  ;;  %v2590_v36 = vpop.f32.mrf.mxu2  ;;  %v6911_v45 = vld [vmem:[#allocation7 + $0x1e0] sm:$0xf]  ;;  %v8270_v56 = vld [vmem:[#allocation7 + $0x36c] sm:$0xf0] }
 0x188   : > { %2829 = vmatpush.bf16.msra.mxu1 %v6212_v22  ;;  %v2603_v43 = vpop.f32.mrf.mxu3  ;;  %v5924_v22 = vor.u32 %v7970_v28, %v5921_v29  ;;  %v7135_v28 = vld [vmem:[#allocation7 + $0x3a0] sm:$0xf]  ;;  %v8230_v13 = vld [vmem:[#allocation7 + $0x22c] sm:$0xf0] }
 0x189   : > { %2842 = vmatpush.bf16.msra.mxu2 %v6404_v47  ;;  %v8222_v47 = vld [vmem:[#allocation7 + $0x1ec] sm:$0xf0]  ;;  %v7119_v43 = vld [vmem:[#allocation7 + $0x380] sm:$0xf] }
 0x18a   : > { %2855 = vmatpush.bf16.msra.mxu3 %v6596_v52  ;;  %v6308_v52 = vor.u32 %v8066_v34, %v6305_v40  ;;  %v8174_v34 = vld [vmem:[#allocation7 + $0x6c] sm:$0xf0] }
 0x18b   : > { %2817 = vmatpush.bf16.msra.mxu0 %v5996_v58  ;;  %v6895_v58 = vld [vmem:[#allocation7 + $0x1c0] sm:$0xf] }
 0x18c   : > { %2830 = vmatpush.bf16.msra.mxu1 %v6188_v59  ;;  %v6912_v59 = vor.u32 %v8222_v47, %v6911_v45  ;;  %v6896_v10 = vor.u32 %v8218_v61, %v6895_v58  ;;  %v6975_v45 = vld [vmem:[#allocation7 + $0x260] sm:$0xf]  ;;  %v6720_v47 = vor.u32 %v8174_v34, %v6719_v33  ;;  %v8202_v58 = vld [vmem:[#allocation7 + $0x14c] sm:$0xf0] }
 0x18d   : > { %2843 = vmatpush.bf16.msra.mxu2 %v6380_v60  ;;  %v7040_v60 = vor.u32 %v8254_v49, %v7039_v48  ;;  %v6703_v48 = vld [vmem:[#allocation7 + $0x40] sm:$0xf]  ;;  %v8170_v49 = vld [vmem:[#allocation7 + $0x4c] sm:$0xf0] }
 0x18e   : > { %2856 = vmatpush.bf16.msra.mxu3 %v6572_v1  ;;  %v932_v1 = vperm.slane %v635_v53, 0  ;;  %v8318_v33 = vld [vmem:[#allocation7 + $0x4ec] sm:$0xf0] }
 0x18f   : > { %2818 = vmatpush.bf16.msra.mxu0 %v5972_v3  ;;  %v7168_v3 = vor.u32 %v8286_v63, %v7167_v62  ;;  %v6704_v63 = vor.u32 %v8170_v49, %v6703_v48  ;;  %v6769_v48 = vld [vmem:[#allocation7 + $0xd0] sm:$0xf0]  ;;  %v8220_v49 = vld [vmem:[#allocation7 + $0x1e4] sm:$0xf] }
 0x190   : > { %2831 = vmatpush.bf16.msra.mxu1 %v6164_v37  ;;  %v7024_v37 = vor.u32 %v8250_v4, %v7023_v2  ;;  %v2563_v14 = vadd.f32 %v9387_v46, %v932_v1  ;;  %v8278_v46 = vld [vmem:[#allocation7 + $0x3ac] sm:$0xf0]  ;;  %v6687_v1 = vld [vmem:[#allocation7 + $0x20] sm:$0xf] }
 0x191   : > { %2844 = vmatpush.bf16.msra.mxu2 %v6356_v11  ;;  %v6879_v11 = vld [vmem:[#allocation7 + $0x1a0] sm:$0xf]  ;;  %v7136_v36 = vor.u32 %v8278_v46, %v7135_v28  ;;  %v8166_v2 = vld [vmem:[#allocation7 + $0x2c] sm:$0xf0] }
 0x192   : > { %2857 = vmatpush.bf16.msra.mxu3 %v6548_v16  ;;  %v7007_v16 = vld [vmem:[#allocation7 + $0x2a0] sm:$0xf]  ;;  %v2576_v29 = vadd.f32 %v9389_v51, %v2563_v14  ;;  %v8226_v46 = vld [vmem:[#allocation7 + $0x20c] sm:$0xf0] }
 0x193   : > { %2819 = vmatpush.bf16.msra.mxu0 %v5948_v27  ;;  %v7008_v27 = vor.u32 %v8246_v17, %v7007_v16  ;;  %v6671_v14 = vld [vmem:[#allocation7] sm:$0xf]  ;;  %v8162_v16 = vld [vmem:[#allocation7 + $0xc] sm:$0xf0] }
 0x194   : > { %2832 = vmatpush.bf16.msra.mxu1 %v6140_v30  ;;  %v8210_v30 = vld [vmem:[#allocation7 + $0x18c] sm:$0xf0]  ;;  %v2589_v51 = vadd.f32 %v9391_v0, %v2576_v29  ;;  %v6959_v0 = vld [vmem:[#allocation7 + $0x240] sm:$0xf]  ;;  %v8188_v29 = vld [vmem:[#allocation7 + $0xe4] sm:$0xf]  ;;  %v6672_v34 = vor.u32 %v8162_v16, %v6671_v14 }
 0x195   : > { %2845 = vmatpush.bf16.msra.mxu2 %v6332_v31  ;;  %v6991_v31 = vld [vmem:[#allocation7 + $0x280] sm:$0xf] }
 0x196   : > { %2858 = vmatpush.bf16.msra.mxu3 %v6524_v39  ;;  %v2602_v57 = vadd.f32 %v9393_v7, %v2589_v51  ;;  %v6815_v7 = vld [vmem:[#allocation7 + $0x120] sm:$0xf] }
 0x197   : > { %2820 = vmatpush.bf16.msra.mxu0 %v5924_v22  ;;  %v2614_v32 = vpop.f32.mrf.mxu0  ;;  %v8238_v22 = vld [vmem:[#allocation7 + $0x26c] sm:$0xf0]  ;;  %v6799_v17 = vld [vmem:[#allocation7 + $0x100] sm:$0xf] }
 0x198   : > { %2833 = vmatpush.bf16.msra.mxu1 %v6116_v50  ;;  %v9401_v39 = vpop.f32.mrf.mxu1  ;;  %v7120_v50 = vor.u32 %v8274_v44, %v7119_v43  ;;  %v6976_v53 = vor.u32 %v8238_v22, %v6975_v45  ;;  %v8184_v43 = vld [vmem:[#allocation7 + $0xc4] sm:$0xf]  ;;  %v7055_v45 = vld [vmem:[#allocation7 + $0x300] sm:$0xf]  ;;  %v8258_v22 = vld [vmem:[#allocation7 + $0x30c] sm:$0xf0] }
 0x199   : > { %2846 = vmatpush.bf16.msra.mxu2 %v6308_v52  ;;  %v6848_v52 = vor.u32 %v8206_v19, %v6847_v42 }
 0x19a   : > { %2859 = vmatpush.bf16.msra.mxu3 %v6500_v54  ;;  %2821 = vmatmul.bf16.vlgmr.msra.gmra.mxu0 %v9332_v18  ;;  %v6880_v18 = vor.u32 %v8214_v15, %v6879_v11  ;;  %v6831_v54 = vld [vmem:[#allocation7 + $0x140] sm:$0xf]  ;;  %v8198_v11 = vld [vmem:[#allocation7 + $0x12c] sm:$0xf0]  ;;  %v6688_v15 = vor.u32 %v8166_v2, %v6687_v1 }
 0x19b   : > { %4033 = vmatpush.bf16.msrb.mxu0 %v6784_v55  ;;  %2834 = vmatmul.bf16.vlgmr.msra.gmra.mxu1 %v9336_v20  ;;  %v6863_v20 = vld [vmem:[#allocation7 + $0x180] sm:$0xf]  ;;  %v6832_v8 = vor.u32 %v8202_v58, %v6831_v54  ;;  %v7056_v54 = vor.u32 %v8258_v22, %v7055_v45  ;;  %v6833_v45 = vld [vmem:[#allocation7 + $0x150] sm:$0xf0] }
 0x19c   : > { %4046 = vmatpush.bf16.msrb.mxu1 %v6912_v59  ;;  %2847 = vmatmul.bf16.vlgmr.msra.gmra.mxu2 %v9345_v35  ;;  %v8242_v35 = vld [vmem:[#allocation7 + $0x28c] sm:$0xf0]  ;;  %v6864_v40 = vor.u32 %v8210_v30, %v6863_v20  ;;  %v7103_v55 = vld [vmem:[#allocation7 + $0x360] sm:$0xf]  ;;  %v6785_v30 = vld [vmem:[#allocation7 + $0xf0] sm:$0xf0] }
 0x19d   : > { %4059 = vmatpush.bf16.msrb.mxu2 %v7040_v60  ;;  %2860 = vmatmul.bf16.vlgmr.msra.gmra.mxu3 %v9347_v38  ;;  %v6736_v38 = vor.u32 %v8178_v25, %v6735_v24  ;;  %v6992_v41 = vor.u32 %v8242_v35, %v6991_v31  ;;  %v8234_v59 = vld [vmem:[#allocation7 + $0x24c] sm:$0xf0]  ;;  %v7104_v4 = vor.u32 %v8270_v56, %v7103_v55  ;;  %v636_v35 = vld [vmem:[#allocation19 + $0x18] sm:$0xff] }
 0x19e   : > { %4072 = vmatpush.bf16.msrb.mxu3 %v7168_v3  ;;  %v6960_v9 = vor.u32 %v8234_v59, %v6959_v0  ;;  %v7087_v3 = vld [vmem:[#allocation7 + $0x340] sm:$0xf]  ;;  %v6816_v25 = vor.u32 %v8198_v11, %v6815_v7  ;;  %v8262_v20 = vld [vmem:[#allocation7 + $0x32c] sm:$0xf0]  ;;  %v6788_v51 = vor.u32 %v8188_v29, %v6785_v30  ;;  %v933_v19 = vperm.slane %v636_v35, 0 }
 0x19f   : > { %4034 = vmatpush.bf16.msrb.mxu0 %v6768_v5  ;;  %v9405_v60 = vpop.f32.mrf.mxu2  ;;  %v2616_v62 = vpop.f32.mrf.mxu0  ;;  %v6772_v56 = vor.u32 %v8184_v43, %v6769_v48  ;;  %v6753_v59 = vld [vmem:[#allocation7 + $0xb0] sm:$0xf0]  ;;  %v7263_v2 = vld [vmem:[#allocation7 + $0x4a0] sm:$0xf]  ;;  %v8204_v35 = vld [vmem:[#allocation7 + $0x164] sm:$0xf] }
 0x1a0   : > { %4047 = vmatpush.bf16.msrb.mxu1 %v6896_v10  ;;  %v9407_v61 = vpop.f32.mrf.mxu3  ;;  %v2629_v5 = vpop.f32.mrf.mxu1  ;;  %v8266_v10 = vld [vmem:[#allocation7 + $0x34c] sm:$0xf0]  ;;  %v2641_v0 = vadd.f32 %v9405_v60, %v933_v19  ;;  %v8216_v62 = vld [vmem:[#allocation7 + $0x1c4] sm:$0xf]  ;;  %v6737_v7 = vld [vmem:[#allocation7 + $0x90] sm:$0xf0] }
 0x1a1   : > { %4060 = vmatpush.bf16.msrb.mxu2 %v7024_v37  ;;  %v2615_v37 = vadd.f32 %v2614_v32, %v2602_v57  ;;  %v7088_v24 = vor.u32 %v8266_v10, %v7087_v3  ;;  %v8180_v57 = vld [vmem:[#allocation7 + $0xa4] sm:$0xf]  ;;  %v6881_v10 = vld [vmem:[#allocation7 + $0x1b0] sm:$0xf0]  ;;  %v7247_v11 = vld [vmem:[#allocation7 + $0x480] sm:$0xf] }
 0x1a2   : > { %4073 = vmatpush.bf16.msrb.mxu3 %v7152_v26  ;;  %v6944_v26 = vor.u32 %v8230_v13, %v6943_v12  ;;  %v6756_v5 = vor.u32 %v8180_v57, %v6753_v59  ;;  %v2654_v60 = vadd.f32 %v9407_v61, %v2641_v0  ;;  %v8212_v3 = vld [vmem:[#allocation7 + $0x1a4] sm:$0xf]  ;;  %v8306_v12 = vld [vmem:[#allocation7 + $0x48c] sm:$0xf0] }
 0x1a3   : > { %4035 = vmatpush.bf16.msrb.mxu0 %v6752_v21  ;;  %v8194_v21 = vld [vmem:[#allocation7 + $0x10c] sm:$0xf0]  ;;  %v2628_v28 = vadd.f32 %v9401_v39, %v2615_v37  ;;  %v6884_v16 = vor.u32 %v8212_v3, %v6881_v10  ;;  %v7248_v61 = vor.u32 %v8306_v12, %v7247_v11  ;;  %v8200_v19 = vld [vmem:[#allocation7 + $0x144] sm:$0xf]  ;;  %v7041_v3 = vld [vmem:[#allocation7 + $0x2f0] sm:$0xf0] }
 0x1a4   : > { %4048 = vmatpush.bf16.msrb.mxu1 %v6880_v18  ;;  %v6927_v18 = vld [vmem:[#allocation7 + $0x200] sm:$0xf]  ;;  %v6800_v42 = vor.u32 %v8194_v21, %v6799_v17  ;;  %v6836_v57 = vor.u32 %v8200_v19, %v6833_v45  ;;  %v8350_v0 = vld [vmem:[#allocation7 + $0x5ec] sm:$0xf0]  ;;  %v8316_v59 = vld [vmem:[#allocation7 + $0x4e4] sm:$0xf] }
 0x1a5   : > { %4061 = vmatpush.bf16.msrb.mxu2 %v7008_v27  ;;  %v7071_v27 = vld [vmem:[#allocation7 + $0x320] sm:$0xf]  ;;  %v6928_v39 = vor.u32 %v8226_v46, %v6927_v18  ;;  %v2867_v44 = vmax.f32 %v2628_v28, 0.0  ;;  %v8168_v46 = vld [vmem:[#allocation7 + $0x44] sm:$0xf] }
 0x1a6   : > { %4074 = vmatpush.bf16.msrb.mxu3 %v7136_v36  ;;  %v7072_v36 = vor.u32 %v8262_v20, %v7071_v27  ;;  %v7231_v18 = vld [vmem:[#allocation7 + $0x460] sm:$0xf]  ;;  %v8302_v27 = vld [vmem:[#allocation7 + $0x46c] sm:$0xf0]  ;;  %v7249_v19 = vld [vmem:[#allocation7 + $0x490] sm:$0xf0] }
 0x1a7   : > { %4036 = vmatpush.bf16.msrb.mxu0 %v6736_v38  ;;  %v2642_v31 = vpop.f32.mrf.mxu2  ;;  %v7295_v38 = vld [vmem:[#allocation7 + $0x4e0] sm:$0xf]  ;;  %v9416_v55 = vpack.c.bf16 %v2867_v44, %v2867_v44  ;;  %v8346_v12 = vld [vmem:[#allocation7 + $0x5cc] sm:$0xf0] }
 0x1a8   : > { %4049 = vmatpush.bf16.msrb.mxu1 %v6864_v40  ;;  %v2655_v32 = vpop.f32.mrf.mxu3  ;;  %v2865_v40 = vmax.f32 %v9372_v6, 0.0  ;;  %v8314_v6 = vld [vmem:[#allocation7 + $0x4cc] sm:$0xf0]  ;;  %v6705_v31 = vld [vmem:[#allocation7 + $0x50] sm:$0xf0] }
 0x1a9   : > { %4062 = vmatpush.bf16.msrb.mxu2 %v6992_v41  ;;  %v2866_v41 = vmax.f32 %v9381_v23, 0.0  ;;  %v6849_v32 = vld [vmem:[#allocation7 + $0x170] sm:$0xf0]  ;;  %v7407_v11 = vld [vmem:[#allocation7 + $0x5c0] sm:$0xf] }
 0x1aa   : > { %4075 = vmatpush.bf16.msrb.mxu3 %v7120_v50  ;;  %v6913_v50 = vld [vmem:[#allocation7 + $0x1f0] sm:$0xf0]  ;;  %v6852_v43 = vor.u32 %v8204_v35, %v6849_v32 }
 0x1ab   : > { %4037 = vmatpush.bf16.msrb.mxu0 %v6720_v47  ;;  %v7296_v47 = vor.u32 %v8318_v33, %v7295_v38  ;;  %v9414_v23 = vpack.c.bf16 %v2866_v41, %v2866_v41  ;;  %v6916_v58 = vor.u32 %v8220_v49, %v6913_v50  ;;  %v7232_v38 = vor.u32 %v8302_v27, %v7231_v18  ;;  %v7199_v49 = vld [vmem:[#allocation7 + $0x420] sm:$0xf]  ;;  %v8294_v50 = vld [vmem:[#allocation7 + $0x42c] sm:$0xf0]  ;;  %v8248_v18 = vld [vmem:[#allocation7 + $0x2c4] sm:$0xf] }
 0x1ac   : > { %4050 = vmatpush.bf16.msrb.mxu1 %v6848_v52  ;;  %v7279_v52 = vld [vmem:[#allocation7 + $0x4c0] sm:$0xf]  ;;  %v7025_v27 = vld [vmem:[#allocation7 + $0x2d0] sm:$0xf0] }
 0x1ad   : > { %4063 = vmatpush.bf16.msrb.mxu2 %v6976_v53  ;;  %v9412_v53 = vpack.c.bf16 %v2865_v40, %v2865_v40  ;;  %v7280_v1 = vor.u32 %v8314_v6, %v7279_v52  ;;  %v8298_v40 = vld [vmem:[#allocation7 + $0x44c] sm:$0xf0]  ;;  %v8160_v52 = vld [vmem:[#allocation7 + $0x4] sm:$0xf]  ;;  %v7265_v32 = vld [vmem:[#allocation7 + $0x4b0] sm:$0xf0] }
 0x1ae   : > { %4076 = vmatpush.bf16.msrb.mxu3 %v7104_v4  ;;  %v8310_v4 = vld [vmem:[#allocation7 + $0x4ac] sm:$0xf0] }
 0x1af   : > { %4038 = vmatpush.bf16.msrb.mxu0 %v6704_v63  ;;  %v6897_v63 = vld [vmem:[#allocation7 + $0x1d0] sm:$0xf0]  ;;  %v7264_v37 = vor.u32 %v8310_v4, %v7263_v2  ;;  %v7200_v2 = vor.u32 %v8294_v50, %v7199_v49  ;;  %v7359_v50 = vld [vmem:[#allocation7 + $0x560] sm:$0xf] }
 0x1b0   : > { %4051 = vmatpush.bf16.msrb.mxu1 %v6832_v8  ;;  %v8176_v8 = vld [vmem:[#allocation7 + $0x84] sm:$0xf]  ;;  %v6993_v49 = vld [vmem:[#allocation7 + $0x290] sm:$0xf0] }
 0x1b1   : > { %4064 = vmatpush.bf16.msrb.mxu2 %v6960_v9  ;;  %v6900_v9 = vor.u32 %v8216_v62, %v6897_v63  ;;  %v6740_v13 = vor.u32 %v8176_v8, %v6737_v7  ;;  %v8196_v62 = vld [vmem:[#allocation7 + $0x124] sm:$0xf]  ;;  %v6817_v63 = vld [vmem:[#allocation7 + $0x130] sm:$0xf0] }
 0x1b2   : > { %4077 = vmatpush.bf16.msrb.mxu3 %v7088_v24  ;;  %v6721_v24 = vld [vmem:[#allocation7 + $0x70] sm:$0xf0]  ;;  %v8252_v7 = vld [vmem:[#allocation7 + $0x2e4] sm:$0xf] }
 0x1b3   : > { %4039 = vmatpush.bf16.msrb.mxu0 %v6688_v15  ;;  %v8172_v15 = vld [vmem:[#allocation7 + $0x64] sm:$0xf] }
 0x1b4   : > { %4052 = vmatpush.bf16.msrb.mxu1 %v6816_v25  ;;  %v8208_v25 = vld [vmem:[#allocation7 + $0x184] sm:$0xf]  ;;  %v6724_v28 = vor.u32 %v8172_v15, %v6721_v24  ;;  %v7281_v24 = vld [vmem:[#allocation7 + $0x4d0] sm:$0xf0] }
 0x1b5   : > { %4065 = vmatpush.bf16.msrb.mxu2 %v6944_v26  ;;  %v6865_v26 = vld [vmem:[#allocation7 + $0x190] sm:$0xf0]  ;;  %v8192_v15 = vld [vmem:[#allocation7 + $0x104] sm:$0xf] }
 0x1b6   : > { %4078 = vmatpush.bf16.msrb.mxu3 %v7072_v36  ;;  %v6868_v29 = vor.u32 %v8208_v25, %v6865_v26  ;;  %v7215_v36 = vld [vmem:[#allocation7 + $0x440] sm:$0xf]  ;;  %v7044_v25 = vor.u32 %v8252_v7, %v7041_v3  ;;  %v8348_v26 = vld [vmem:[#allocation7 + $0x5e4] sm:$0xf] }
 0x1b7   : > { %4040 = vmatpush.bf16.msrb.mxu0 %v6672_v34  ;;  %v2666_v14 = vpop.f32.mrf.mxu0  ;;  %v7216_v22 = vor.u32 %v8298_v40, %v7215_v36  ;;  %v8244_v36 = vld [vmem:[#allocation7 + $0x2a4] sm:$0xf]  ;;  %v7009_v40 = vld [vmem:[#allocation7 + $0x2b0] sm:$0xf0] }
 0x1b8   : > { %4053 = vmatpush.bf16.msrb.mxu1 %v6800_v42  ;;  %v2667_v17 = vadd.f32 %v2666_v14, %v2654_v60  ;;  %v2679_v21 = vpop.f32.mrf.mxu1  ;;  %v6708_v42 = vor.u32 %v8168_v46, %v6705_v31  ;;  %v8290_v60 = vld [vmem:[#allocation7 + $0x40c] sm:$0xf0]  ;;  %v8312_v14 = vld [vmem:[#allocation7 + $0x4c4] sm:$0xf]  ;;  %v7012_v45 = vor.u32 %v8244_v36, %v7009_v40 }
 0x1b9   : > { %4066 = vmatpush.bf16.msrb.mxu2 %v6928_v39  ;;  %v8164_v39 = vld [vmem:[#allocation7 + $0x24] sm:$0xf]  ;;  %v8342_v46 = vld [vmem:[#allocation7 + $0x5ac] sm:$0xf0] }
 0x1ba   : > { %4041 = vmatmul.bf16.vlgmr.msrb.gmra.mxu0 %v9412_v53  ;;  %4079 = vmatpush.bf16.msrb.mxu3 %v7056_v54  ;;  %v2680_v20 = vadd.f32 %v2679_v21, %v2667_v17  ;;  %v7408_v21 = vor.u32 %v8346_v12, %v7407_v11  ;;  %v8296_v7 = vld [vmem:[#allocation7 + $0x444] sm:$0xf]  ;;  %v8322_v36 = vld [vmem:[#allocation7 + $0x50c] sm:$0xf0] }
 0x1bb   : > { %4085 = vmatpush.bf16.msra.mxu0 %v7296_v47  ;;  %4054 = vmatmul.bf16.vlgmr.msrb.gmra.mxu1 %v9414_v23  ;;  %v8332_v12 = vld [vmem:[#allocation7 + $0x564] sm:$0xf] }
 0x1bc   : > { %4067 = vmatmul.bf16.vlgmr.msrb.gmra.mxu2 %v9416_v55 }
 0x1bd   : > { %4111 = vmatpush.bf16.msra.mxu2 %v6788_v51  ;;  %v6689_v51 = vld [vmem:[#allocation7 + $0x30] sm:$0xf0] }
 0x1be   : > { %4124 = vmatpush.bf16.msra.mxu3 %v6916_v58  ;;  %v6692_v54 = vor.u32 %v8164_v39, %v6689_v51  ;;  %v7423_v58 = vld [vmem:[#allocation7 + $0x5e0] sm:$0xf] }
 0x1bf   : > { %4086 = vmatpush.bf16.msra.mxu0 %v7280_v1  ;;  %v2692_v30 = vpop.f32.mrf.mxu2  ;;  %v2668_v44 = vpop.f32.mrf.mxu0  ;;  %v7424_v4 = vor.u32 %v8350_v0, %v7423_v58 }
 0x1c0   : > { %v2693_v33 = vadd.f32 %v2692_v30, %v2680_v20  ;;  %v2705_v34 = vpop.f32.mrf.mxu3  ;;  %v2681_v47 = vpop.f32.mrf.mxu1  ;;  %v8308_v30 = vld [vmem:[#allocation7 + $0x4a4] sm:$0xf] }
 0x1c1   : > { %4112 = vmatpush.bf16.msra.mxu2 %v6772_v56  ;;  %v6673_v56 = vld [vmem:[#allocation7 + $0x10] sm:$0xf0]  ;;  %4098 = vmatpush.bf16.msra.mxu1 %v7424_v4  ;;  %v7268_v39 = vor.u32 %v8308_v30, %v7265_v32  ;;  %v8236_v4 = vld [vmem:[#allocation7 + $0x264] sm:$0xf] }
 0x1c2   : > { %4125 = vmatpush.bf16.msra.mxu3 %v6900_v9  ;;  %v2706_v41 = vadd.f32 %v2705_v34, %v2693_v33  ;;  %v7183_v9 = vld [vmem:[#allocation7 + $0x400] sm:$0xf]  ;;  %v6676_v10 = vor.u32 %v8160_v52, %v6673_v56  ;;  %v8344_v33 = vld [vmem:[#allocation7 + $0x5c4] sm:$0xf]  ;;  %v7409_v34 = vld [vmem:[#allocation7 + $0x5d0] sm:$0xf0] }
 0x1c3   : > { %4087 = vmatpush.bf16.msra.mxu0 %v7264_v37  ;;  %v6820_v37 = vor.u32 %v8196_v62, %v6817_v63  ;;  %v7184_v17 = vor.u32 %v8290_v60, %v7183_v9  ;;  %v7412_v44 = vor.u32 %v8344_v33, %v7409_v34  ;;  %v7393_v47 = vld [vmem:[#allocation7 + $0x5b0] sm:$0xf0]  ;;  %v8334_v52 = vld [vmem:[#allocation7 + $0x56c] sm:$0xf0]  ;;  %v8300_v56 = vld [vmem:[#allocation7 + $0x464] sm:$0xf] }
 0x1c4   : > { %v2868_v48 = vmax.f32 %v2706_v41, 0.0  ;;  %v7375_v41 = vld [vmem:[#allocation7 + $0x580] sm:$0xf]  ;;  %v7360_v0 = vor.u32 %v8334_v52, %v7359_v50  ;;  %v8330_v9 = vld [vmem:[#allocation7 + $0x54c] sm:$0xf0] }
 0x1c5   : > { %4113 = vmatpush.bf16.msra.mxu2 %v6756_v5  ;;  %v7297_v5 = vld [vmem:[#allocation7 + $0x4f0] sm:$0xf0]  ;;  %4099 = vmatpush.bf16.msra.mxu1 %v7408_v21  ;;  %v7327_v21 = vld [vmem:[#allocation7 + $0x520] sm:$0xf]  ;;  %v8328_v30 = vld [vmem:[#allocation7 + $0x544] sm:$0xf] }
 0x1c6   : > { %4126 = vmatpush.bf16.msra.mxu3 %v6884_v16  ;;  %v9423_v6 = vpack.c.bf16 %v2868_v48, %v2868_v48  ;;  %v6801_v16 = vld [vmem:[#allocation7 + $0x110] sm:$0xf0]  ;;  %v8240_v48 = vld [vmem:[#allocation7 + $0x284] sm:$0xf]  ;;  %v7311_v34 = vld [vmem:[#allocation7 + $0x500] sm:$0xf] }
 0x1c7   : > { %4088 = vmatpush.bf16.msra.mxu0 %v7248_v61  ;;  %v2694_v1 = vpop.f32.mrf.mxu2  ;;  %v7425_v61 = vld [vmem:[#allocation7 + $0x5f0] sm:$0xf0]  ;;  %v6804_v20 = vor.u32 %v8192_v15, %v6801_v16  ;;  %v6996_v63 = vor.u32 %v8240_v48, %v6993_v49  ;;  %v637_v16 = vld [vmem:[#allocation19 + $0x20] sm:$0xff]  ;;  %v8255_v48 = vld [vmem:[#allocation7 + $0x2f4] sm:$0xf0] }
 0x1c8   : > { %4080 = vmatmul.bf16.vlgmr.msrb.gmra.mxu3 %v9423_v6  ;;  %v2707_v8 = vpop.f32.mrf.mxu3  ;;  %v7428_v31 = vor.u32 %v8348_v26, %v7425_v61  ;;  %v8336_v1 = vld [vmem:[#allocation7 + $0x584] sm:$0xf]  ;;  %v6961_v15 = vld [vmem:[#allocation7 + $0x250] sm:$0xf0] }
 0x1c9   : > { %4114 = vmatpush.bf16.msra.mxu2 %v6740_v13  ;;  %v7300_v13 = vor.u32 %v8316_v59, %v7297_v5  ;;  %v7233_v59 = vld [vmem:[#allocation7 + $0x470] sm:$0xf0]  ;;  %v7343_v8 = vld [vmem:[#allocation7 + $0x540] sm:$0xf]  ;;  %v8292_v26 = vld [vmem:[#allocation7 + $0x424] sm:$0xf] }
 0x1ca   : > { %4127 = vmatpush.bf16.msra.mxu3 %v6868_v29  ;;  %v7284_v29 = vor.u32 %v8312_v14, %v7281_v24  ;;  %v6977_v5 = vld [vmem:[#allocation7 + $0x270] sm:$0xf0]  ;;  %v7236_v60 = vor.u32 %v8300_v56, %v7233_v59  ;;  %v8232_v14 = vld [vmem:[#allocation7 + $0x244] sm:$0xf]  ;;  %v8326_v24 = vld [vmem:[#allocation7 + $0x52c] sm:$0xf0] }
 0x1cb   : > { %4089 = vmatpush.bf16.msra.mxu0 %v7232_v38  ;;  %v7028_v38 = vor.u32 %v8248_v18, %v7025_v27  ;;  %v6980_v11 = vor.u32 %v8236_v4, %v6977_v5  ;;  %v8228_v32 = vld [vmem:[#allocation7 + $0x224] sm:$0xf]  ;;  %v6929_v50 = vld [vmem:[#allocation7 + $0x210] sm:$0xf0] }
 0x1cc   : > { %v8288_v33 = vld [vmem:[#allocation7 + $0x404] sm:$0xf] }
 0x1cd   : > { %4115 = vmatpush.bf16.msra.mxu2 %v6724_v28  ;;  %v7391_v28 = vld [vmem:[#allocation7 + $0x5a0] sm:$0xf]  ;;  %v8224_v49 = vld [vmem:[#allocation7 + $0x204] sm:$0xf] }
 0x1ce   : > { %4128 = vmatpush.bf16.msra.mxu3 %v6852_v43  ;;  %v7392_v35 = vor.u32 %v8342_v46, %v7391_v28  ;;  %v8304_v43 = vld [vmem:[#allocation7 + $0x484] sm:$0xf]  ;;  %v7201_v28 = vld [vmem:[#allocation7 + $0x430] sm:$0xf0]  ;;  %v6932_v4 = vor.u32 %v8224_v49, %v6929_v50  ;;  %v8235_v50 = vld [vmem:[#allocation7 + $0x254] sm:$0xf0] }
 0x1cf   : > { %4090 = vmatpush.bf16.msra.mxu0 %v7216_v22  ;;  %v8340_v22 = vld [vmem:[#allocation7 + $0x5a4] sm:$0xf]  ;;  %v7204_v40 = vor.u32 %v8292_v26, %v7201_v28  ;;  %v7121_v26 = vld [vmem:[#allocation7 + $0x390] sm:$0xf0] }
 0x1d0   : > { %4100 = vmatpush.bf16.msra.mxu1 %v7392_v35  ;;  %v7396_v58 = vor.u32 %v8340_v22, %v7393_v47  ;;  %v934_v35 = vperm.slane %v637_v16, 0  ;;  %v7329_v22 = vld [vmem:[#allocation7 + $0x530] sm:$0xf0]  ;;  %v8280_v59 = vld [vmem:[#allocation7 + $0x3c4] sm:$0xf] }
 0x1d1   : > { %4116 = vmatpush.bf16.msra.mxu2 %v6708_v42  ;;  %v8338_v42 = vld [vmem:[#allocation7 + $0x58c] sm:$0xf0]  ;;  %v8320_v5 = vld [vmem:[#allocation7 + $0x504] sm:$0xf]  ;;  %v8247_v16 = vld [vmem:[#allocation7 + $0x2b4] sm:$0xf0] }
 0x1d2   : > { %4129 = vmatpush.bf16.msra.mxu3 %v6836_v57  ;;  %v7376_v51 = vor.u32 %v8338_v42, %v7375_v41  ;;  %v7185_v41 = vld [vmem:[#allocation7 + $0x410] sm:$0xf0] }
 0x1d3   : > { %4091 = vmatpush.bf16.msra.mxu0 %v7200_v2  ;;  %v7377_v2 = vld [vmem:[#allocation7 + $0x590] sm:$0xf0]  ;;  %v7188_v56 = vor.u32 %v8288_v33, %v7185_v41  ;;  %v8239_v33 = vld [vmem:[#allocation7 + $0x274] sm:$0xf0]  ;;  %v7127_v41 = vld [vmem:[#allocation7 + $0x388] sm:$0xf] }
 0x1d4   : > { %4101 = vmatpush.bf16.msra.mxu1 %v7376_v51  ;;  %v7380_v3 = vor.u32 %v8336_v1, %v7377_v2  ;;  %v7047_v51 = vld [vmem:[#allocation7 + $0x2e8] sm:$0xf] }
 0x1d5   : > { %4117 = vmatpush.bf16.msra.mxu2 %v6692_v54  ;;  %v7252_v54 = vor.u32 %v8304_v43, %v7249_v19  ;;  %v8284_v43 = vld [vmem:[#allocation7 + $0x3e4] sm:$0xf]  ;;  %v7048_v1 = vor.u32 %v8255_v48, %v7047_v51  ;;  %v7031_v2 = vld [vmem:[#allocation7 + $0x2c8] sm:$0xf] }
 0x1d6   : > { %4130 = vmatpush.bf16.msra.mxu3 %v6820_v37  ;;  %v7217_v37 = vld [vmem:[#allocation7 + $0x450] sm:$0xf0]  ;;  %v8264_v51 = vld [vmem:[#allocation7 + $0x344] sm:$0xf] }
 0x1d7   : > { %4092 = vmatpush.bf16.msra.mxu0 %v7184_v17  ;;  %v9427_v57 = vpop.f32.mrf.mxu0 }
 0x1d8   : > { %v9430_v62 = vpop.f32.mrf.mxu1  ;;  %4102 = vmatpush.bf16.msra.mxu1 %v7360_v0  ;;  %v2719_v52 = vadd.f32 %v9427_v57, %v934_v35  ;;  %v8268_v35 = vld [vmem:[#allocation7 + $0x364] sm:$0xf] }
 0x1d9   : > { %4118 = vmatpush.bf16.msra.mxu2 %v6676_v10  ;;  %v7344_v10 = vor.u32 %v8330_v9, %v7343_v8  ;;  %v7313_v8 = vld [vmem:[#allocation7 + $0x510] sm:$0xf0] }
 0x1da   : > { %4131 = vmatpush.bf16.msra.mxu3 %v6804_v20  ;;  %v7328_v20 = vor.u32 %v8326_v24, %v7327_v21  ;;  %v2732_v57 = vadd.f32 %v9430_v62, %v2719_v52  ;;  %v7159_v21 = vld [vmem:[#allocation7 + $0x3c8] sm:$0xf]  ;;  %v8283_v24 = vld [vmem:[#allocation7 + $0x3d4] sm:$0xf0]  ;;  %v8272_v62 = vld [vmem:[#allocation7 + $0x384] sm:$0xf] }
 0x1db   : > { %4137 = vmatpush.bf16.msrb.mxu0 %v7044_v25  ;;  %v7220_v25 = vor.u32 %v8296_v7, %v7217_v37  ;;  %v7175_v7 = vld [vmem:[#allocation7 + $0x3e8] sm:$0xf]  ;;  %v8276_v37 = vld [vmem:[#allocation7 + $0x3a4] sm:$0xf]  ;;  %v7124_v28 = vor.u32 %v8272_v62, %v7121_v26  ;;  %v8227_v26 = vld [vmem:[#allocation7 + $0x214] sm:$0xf0] }
 0x1dc   : > { %4119 = vmatmul.bf16.vlgmr.msra.gmra.mxu2 %v9412_v53  ;;  %4103 = vmatpush.bf16.msra.mxu1 %v7344_v10  ;;  %v7316_v10 = vor.u32 %v8320_v5, %v7313_v8  ;;  %v7111_v52 = vld [vmem:[#allocation7 + $0x368] sm:$0xf] }
 0x1dd   : > { %4163 = vmatpush.bf16.msrb.mxu2 %v7300_v13  ;;  %4132 = vmatmul.bf16.vlgmr.msra.gmra.mxu3 %v9414_v23  ;;  %v7361_v13 = vld [vmem:[#allocation7 + $0x570] sm:$0xf0]  ;;  %v6951_v5 = vld [vmem:[#allocation7 + $0x228] sm:$0xf] }
 0x1de   : > { %4176 = vmatpush.bf16.msrb.mxu3 %v7428_v31  ;;  %v7364_v27 = vor.u32 %v8332_v12, %v7361_v13  ;;  %v7345_v31 = vld [vmem:[#allocation7 + $0x550] sm:$0xf0]  ;;  %v7015_v13 = vld [vmem:[#allocation7 + $0x2a8] sm:$0xf] }
 0x1df   : > { %4138 = vmatpush.bf16.msrb.mxu0 %v7028_v38  ;;  %v9432_v17 = vpop.f32.mrf.mxu2  ;;  %v2720_v61 = vpop.f32.mrf.mxu0  ;;  %v6945_v38 = vld [vmem:[#allocation7 + $0x230] sm:$0xf0]  ;;  %v7348_v42 = vor.u32 %v8328_v30, %v7345_v31  ;;  %v8279_v30 = vld [vmem:[#allocation7 + $0x3b4] sm:$0xf0] }
 0x1e0   : > { %v9434_v18 = vpop.f32.mrf.mxu3  ;;  %v2733_v46 = vpop.f32.mrf.mxu1  ;;  %4104 = vmatpush.bf16.msra.mxu1 %v7328_v20  ;;  %v6948_v19 = vor.u32 %v8228_v32, %v6945_v38  ;;  %v7016_v61 = vor.u32 %v8247_v16, %v7015_v13  ;;  %v7160_v20 = vor.u32 %v8283_v24, %v7159_v21  ;;  %v7105_v32 = vld [vmem:[#allocation7 + $0x370] sm:$0xf0]  ;;  %v6983_v38 = vld [vmem:[#allocation7 + $0x268] sm:$0xf]  ;;  %v8256_v13 = vld [vmem:[#allocation7 + $0x304] sm:$0xf] }
 0x1e1   : > { %4164 = vmatpush.bf16.msrb.mxu2 %v7284_v29  ;;  %v6964_v29 = vor.u32 %v8232_v14, %v6961_v15  ;;  %v8243_v46 = vld [vmem:[#allocation7 + $0x294] sm:$0xf0]  ;;  %v6759_v16 = vld [vmem:[#allocation7 + $0xa8] sm:$0xf] }
 0x1e2   : > { %4177 = vmatpush.bf16.msrb.mxu3 %v7412_v44  ;;  %v7169_v44 = vld [vmem:[#allocation7 + $0x3f0] sm:$0xf0]  ;;  %v8183_v21 = vld [vmem:[#allocation7 + $0xb4] sm:$0xf0]  ;;  %v6935_v24 = vld [vmem:[#allocation7 + $0x208] sm:$0xf] }
 0x1e3   : > { %4139 = vmatpush.bf16.msrb.mxu0 %v7012_v45  ;;  %v8324_v45 = vld [vmem:[#allocation7 + $0x524] sm:$0xf]  ;;  %v7172_v47 = vor.u32 %v8284_v43, %v7169_v44  ;;  %v6984_v44 = vor.u32 %v8239_v33, %v6983_v38  ;;  %v7063_v33 = vld [vmem:[#allocation7 + $0x308] sm:$0xf] }
 0x1e4   : > { %v7332_v0 = vor.u32 %v8324_v45, %v7329_v22  ;;  %v6791_v45 = vld [vmem:[#allocation7 + $0xe8] sm:$0xf]  ;;  %v8191_v22 = vld [vmem:[#allocation7 + $0xf4] sm:$0xf0] }
 0x1e5   : > { %4165 = vmatpush.bf16.msrb.mxu2 %v7268_v39  ;;  %v7312_v39 = vor.u32 %v8322_v36, %v7311_v34  ;;  %v7108_v36 = vor.u32 %v8268_v35, %v7105_v32  ;;  %v8179_v35 = vld [vmem:[#allocation7 + $0x94] sm:$0xf0] }
 0x1e6   : > { %4178 = vmatpush.bf16.msrb.mxu3 %v7396_v58 }
 0x1e7   : > { %4140 = vmatpush.bf16.msrb.mxu0 %v6996_v63  ;;  %4105 = vmatpush.bf16.msra.mxu1 %v7312_v39  ;;  %v7153_v63 = vld [vmem:[#allocation7 + $0x3d0] sm:$0xf0] }
 0x1e8   : > { %v2759_v58 = vpop.f32.mrf.mxu3  ;;  %v7156_v9 = vor.u32 %v8280_v59, %v7153_v63  ;;  %v8260_v59 = vld [vmem:[#allocation7 + $0x324] sm:$0xf] }
 0x1e9   : > { %4166 = vmatpush.bf16.msrb.mxu2 %v7252_v54  ;;  %v2746_v54 = vpop.f32.mrf.mxu2  ;;  %v6792_v58 = vor.u32 %v8191_v22, %v6791_v45 }
 0x1ea   : > { %4179 = vmatpush.bf16.msrb.mxu3 %v7380_v3  ;;  %v8287_v3 = vld [vmem:[#allocation7 + $0x3f4] sm:$0xf0] }
 0x1eb   : > { %4141 = vmatpush.bf16.msrb.mxu0 %v6980_v11  ;;  %4150 = vmatpush.bf16.msrb.mxu1 %v7172_v47  ;;  %v7137_v11 = vld [vmem:[#allocation7 + $0x3b0] sm:$0xf0]  ;;  %v7176_v14 = vor.u32 %v8287_v3, %v7175_v7  ;;  %v6967_v47 = vld [vmem:[#allocation7 + $0x248] sm:$0xf]  ;;  %v8271_v54 = vld [vmem:[#allocation7 + $0x374] sm:$0xf0] }
 0x1ec   : > { %v7140_v15 = vor.u32 %v8276_v37, %v7137_v11  ;;  %v7112_v8 = vor.u32 %v8271_v54, %v7111_v52  ;;  %v8231_v7 = vld [vmem:[#allocation7 + $0x234] sm:$0xf0]  ;;  %v6745_v52 = vld [vmem:[#allocation7 + $0x98] sm:$0xf0] }
 0x1ed   : > { %4167 = vmatpush.bf16.msrb.mxu2 %v7236_v60  ;;  %v8251_v60 = vld [vmem:[#allocation7 + $0x2d4] sm:$0xf0] }
 0x1ee   : > { %4180 = vmatpush.bf16.msrb.mxu3 %v7364_v27  ;;  %v7032_v12 = vor.u32 %v8251_v60, %v7031_v2  ;;  %v6999_v27 = vld [vmem:[#allocation7 + $0x288] sm:$0xf] }
 0x1ef   : > { %4142 = vmatpush.bf16.msrb.mxu0 %v6964_v29  ;;  %4151 = vmatpush.bf16.msrb.mxu1 %v7156_v9  ;;  %v7143_v29 = vld [vmem:[#allocation7 + $0x3a8] sm:$0xf]  ;;  %v7073_v9 = vld [vmem:[#allocation7 + $0x330] sm:$0xf0] }
 0x1f0   : > { %v7144_v34 = vor.u32 %v8279_v30, %v7143_v29  ;;  %v7076_v37 = vor.u32 %v8260_v59, %v7073_v9  ;;  %v6936_v29 = vor.u32 %v8227_v26, %v6935_v24  ;;  %v8315_v24 = vld [vmem:[#allocation7 + $0x4d4] sm:$0xf0]  ;;  %v8165_v26 = vld [vmem:[#allocation7 + $0x2c] sm:$0xf] }
 0x1f1   : > { %4168 = vmatpush.bf16.msrb.mxu2 %v7220_v25  ;;  %v2745_v25 = vadd.f32 %v9432_v17, %v2732_v57  ;;  %v7000_v17 = vor.u32 %v8243_v46, %v6999_v27  ;;  %v7095_v57 = vld [vmem:[#allocation7 + $0x348] sm:$0xf]  ;;  %v8263_v27 = vld [vmem:[#allocation7 + $0x334] sm:$0xf0]  ;;  %v6760_v46 = vor.u32 %v8183_v21, %v6759_v16 }
 0x1f2   : > { %4181 = vmatpush.bf16.msrb.mxu3 %v7348_v42  ;;  %v8275_v42 = vld [vmem:[#allocation7 + $0x394] sm:$0xf0] }
 0x1f3   : > { %4143 = vmatpush.bf16.msrb.mxu0 %v6948_v19  ;;  %4152 = vmatpush.bf16.msrb.mxu1 %v7140_v15  ;;  %v2758_v31 = vadd.f32 %v9434_v18, %v2745_v25  ;;  %v7089_v19 = vld [vmem:[#allocation7 + $0x350] sm:$0xf0]  ;;  %v7128_v48 = vor.u32 %v8275_v42, %v7127_v41  ;;  %v6952_v15 = vor.u32 %v8231_v7, %v6951_v5  ;;  %v638_v42 = vld [vmem:[#allocation19 + $0x28] sm:$0xff] }
 0x1f4   : > { %v7092_v49 = vor.u32 %v8264_v51, %v7089_v19  ;;  %v8181_v19 = vld [vmem:[#allocation7 + $0xac] sm:$0xf]  ;;  %v935_v45 = vperm.slane %v638_v42, 0  ;;  %v7305_v42 = vld [vmem:[#allocation7 + $0x4f8] sm:$0xf0] }
 0x1f5   : > { %4169 = vmatpush.bf16.msrb.mxu2 %v7204_v40 }
 0x1f6   : > { %4182 = vmatpush.bf16.msrb.mxu3 %v7332_v0  ;;  %v6775_v0 = vld [vmem:[#allocation7 + $0xc8] sm:$0xf] }
 0x1f7   : > { %4144 = vmatpush.bf16.msrb.mxu0 %v6932_v4  ;;  %4153 = vmatpush.bf16.msrb.mxu1 %v7124_v28  ;;  %v2770_v40 = vpop.f32.mrf.mxu0  ;;  %v8187_v4 = vld [vmem:[#allocation7 + $0xd4] sm:$0xf0]  ;;  %v6793_v28 = vld [vmem:[#allocation7 + $0xf8] sm:$0xf0] }
 0x1f8   : > { %v2771_v39 = vadd.f32 %v2770_v40, %v2758_v31  ;;  %v2783_v43 = vpop.f32.mrf.mxu1  ;;  %v6743_v31 = vld [vmem:[#allocation7 + $0x88] sm:$0xf]  ;;  %v6777_v40 = vld [vmem:[#allocation7 + $0xd8] sm:$0xf0] }
 0x1f9   : > { %4170 = vmatpush.bf16.msrb.mxu2 %v7188_v56  ;;  %v6744_v41 = vor.u32 %v8179_v35, %v6743_v31 }
 0x1fa   : > { %4183 = vmatpush.bf16.msrb.mxu3 %v7316_v10  ;;  %v2784_v18 = vadd.f32 %v2783_v43, %v2771_v39  ;;  %v8267_v10 = vld [vmem:[#allocation7 + $0x354] sm:$0xf0]  ;;  %v6727_v39 = vld [vmem:[#allocation7 + $0x68] sm:$0xf] }
 0x1fb   : > { %4154 = vmatpush.bf16.msrb.mxu1 %v7108_v36  ;;  %v7096_v25 = vor.u32 %v8267_v10, %v7095_v57  ;;  %v8185_v36 = vld [vmem:[#allocation7 + $0xcc] sm:$0xf]  ;;  %v8175_v43 = vld [vmem:[#allocation7 + $0x74] sm:$0xf0] }
 0x1fc   : > { %v2869_v56 = vmax.f32 %v2784_v18, 0.0  ;;  %v6780_v51 = vor.u32 %v8185_v36, %v6777_v40  ;;  %v6761_v18 = vld [vmem:[#allocation7 + $0xb8] sm:$0xf0]  ;;  %v6728_v22 = vor.u32 %v8175_v43, %v6727_v39  ;;  %v8163_v57 = vld [vmem:[#allocation7 + $0x14] sm:$0xf0] }
 0x1fd   : > { %4215 = vmatpush.bf16.msra.mxu2 %v7048_v1  ;;  %v6968_v1 = vor.u32 %v8235_v50, %v6967_v47  ;;  %v6711_v47 = vld [vmem:[#allocation7 + $0x48] sm:$0xf]  ;;  %v8177_v50 = vld [vmem:[#allocation7 + $0x8c] sm:$0xf]  ;;  %v6681_v36 = vld [vmem:[#allocation7 + $0x18] sm:$0xf0] }
 0x1fe   : > { %4228 = vmatpush.bf16.msra.mxu3 %v7176_v14  ;;  %v9440_v63 = vpack.c.bf16 %v2869_v56, %v2869_v56  ;;  %v7057_v14 = vld [vmem:[#allocation7 + $0x310] sm:$0xf0]  ;;  %v6748_v59 = vor.u32 %v8177_v50, %v6745_v52  ;;  %v7255_v52 = vld [vmem:[#allocation7 + $0x488] sm:$0xf] }
 0x1ff   : > { %4155 = vmatpush.bf16.msrb.mxu1 %v7092_v49  ;;  %v9442_v2 = vpop.f32.mrf.mxu2  ;;  %v2772_v3 = vpop.f32.mrf.mxu0  ;;  %v7060_v62 = vor.u32 %v8256_v13, %v7057_v14  ;;  %v6764_v49 = vor.u32 %v8181_v19, %v6761_v18  ;;  %v6713_v13 = vld [vmem:[#allocation7 + $0x58] sm:$0xf0] }
 0x200   : > { %v9444_v60 = vpop.f32.mrf.mxu3  ;;  %4093 = vmatmul.bf16.vlgmr.msra.gmra.mxu0 %v9440_v63  ;;  %4171 = vmatmul.bf16.vlgmr.msrb.gmra.mxu2 %v9440_v63  ;;  %v2785_v11 = vpop.f32.mrf.mxu1  ;;  %v2797_v54 = vadd.f32 %v9442_v2, %v935_v45  ;;  %v6679_v3 = vld [vmem:[#allocation7 + $0x8] sm:$0xf]  ;;  %v8219_v45 = vld [vmem:[#allocation7 + $0x1d4] sm:$0xf0] }
 0x201   : > { %4216 = vmatpush.bf16.msra.mxu2 %v7032_v12  ;;  %4189 = vmatpush.bf16.msra.mxu0 %v6792_v58  ;;  %v6776_v12 = vor.u32 %v8187_v4, %v6775_v0  ;;  %v6695_v58 = vld [vmem:[#allocation7 + $0x28] sm:$0xf]  ;;  %v8167_v0 = vld [vmem:[#allocation7 + $0x34] sm:$0xf0]  ;;  %v6729_v4 = vld [vmem:[#allocation7 + $0x78] sm:$0xf0]  ;;  %v6680_v14 = vor.u32 %v8163_v57, %v6679_v3 }
 0x202   : > { %4229 = vmatpush.bf16.msra.mxu3 %v7160_v20  ;;  %v8189_v20 = vld [vmem:[#allocation7 + $0xec] sm:$0xf]  ;;  %v2810_v5 = vadd.f32 %v9444_v60, %v2797_v54  ;;  %v6696_v7 = vor.u32 %v8167_v0, %v6695_v58  ;;  %v7303_v2 = vld [vmem:[#allocation7 + $0x4e8] sm:$0xf]  ;;  %v8319_v11 = vld [vmem:[#allocation7 + $0x4f4] sm:$0xf0] }
 0x203   : > { %4156 = vmatpush.bf16.msrb.mxu1 %v7076_v37  ;;  %v7287_v60 = vld [vmem:[#allocation7 + $0x4c8] sm:$0xf]  ;;  %v8307_v54 = vld [vmem:[#allocation7 + $0x494] sm:$0xf0]  ;;  %v7289_v58 = vld [vmem:[#allocation7 + $0x4d8] sm:$0xf0] }
 0x204   : > { %v7239_v3 = vld [vmem:[#allocation7 + $0x468] sm:$0xf]  ;;  %v8303_v57 = vld [vmem:[#allocation7 + $0x474] sm:$0xf0] }
 0x205   : > { %4217 = vmatpush.bf16.msra.mxu2 %v7016_v61  ;;  %v7079_v61 = vld [vmem:[#allocation7 + $0x328] sm:$0xf]  ;;  %4190 = vmatpush.bf16.msra.mxu0 %v6776_v12  ;;  %v8169_v12 = vld [vmem:[#allocation7 + $0x4c] sm:$0xf] }
 0x206   : > { %4230 = vmatpush.bf16.msra.mxu3 %v7144_v34  ;;  %v7080_v32 = vor.u32 %v8263_v27, %v7079_v61  ;;  %v8259_v34 = vld [vmem:[#allocation7 + $0x314] sm:$0xf0]  ;;  %v6716_v21 = vor.u32 %v8169_v12, %v6713_v13  ;;  %v6697_v61 = vld [vmem:[#allocation7 + $0x38] sm:$0xf0]  ;;  %v6871_v12 = vld [vmem:[#allocation7 + $0x188] sm:$0xf]  ;;  %v7240_v13 = vor.u32 %v8303_v57, %v7239_v3 }
 0x207   : > { %4157 = vmatpush.bf16.msrb.mxu1 %v7060_v62  ;;  %v2798_v30 = vpop.f32.mrf.mxu2  ;;  %v6700_v35 = vor.u32 %v8165_v26, %v6697_v61  ;;  %v7033_v3 = vld [vmem:[#allocation7 + $0x2d8] sm:$0xf0]  ;;  %v8293_v57 = vld [vmem:[#allocation7 + $0x42c] sm:$0xf] }
 0x208   : > { %v2811_v38 = vpop.f32.mrf.mxu3  ;;  %v8223_v30 = vld [vmem:[#allocation7 + $0x1f4] sm:$0xf0] }
 0x209   : > { %4218 = vmatpush.bf16.msra.mxu2 %v7000_v17  ;;  %v6796_v17 = vor.u32 %v8189_v20, %v6793_v28  ;;  %4191 = vmatpush.bf16.msra.mxu0 %v6760_v46  ;;  %v7288_v46 = vor.u32 %v8315_v24, %v7287_v60  ;;  %v7271_v38 = vld [vmem:[#allocation7 + $0x4a8] sm:$0xf]  ;;  %v8299_v24 = vld [vmem:[#allocation7 + $0x454] sm:$0xf0] }
 0x20a   : > { %4231 = vmatpush.bf16.msra.mxu3 %v7128_v48  ;;  %v8171_v48 = vld [vmem:[#allocation7 + $0x54] sm:$0xf0]  ;;  %v7223_v60 = vld [vmem:[#allocation7 + $0x448] sm:$0xf] }
 0x20b   : > { %v6712_v56 = vor.u32 %v8171_v48, %v6711_v47  ;;  %v6905_v47 = vld [vmem:[#allocation7 + $0x1d8] sm:$0xf0] }
 0x20d   : > { %4219 = vmatpush.bf16.msra.mxu2 %v6984_v44  ;;  %v7064_v44 = vor.u32 %v8259_v34, %v7063_v33  ;;  %4192 = vmatpush.bf16.msra.mxu0 %v6744_v41  ;;  %v8311_v33 = vld [vmem:[#allocation7 + $0x4b4] sm:$0xf0]  ;;  %v8161_v34 = vld [vmem:[#allocation7 + $0xc] sm:$0xf] }
 0x20e   : > { %4232 = vmatpush.bf16.msra.mxu3 %v7112_v8  ;;  %v8317_v41 = vld [vmem:[#allocation7 + $0x4ec] sm:$0xf]  ;;  %v7272_v19 = vor.u32 %v8311_v33, %v7271_v38  ;;  %v6684_v18 = vor.u32 %v8161_v34, %v6681_v36  ;;  %v7241_v38 = vld [vmem:[#allocation7 + $0x478] sm:$0xf0] }
 0x20f   : > { %v7308_v50 = vor.u32 %v8317_v41, %v7305_v42 }
 0x210   : > { %4145 = vmatmul.bf16.vlgmr.msrb.gmra.mxu0 %v9416_v55 }
 0x211   : > { %4220 = vmatpush.bf16.msra.mxu2 %v6968_v1  ;;  %4193 = vmatpush.bf16.msra.mxu0 %v6728_v22  ;;  %v8173_v1 = vld [vmem:[#allocation7 + $0x6c] sm:$0xf] }
 0x212   : > { %4233 = vmatpush.bf16.msra.mxu3 %v7096_v25  ;;  %v6732_v37 = vor.u32 %v8173_v1, %v6729_v4  ;;  %v8217_v22 = vld [vmem:[#allocation7 + $0x1cc] sm:$0xf]  ;;  %v6887_v1 = vld [vmem:[#allocation7 + $0x1a8] sm:$0xf]  ;;  %v7256_v4 = vor.u32 %v8307_v54, %v7255_v52  ;;  %v7225_v52 = vld [vmem:[#allocation7 + $0x458] sm:$0xf0] }
 0x215   : > { %4221 = vmatpush.bf16.msra.mxu2 %v6952_v15  ;;  %4194 = vmatpush.bf16.msra.mxu0 %v6712_v56  ;;  %v7304_v15 = vor.u32 %v8319_v11, %v7303_v2  ;;  %v8313_v56 = vld [vmem:[#allocation7 + $0x4cc] sm:$0xf] }
 0x216   : > { %4234 = vmatpush.bf16.msra.mxu3 %v7080_v32  ;;  %v8221_v32 = vld [vmem:[#allocation7 + $0x1ec] sm:$0xf] }
 0x217   : > { %v2822_v8 = vpop.f32.mrf.mxu0 }
 0x218   : > { %v2835_v9 = vpop.f32.mrf.mxu1  ;;  %v2823_v10 = vadd.f32 %v2822_v8, %v2810_v5  ;;  %v8215_v5 = vld [vmem:[#allocation7 + $0x1b4] sm:$0xf0]  ;;  %v8213_v8 = vld [vmem:[#allocation7 + $0x1ac] sm:$0xf] }
 0x219   : > { %4222 = vmatpush.bf16.msra.mxu2 %v6936_v29  ;;  %4195 = vmatpush.bf16.msra.mxu0 %v6696_v7  ;;  %v6919_v29 = vld [vmem:[#allocation7 + $0x1e8] sm:$0xf]  ;;  %v7292_v7 = vor.u32 %v8313_v56, %v7289_v58  ;;  %v6888_v2 = vor.u32 %v8215_v5, %v6887_v1  ;;  %v8197_v1 = vld [vmem:[#allocation7 + $0x12c] sm:$0xf] }
 0x21a   : > { %4235 = vmatpush.bf16.msra.mxu3 %v7064_v44  ;;  %v2836_v16 = vadd.f32 %v2835_v9, %v2823_v10  ;;  %v6920_v39 = vor.u32 %v8223_v30, %v6919_v29  ;;  %v6903_v44 = vld [vmem:[#allocation7 + $0x1c8] sm:$0xf]  ;;  %v6889_v9 = vld [vmem:[#allocation7 + $0x1b8] sm:$0xf0]  ;;  %v8309_v10 = vld [vmem:[#allocation7 + $0x4ac] sm:$0xf] }
 0x21b   : > { %v6904_v0 = vor.u32 %v8219_v45, %v6903_v44  ;;  %v6892_v11 = vor.u32 %v8213_v8, %v6889_v9  ;;  %v8205_v29 = vld [vmem:[#allocation7 + $0x16c] sm:$0xf]  ;;  %v6857_v30 = vld [vmem:[#allocation7 + $0x178] sm:$0xf0]  ;;  %v7191_v45 = vld [vmem:[#allocation7 + $0x408] sm:$0xf] }
 0x21c   : > { %4223 = vmatmul.bf16.vlgmr.msra.gmra.mxu2 %v9416_v55  ;;  %v6860_v36 = vor.u32 %v8205_v29, %v6857_v30  ;;  %v8201_v44 = vld [vmem:[#allocation7 + $0x14c] sm:$0xf]  ;;  %v6823_v58 = vld [vmem:[#allocation7 + $0x128] sm:$0xf] }
 0x21d   : > { %4267 = vmatpush.bf16.msrb.mxu2 %v6796_v17  ;;  %4196 = vmatpush.bf16.msra.mxu0 %v6680_v14  ;;  %v6921_v17 = vld [vmem:[#allocation7 + $0x1f8] sm:$0xf0]  ;;  %v8211_v14 = vld [vmem:[#allocation7 + $0x194] sm:$0xf0]  ;;  %v8249_v9 = vld [vmem:[#allocation7 + $0x2cc] sm:$0xf] }
 0x21e   : > { %v6924_v43 = vor.u32 %v8221_v32, %v6921_v17  ;;  %v6872_v26 = vor.u32 %v8211_v14, %v6871_v12  ;;  %v8295_v32 = vld [vmem:[#allocation7 + $0x434] sm:$0xf0]  ;;  %v8301_v17 = vld [vmem:[#allocation7 + $0x46c] sm:$0xf] }
 0x21f   : > { %v2848_v25 = vpop.f32.mrf.mxu2  ;;  %v2824_v20 = vpop.f32.mrf.mxu0  ;;  %v8195_v14 = vld [vmem:[#allocation7 + $0x114] sm:$0xf0] }
 0x220   : > { %v2861_v62 = vpop.f32.mrf.mxu3  ;;  %v2849_v27 = vadd.f32 %v2848_v25, %v2836_v16  ;;  %v2837_v28 = vpop.f32.mrf.mxu1  ;;  %4197 = vmatmul.bf16.vlgmr.msra.gmra.mxu0 %v9412_v53  ;;  %v6873_v16 = vld [vmem:[#allocation7 + $0x198] sm:$0xf0]  ;;  %v8305_v25 = vld [vmem:[#allocation7 + $0x48c] sm:$0xf] }
 0x221   : > { %4268 = vmatpush.bf16.msrb.mxu2 %v6780_v51  ;;  %4241 = vmatpush.bf16.msrb.mxu0 %v7304_v15  ;;  %v8209_v15 = vld [vmem:[#allocation7 + $0x18c] sm:$0xf]  ;;  %v6855_v28 = vld [vmem:[#allocation7 + $0x168] sm:$0xf] }
 0x222   : > { %v2862_v31 = vadd.f32 %v2861_v62, %v2849_v27  ;;  %v7257_v62 = vld [vmem:[#allocation7 + $0x498] sm:$0xf0]  ;;  %v6876_v61 = vor.u32 %v8209_v15, %v6873_v16  ;;  %v8616_v27 = vld [vmem:[#allocation19] sm:$0xff]  ;;  %v8193_v15 = vld [vmem:[#allocation7 + $0x10c] sm:$0xf] }
 0x223   : > { %v3069_v20 = vperm.slane %v8616_v27, 1  ;;  %v8245_v27 = vld [vmem:[#allocation7 + $0x2ac] sm:$0xf] }
 0x224   : > { %v2870_v40 = vmax.f32 %v2862_v31, 0.0  ;;  %v7260_v31 = vor.u32 %v8305_v25, %v7257_v62  ;;  %v7036_v25 = vor.u32 %v8249_v9, %v7033_v3  ;;  %v8333_v9 = vld [vmem:[#allocation7 + $0x56c] sm:$0xf] }
 0x225   : > { %4269 = vmatpush.bf16.msrb.mxu2 %v6764_v49  ;;  %4242 = vmatpush.bf16.msrb.mxu0 %v7288_v46  ;;  %v8207_v46 = vld [vmem:[#allocation7 + $0x174] sm:$0xf0] }
 0x226   : > { %v9453_v51 = vpack.c.bf16 %v2870_v40, %v2870_v40  ;;  %v6856_v34 = vor.u32 %v8207_v46, %v6855_v28  ;;  %v6839_v40 = vld [vmem:[#allocation7 + $0x148] sm:$0xf]  ;;  %v8289_v28 = vld [vmem:[#allocation7 + $0x40c] sm:$0xf] }
 0x227   : > { %v2850_v48 = vpop.f32.mrf.mxu2 }
 0x228   : > { %v2863_v49 = vpop.f32.mrf.mxu3  ;;  %4106 = vmatmul.bf16.vlgmr.msra.gmra.mxu1 %v9453_v51  ;;  %4184 = vmatmul.bf16.vlgmr.msrb.gmra.mxu3 %v9453_v51 }
 0x229   : > { %4270 = vmatpush.bf16.msrb.mxu2 %v6748_v59  ;;  %4202 = vmatpush.bf16.msra.mxu1 %v6920_v39  ;;  %v6908_v59 = vor.u32 %v8217_v22, %v6905_v47  ;;  %v8291_v22 = vld [vmem:[#allocation7 + $0x414] sm:$0xf0]  ;;  %v8253_v47 = vld [vmem:[#allocation7 + $0x2ec] sm:$0xf]  ;;  %v7049_v49 = vld [vmem:[#allocation7 + $0x2f8] sm:$0xf0] }
 0x22a   : > { %4280 = vmatpush.bf16.msrb.mxu3 %v6924_v43  ;;  %4243 = vmatpush.bf16.msrb.mxu0 %v7272_v19  ;;  %v8203_v43 = vld [vmem:[#allocation7 + $0x154] sm:$0xf0]  ;;  %v6841_v19 = vld [vmem:[#allocation7 + $0x158] sm:$0xf0]  ;;  %v7052_v5 = vor.u32 %v8253_v47, %v7049_v49 }
 0x22b   : > { %v6840_v54 = vor.u32 %v8203_v43, %v6839_v40  ;;  %v6844_v56 = vor.u32 %v8201_v44, %v6841_v19  ;;  %v8241_v40 = vld [vmem:[#allocation7 + $0x28c] sm:$0xf]  ;;  %v7399_v43 = vld [vmem:[#allocation7 + $0x5a8] sm:$0xf]  ;;  %v8343_v19 = vld [vmem:[#allocation7 + $0x5b4] sm:$0xf0] }
 0x22c   : > { %v6985_v47 = vld [vmem:[#allocation7 + $0x278] sm:$0xf0] }
 0x22d   : > { %4271 = vmatpush.bf16.msrb.mxu2 %v6732_v37  ;;  %v7273_v37 = vld [vmem:[#allocation7 + $0x4b8] sm:$0xf0]  ;;  %4203 = vmatpush.bf16.msra.mxu1 %v6904_v0  ;;  %v7192_v0 = vor.u32 %v8291_v22, %v7191_v45  ;;  %v8237_v22 = vld [vmem:[#allocation7 + $0x26c] sm:$0xf] }
 0x22e   : > { %4281 = vmatpush.bf16.msrb.mxu3 %v6908_v59  ;;  %4244 = vmatpush.bf16.msrb.mxu0 %v7256_v4  ;;  %v8199_v59 = vld [vmem:[#allocation7 + $0x134] sm:$0xf0]  ;;  %v6825_v4 = vld [vmem:[#allocation7 + $0x138] sm:$0xf0] }
 0x22f   : > { %v6828_v12 = vor.u32 %v8197_v1, %v6825_v4  ;;  %v7401_v45 = vld [vmem:[#allocation7 + $0x5b8] sm:$0xf0]  ;;  %v7367_v4 = vld [vmem:[#allocation7 + $0x568] sm:$0xf] }
 0x231   : > { %4272 = vmatpush.bf16.msrb.mxu2 %v6716_v21  ;;  %v7276_v21 = vor.u32 %v8309_v10, %v7273_v37  ;;  %4204 = vmatpush.bf16.msra.mxu1 %v6888_v2  ;;  %v7209_v10 = vld [vmem:[#allocation7 + $0x438] sm:$0xf0] }
 0x232   : > { %4282 = vmatpush.bf16.msrb.mxu3 %v6892_v11  ;;  %4245 = vmatpush.bf16.msrb.mxu0 %v7240_v13  ;;  %v6824_v11 = vor.u32 %v8199_v59, %v6823_v58  ;;  %v6807_v13 = vld [vmem:[#allocation7 + $0x108] sm:$0xf]  ;;  %v7212_v62 = vor.u32 %v8293_v57, %v7209_v10  ;;  %v7385_v58 = vld [vmem:[#allocation7 + $0x598] sm:$0xf0]  ;;  %v8229_v57 = vld [vmem:[#allocation7 + $0x22c] sm:$0xf] }
 0x233   : > { %v6808_v46 = vor.u32 %v8195_v14, %v6807_v13  ;;  %v6969_v59 = vld [vmem:[#allocation7 + $0x258] sm:$0xf0]  ;;  %v8331_v14 = vld [vmem:[#allocation7 + $0x554] sm:$0xf0] }
 0x235   : > { %4273 = vmatpush.bf16.msrb.mxu2 %v6700_v35  ;;  %v7207_v35 = vld [vmem:[#allocation7 + $0x428] sm:$0xf]  ;;  %4205 = vmatpush.bf16.msra.mxu1 %v6872_v26  ;;  %v8349_v26 = vld [vmem:[#allocation7 + $0x5ec] sm:$0xf] }
 0x236   : > { %4283 = vmatpush.bf16.msrb.mxu3 %v6876_v61  ;;  %v7208_v39 = vor.u32 %v8295_v32, %v7207_v35  ;;  %v7433_v61 = vld [vmem:[#allocation7 + $0x5f8] sm:$0xf0]  ;;  %v7415_v35 = vld [vmem:[#allocation7 + $0x5c8] sm:$0xf] }
 0x237   : > { %v4042_v33 = vpop.f32.mrf.mxu0 }
 0x238   : > { %v4043_v41 = vadd.f32 %v4042_v33, %v3069_v20  ;;  %v4055_v42 = vpop.f32.mrf.mxu1  ;;  %4158 = vmatmul.bf16.vlgmr.msrb.gmra.mxu1 %v9423_v6  ;;  %4236 = vmatmul.bf16.vlgmr.msra.gmra.mxu3 %v9423_v6  ;;  %v7017_v20 = vld [vmem:[#allocation7 + $0x2b8] sm:$0xf0]  ;;  %v8345_v33 = vld [vmem:[#allocation7 + $0x5cc] sm:$0xf] }
 0x239   : > { %4274 = vmatpush.bf16.msrb.mxu2 %v6684_v18  ;;  %v7244_v18 = vor.u32 %v8301_v17, %v7241_v38  ;;  %4206 = vmatpush.bf16.msra.mxu1 %v6856_v34  ;;  %v7020_v32 = vor.u32 %v8245_v27, %v7017_v20  ;;  %v8347_v38 = vld [vmem:[#allocation7 + $0x5d4] sm:$0xf0]  ;;  %v7417_v34 = vld [vmem:[#allocation7 + $0x5d8] sm:$0xf0] }
 0x23a   : > { %v4056_v48 = vadd.f32 %v4055_v42, %v4043_v41  ;;  %4284 = vmatpush.bf16.msrb.mxu3 %v6860_v36  ;;  %v7001_v41 = vld [vmem:[#allocation7 + $0x298] sm:$0xf0]  ;;  %v7416_v42 = vor.u32 %v8347_v38, %v7415_v35  ;;  %v8323_v35 = vld [vmem:[#allocation7 + $0x514] sm:$0xf0]  ;;  %v8285_v38 = vld [vmem:[#allocation7 + $0x3ec] sm:$0xf] }
 0x23b   : > { %v7004_v44 = vor.u32 %v8241_v40, %v7001_v41  ;;  %v7337_v27 = vld [vmem:[#allocation7 + $0x538] sm:$0xf0]  ;;  %v7495_v40 = vld [vmem:[#allocation9 + $0x70] sm:$0xf]  ;;  %v8367_v41 = vld [vmem:[#allocation9 + $0x74] sm:$0xf0] }
 0x23c   : > { %4275 = vmatmul.bf16.vlgmr.msrb.gmra.mxu2 %v9412_v53  ;;  %v7224_v53 = vor.u32 %v8299_v24, %v7223_v60  ;;  %v7431_v60 = vld [vmem:[#allocation7 + $0x5e8] sm:$0xf]  ;;  %v8351_v24 = vld [vmem:[#allocation7 + $0x5f4] sm:$0xf0] }
 0x23d   : > { %4319 = vmatpush.bf16.msra.mxu2 %v7308_v50  ;;  %v8297_v50 = vld [vmem:[#allocation7 + $0x44c] sm:$0xf]  ;;  %4207 = vmatpush.bf16.msra.mxu1 %v6840_v54  ;;  %v7432_v30 = vor.u32 %v8351_v24, %v7431_v60  ;;  %v8339_v54 = vld [vmem:[#allocation7 + $0x594] sm:$0xf0]  ;;  %v6937_v60 = vld [vmem:[#allocation7 + $0x218] sm:$0xf0] }
 0x23e   : > { %4246 = vmatpush.bf16.msrb.mxu0 %v7224_v53  ;;  %v7228_v8 = vor.u32 %v8297_v50, %v7225_v52  ;;  %4285 = vmatpush.bf16.msrb.mxu3 %v6844_v56  ;;  %v7193_v53 = vld [vmem:[#allocation7 + $0x418] sm:$0xf0]  ;;  %v7383_v50 = vld [vmem:[#allocation7 + $0x588] sm:$0xf]  ;;  %v6988_v52 = vor.u32 %v8237_v22, %v6985_v47  ;;  %v8337_v56 = vld [vmem:[#allocation7 + $0x58c] sm:$0xf] }
 0x23f   : > { %v4044_v2 = vpop.f32.mrf.mxu0  ;;  %v7196_v17 = vor.u32 %v8289_v28, %v7193_v53  ;;  %v7384_v1 = vor.u32 %v8339_v54, %v7383_v50  ;;  %v9469_v53 = vld [vmem:[#allocation19 + $0x8] sm:$0xff]  ;;  %v7487_v47 = vld [vmem:[#allocation9 + $0x60] sm:$0xf]  ;;  %v7145_v54 = vld [vmem:[#allocation7 + $0x3b8] sm:$0xf0] }
 0x240   : > { %v4057_v16 = vpop.f32.mrf.mxu1 }
 0x241   : > { %4320 = vmatpush.bf16.msra.mxu2 %v7292_v7  ;;  %v4068_v7 = vpop.f32.mrf.mxu2  ;;  %4208 = vmatpush.bf16.msra.mxu1 %v6824_v11  ;;  %v7353_v16 = vld [vmem:[#allocation7 + $0x558] sm:$0xf0] }
 0x242   : > { %4247 = vmatpush.bf16.msrb.mxu0 %v7208_v39  ;;  %v9460_v37 = vadd.f32 %v4068_v7, %v4056_v48  ;;  %4286 = vmatpush.bf16.msrb.mxu3 %v6828_v12  ;;  %v7420_v39 = vor.u32 %v8345_v33, %v7417_v34  ;;  %v7400_v48 = vor.u32 %v8343_v19, %v7399_v43  ;;  %v7369_v7 = vld [vmem:[#allocation7 + $0x578] sm:$0xf0]  ;;  %v7351_v12 = vld [vmem:[#allocation7 + $0x548] sm:$0xf]  ;;  %v8281_v19 = vld [vmem:[#allocation7 + $0x3cc] sm:$0xf] }
 0x243   : > { %v7372_v11 = vor.u32 %v8333_v9, %v7369_v7  ;;  %v7352_v24 = vor.u32 %v8331_v14, %v7351_v12  ;;  %v7177_v33 = vld [vmem:[#allocation7 + $0x3f8] sm:$0xf0]  ;;  %v7496_v43 = vor.u32 %v8367_v41, %v7495_v40  ;;  %v8269_v7 = vld [vmem:[#allocation7 + $0x36c] sm:$0xf]  ;;  %v8357_v14 = vld [vmem:[#allocation9 + $0x24] sm:$0xf0] }
 0x244   : > { %v7097_v12 = vld [vmem:[#allocation7 + $0x358] sm:$0xf0] }
 0x245   : > { %4321 = vmatpush.bf16.msra.mxu2 %v7276_v21  ;;  %v6809_v21 = vld [vmem:[#allocation7 + $0x118] sm:$0xf0]  ;;  %4209 = vmatpush.bf16.msra.mxu1 %v6808_v46  ;;  %v3070_v46 = vperm.slane %v9469_v53, 1 }
 0x246   : > { %4248 = vmatpush.bf16.msrb.mxu0 %v7192_v0  ;;  %v6812_v29 = vor.u32 %v8193_v15, %v6809_v21  ;;  %v8233_v0 = vld [vmem:[#allocation7 + $0x24c] sm:$0xf] }
 0x247   : > { %v8329_v15 = vld [vmem:[#allocation7 + $0x54c] sm:$0xf] }
 0x248   : > { %4287 = vmatpush.bf16.msrb.mxu3 %v6812_v29  ;;  %4210 = vmatmul.bf16.vlgmr.msra.gmra.mxu1 %v9414_v23  ;;  %v8225_v21 = vld [vmem:[#allocation7 + $0x20c] sm:$0xf] }
 0x249   : > { %4322 = vmatpush.bf16.msra.mxu2 %v7260_v31  ;;  %4249 = vmatmul.bf16.vlgmr.msrb.gmra.mxu0 %v9440_v63  ;;  %v7436_v31 = vor.u32 %v8349_v26, %v7433_v61  ;;  %v4070_v36 = vpop.f32.mrf.mxu2  ;;  %v8327_v26 = vld [vmem:[#allocation7 + $0x534] sm:$0xf0]  ;;  %v8325_v61 = vld [vmem:[#allocation7 + $0x52c] sm:$0xf] }
 0x24a   : > { %4293 = vmatpush.bf16.msra.mxu0 %v7052_v5  ;;  %4254 = vmatpush.bf16.msrb.mxu1 %v7432_v30  ;;  %v6972_v5 = vor.u32 %v8233_v0, %v6969_v59  ;;  %v7340_v30 = vor.u32 %v8325_v61, %v7337_v27  ;;  %v8273_v0 = vld [vmem:[#allocation7 + $0x38c] sm:$0xf]  ;;  %v7559_v27 = vld [vmem:[#allocation9 + $0xf0] sm:$0xf] }
 0x24b   : > { %4288 = vmatmul.bf16.vlgmr.msrb.gmra.mxu3 %v9414_v23  ;;  %v7388_v23 = vor.u32 %v8337_v56, %v7385_v58  ;;  %v4081_v3 = vpop.f32.mrf.mxu3  ;;  %v8363_v56 = vld [vmem:[#allocation9 + $0x54] sm:$0xf0] }
 0x24c   : > { %4332 = vmatpush.bf16.msra.mxu3 %v7436_v31  ;;  %v9467_v10 = vadd.f32 %v4081_v3, %v9460_v37  ;;  %v6940_v37 = vor.u32 %v8225_v21, %v6937_v60  ;;  %v7319_v31 = vld [vmem:[#allocation7 + $0x508] sm:$0xf]  ;;  %v7113_v3 = vld [vmem:[#allocation7 + $0x378] sm:$0xf0]  ;;  %v8261_v21 = vld [vmem:[#allocation7 + $0x32c] sm:$0xf] }
 0x24d   : > { %4323 = vmatpush.bf16.msra.mxu2 %v7244_v18  ;;  %v8341_v18 = vld [vmem:[#allocation7 + $0x5ac] sm:$0xf]  ;;  %v7320_v34 = vor.u32 %v8323_v35, %v7319_v31  ;;  %v7081_v60 = vld [vmem:[#allocation7 + $0x338] sm:$0xf0] }
 0x24e   : > { %4294 = vmatpush.bf16.msra.mxu0 %v7036_v25  ;;  %4255 = vmatpush.bf16.msrb.mxu1 %v7416_v42  ;;  %v7404_v49 = vor.u32 %v8341_v18, %v7401_v45  ;;  %v7356_v25 = vor.u32 %v8329_v15, %v7353_v16  ;;  %v7161_v18 = vld [vmem:[#allocation7 + $0x3d8] sm:$0xf0] }
 0x250   : > { %4333 = vmatpush.bf16.msra.mxu3 %v7420_v39  ;;  %v7180_v39 = vor.u32 %v8285_v38, %v7177_v33  ;;  %v7551_v38 = vld [vmem:[#allocation9 + $0xe0] sm:$0xf]  ;;  %v8381_v33 = vld [vmem:[#allocation9 + $0xe4] sm:$0xf0] }
 0x251   : > { %4324 = vmatpush.bf16.msra.mxu2 %v7228_v8  ;;  %v8335_v8 = vld [vmem:[#allocation7 + $0x574] sm:$0xf0]  ;;  %v7552_v41 = vor.u32 %v8381_v33, %v7551_v38  ;;  %v7615_v38 = vld [vmem:[#allocation9 + $0x160] sm:$0xf]  ;;  %v8397_v33 = vld [vmem:[#allocation9 + $0x164] sm:$0xf0] }
 0x252   : > { %4295 = vmatpush.bf16.msra.mxu0 %v7020_v32  ;;  %4256 = vmatpush.bf16.msrb.mxu1 %v7400_v48  ;;  %v7368_v2 = vor.u32 %v8335_v8, %v7367_v4  ;;  %v8321_v32 = vld [vmem:[#allocation7 + $0x50c] sm:$0xf]  ;;  %v8365_v48 = vld [vmem:[#allocation9 + $0x64] sm:$0xf0]  ;;  %v7471_v4 = vld [vmem:[#allocation9 + $0x40] sm:$0xf] }
 0x253   : > { %v4083_v20 = vpop.f32.mrf.mxu3  ;;  %v7488_v50 = vor.u32 %v8365_v48, %v7487_v47  ;;  %v7535_v47 = vld [vmem:[#allocation9 + $0xc0] sm:$0xf]  ;;  %v8377_v48 = vld [vmem:[#allocation9 + $0xc4] sm:$0xf0] }
 0x254   : > { %4334 = vmatpush.bf16.msra.mxu3 %v7404_v49  ;;  %v7164_v49 = vor.u32 %v8281_v19, %v7161_v18  ;;  %v7439_v20 = vld [vmem:[#allocation9] sm:$0xf]  ;;  %v7481_v19 = vld [vmem:[#allocation9 + $0x58] sm:$0xf0] }
 0x255   : > { %4325 = vmatpush.bf16.msra.mxu2 %v7212_v62  ;;  %v7335_v62 = vld [vmem:[#allocation7 + $0x528] sm:$0xf] }
 0x256   : > { %4296 = vmatpush.bf16.msra.mxu0 %v7004_v44  ;;  %4257 = vmatpush.bf16.msrb.mxu1 %v7384_v1  ;;  %v7336_v29 = vor.u32 %v8327_v26, %v7335_v62  ;;  %v7084_v62 = vor.u32 %v8261_v21, %v7081_v60  ;;  %v7065_v26 = vld [vmem:[#allocation7 + $0x318] sm:$0xf0]  ;;  %v8382_v60 = vld [vmem:[#allocation9 + $0xf4] sm:$0xf] }
 0x258   : > { %4335 = vmatpush.bf16.msra.mxu3 %v7388_v23  ;;  %v7129_v23 = vld [vmem:[#allocation7 + $0x398] sm:$0xf0] }
 0x259   : > { %4326 = vmatpush.bf16.msra.mxu2 %v7196_v17  ;;  %v7321_v17 = vld [vmem:[#allocation7 + $0x518] sm:$0xf0]  ;;  %v7132_v9 = vor.u32 %v8273_v0, %v7129_v23  ;;  %v8375_v0 = vld [vmem:[#allocation9 + $0xb4] sm:$0xf0] }
 0x25a   : > { %4297 = vmatpush.bf16.msra.mxu0 %v6988_v52  ;;  %4258 = vmatpush.bf16.msrb.mxu1 %v7368_v2  ;;  %v7324_v36 = vor.u32 %v8321_v32, %v7321_v17  ;;  %v8277_v52 = vld [vmem:[#allocation7 + $0x3ac] sm:$0xf] }
 0x25b   : > { %v7148_v58 = vor.u32 %v8277_v52, %v7145_v54  ;;  %v7473_v52 = vld [vmem:[#allocation9 + $0x48] sm:$0xf0] }
 0x25c   : > { %4327 = vmatmul.bf16.vlgmr.msra.gmra.mxu2 %v9440_v63  ;;  %v6953_v63 = vld [vmem:[#allocation7 + $0x238] sm:$0xf0]  ;;  %4336 = vmatpush.bf16.msra.mxu3 %v7372_v11  ;;  %v8265_v11 = vld [vmem:[#allocation7 + $0x34c] sm:$0xf] }
 0x25d   : > { %v6956_v13 = vor.u32 %v8229_v57, %v6953_v63  ;;  %v7463_v57 = vld [vmem:[#allocation9 + $0x30] sm:$0xf]  ;;  %v7116_v63 = vor.u32 %v8269_v7, %v7113_v3  ;;  %v7100_v16 = vor.u32 %v8265_v11, %v7097_v12  ;;  %v7457_v7 = vld [vmem:[#allocation9 + $0x28] sm:$0xf0]  ;;  %v8354_v11 = vld [vmem:[#allocation9 + $0x14] sm:$0xf] }
 0x25e   : > { %4298 = vmatpush.bf16.msra.mxu0 %v6972_v5  ;;  %4259 = vmatpush.bf16.msrb.mxu1 %v7352_v24  ;;  %v8361_v5 = vld [vmem:[#allocation9 + $0x44] sm:$0xf0]  ;;  %v7447_v24 = vld [vmem:[#allocation9 + $0x10] sm:$0xf]  ;;  %v7449_v12 = vld [vmem:[#allocation9 + $0x18] sm:$0xf0] }
 0x25f   : > { %v4120_v28 = vpop.f32.mrf.mxu2  ;;  %v7472_v8 = vor.u32 %v8361_v5, %v7471_v4  ;;  %v7519_v4 = vld [vmem:[#allocation9 + $0xa0] sm:$0xf]  ;;  %v8373_v5 = vld [vmem:[#allocation9 + $0xa4] sm:$0xf0] }
 0x260   : > { %4337 = vmatpush.bf16.msra.mxu3 %v7356_v25  ;;  %v4121_v42 = vadd.f32 %v4120_v28, %v3070_v46  ;;  %v4133_v44 = vpop.f32.mrf.mxu3  ;;  %v8355_v25 = vld [vmem:[#allocation9 + $0x14] sm:$0xf0]  ;;  %v8353_v28 = vld [vmem:[#allocation9 + $0x4] sm:$0xf0] }
 0x261   : > { %v7448_v61 = vor.u32 %v8355_v25, %v7447_v24  ;;  %v8383_v46 = vld [vmem:[#allocation9 + $0xf4] sm:$0xf0]  ;;  %v7440_v31 = vor.u32 %v8353_v28, %v7439_v20  ;;  %v7561_v24 = vld [vmem:[#allocation9 + $0xf8] sm:$0xf0]  ;;  %v8352_v25 = vld [vmem:[#allocation9 + $0x4] sm:$0xf] }
 0x262   : > { %4299 = vmatpush.bf16.msra.mxu0 %v6956_v13  ;;  %4260 = vmatpush.bf16.msrb.mxu1 %v7336_v29  ;;  %v9473_v22 = vadd.f32 %v4133_v44, %v4121_v42  ;;  %v7455_v13 = vld [vmem:[#allocation9 + $0x20] sm:$0xf]  ;;  %v8366_v29 = vld [vmem:[#allocation9 + $0x74] sm:$0xf]  ;;  %v7560_v17 = vor.u32 %v8383_v46, %v7559_v27  ;;  %v7564_v27 = vor.u32 %v8382_v60, %v7561_v24  ;;  %v8380_v20 = vld [vmem:[#allocation9 + $0xe4] sm:$0xf] }
 0x263   : > { %v7456_v15 = vor.u32 %v8357_v14, %v7455_v13  ;;  %v8362_v44 = vld [vmem:[#allocation9 + $0x54] sm:$0xf]  ;;  %v7452_v14 = vor.u32 %v8354_v11, %v7449_v12  ;;  %v7553_v28 = vld [vmem:[#allocation9 + $0xe8] sm:$0xf0]  ;;  %v7623_v46 = vld [vmem:[#allocation9 + $0x170] sm:$0xf] }
 0x264   : > { %4338 = vmatpush.bf16.msra.mxu3 %v7340_v30  ;;  %v7497_v30 = vld [vmem:[#allocation9 + $0x78] sm:$0xf0] }
 0x265   : > { %v7500_v32 = vor.u32 %v8366_v29, %v7497_v30  ;;  %v8399_v29 = vld [vmem:[#allocation9 + $0x174] sm:$0xf0] }
 0x266   : > { %4300 = vmatpush.bf16.msra.mxu0 %v6940_v37  ;;  %4261 = vmatpush.bf16.msrb.mxu1 %v7320_v34  ;;  %v8257_v37 = vld [vmem:[#allocation7 + $0x30c] sm:$0xf]  ;;  %v8364_v34 = vld [vmem:[#allocation9 + $0x64] sm:$0xf]  ;;  %v7624_v30 = vor.u32 %v8399_v29, %v7623_v46  ;;  %v7625_v46 = vld [vmem:[#allocation9 + $0x178] sm:$0xf0] }
 0x267   : > { %v4122_v45 = vpop.f32.mrf.mxu2  ;;  %v7068_v35 = vor.u32 %v8257_v37, %v7065_v26 }
 0x268   : > { %4339 = vmatpush.bf16.msra.mxu3 %v7324_v36  ;;  %v4135_v1 = vpop.f32.mrf.mxu3  ;;  %v7489_v36 = vld [vmem:[#allocation9 + $0x68] sm:$0xf0]  ;;  %v7484_v45 = vor.u32 %v8362_v44, %v7481_v19  ;;  %4765 = vmatpush.bf16.msrb.mxu2 %v7624_v30  ;;  %v8395_v44 = vld [vmem:[#allocation9 + $0x154] sm:$0xf0] }
 0x269   : > { %4301 = vmatmul.bf16.vlgmr.msra.gmra.mxu0 %v9416_v55  ;;  %4262 = vmatmul.bf16.vlgmr.msrb.gmra.mxu1 %v9453_v51  ;;  %v7479_v55 = vld [vmem:[#allocation9 + $0x50] sm:$0xf]  ;;  %v7492_v42 = vor.u32 %v8364_v34, %v7489_v36  ;;  %v7616_v34 = vor.u32 %v8397_v33, %v7615_v38 }
 0x26a   : > { %4739 = vmatpush.bf16.msrb.mxu0 %v7496_v43  ;;  %4306 = vmatpush.bf16.msra.mxu1 %v7180_v39  ;;  %v7480_v59 = vor.u32 %v8363_v56, %v7479_v55  ;;  %v7543_v39 = vld [vmem:[#allocation9 + $0xd0] sm:$0xf]  ;;  %v8379_v43 = vld [vmem:[#allocation9 + $0xd4] sm:$0xf0]  ;;  %v7536_v55 = vor.u32 %v8377_v48, %v7535_v47  ;;  %v8374_v48 = vld [vmem:[#allocation9 + $0xb4] sm:$0xf] }
 0x26b   : > { %4340 = vmatmul.bf16.vlgmr.msra.gmra.mxu3 %v9453_v51  ;;  %v8359_v51 = vld [vmem:[#allocation9 + $0x34] sm:$0xf0]  ;;  %v7544_v18 = vor.u32 %v8379_v43, %v7543_v39  ;;  %v7537_v39 = vld [vmem:[#allocation9 + $0xc8] sm:$0xf0]  ;;  %v7607_v43 = vld [vmem:[#allocation9 + $0x150] sm:$0xf] }
 0x26c   : > { %v7464_v2 = vor.u32 %v8359_v51, %v7463_v57  ;;  %v7520_v57 = vor.u32 %v8373_v5, %v7519_v4  ;;  %4766 = vmatpush.bf16.msrb.mxu2 %v7616_v34  ;;  %v7608_v19 = vor.u32 %v8395_v44, %v7607_v43  ;;  %v7591_v4 = vld [vmem:[#allocation9 + $0x130] sm:$0xf]  ;;  %v7617_v34 = vld [vmem:[#allocation9 + $0x168] sm:$0xf0]  ;;  %v7679_v43 = vld [vmem:[#allocation9 + $0x1e0] sm:$0xf] }
 0x26d   : > { %v8413_v44 = vld [vmem:[#allocation9 + $0x1e4] sm:$0xf0] }
 0x26e   : > { %4740 = vmatpush.bf16.msrb.mxu0 %v7488_v50  ;;  %4307 = vmatpush.bf16.msra.mxu1 %v7164_v49  ;;  %v8360_v50 = vld [vmem:[#allocation9 + $0x44] sm:$0xf] }
 0x26f   : > { %v7476_v56 = vor.u32 %v8360_v50, %v7473_v52  ;;  %v7529_v52 = vld [vmem:[#allocation9 + $0xb8] sm:$0xf0] }
 0x270   : > { %4767 = vmatpush.bf16.msrb.mxu2 %v7608_v19  ;;  %v8394_v19 = vld [vmem:[#allocation9 + $0x154] sm:$0xf] }
 0x272   : > { %4741 = vmatpush.bf16.msrb.mxu0 %v7480_v59  ;;  %4308 = vmatpush.bf16.msra.mxu1 %v7148_v58  ;;  %v7527_v58 = vld [vmem:[#allocation9 + $0xb0] sm:$0xf]  ;;  %v7465_v59 = vld [vmem:[#allocation9 + $0x38] sm:$0xf0] }
 0x273   : > { %v7528_v1 = vor.u32 %v8375_v0, %v7527_v58 }
 0x276   : > { %4742 = vmatpush.bf16.msrb.mxu0 %v7472_v8  ;;  %4309 = vmatpush.bf16.msra.mxu1 %v7132_v9  ;;  %v8356_v9 = vld [vmem:[#allocation9 + $0x24] sm:$0xf] }
 0x277   : > { %v7460_v51 = vor.u32 %v8356_v9, %v7457_v7  ;;  %v8370_v7 = vld [vmem:[#allocation9 + $0x94] sm:$0xf] }
 0x27a   : > { %4743 = vmatpush.bf16.msrb.mxu0 %v7464_v2  ;;  %4310 = vmatpush.bf16.msra.mxu1 %v7116_v63  ;;  %v7511_v63 = vld [vmem:[#allocation9 + $0x90] sm:$0xf]  ;;  %v8371_v2 = vld [vmem:[#allocation9 + $0x94] sm:$0xf0] }
 0x27b   : > { %v7512_v13 = vor.u32 %v8371_v2, %v7511_v63  ;;  %v8389_v63 = vld [vmem:[#allocation9 + $0x124] sm:$0xf0] }
 0x27d   : > { %v9477_v40 = vpop.f32.mrf.mxu0 }
 0x27e   : > { %4744 = vmatpush.bf16.msrb.mxu0 %v7456_v15  ;;  %4311 = vmatpush.bf16.msra.mxu1 %v7100_v16  ;;  %v7503_v15 = vld [vmem:[#allocation9 + $0x80] sm:$0xf]  ;;  %v8369_v16 = vld [vmem:[#allocation9 + $0x84] sm:$0xf0] }
 0x27f   : > { %v7504_v26 = vor.u32 %v8369_v16, %v7503_v15  ;;  %v7575_v15 = vld [vmem:[#allocation9 + $0x110] sm:$0xf]  ;;  %v8387_v16 = vld [vmem:[#allocation9 + $0x114] sm:$0xf0] }
 0x280   : > { %v7576_v24 = vor.u32 %v8387_v16, %v7575_v15  ;;  %v7647_v15 = vld [vmem:[#allocation9 + $0x1a0] sm:$0xf]  ;;  %v8405_v16 = vld [vmem:[#allocation9 + $0x1a4] sm:$0xf0] }
 0x282   : > { %4745 = vmatpush.bf16.msrb.mxu0 %v7448_v61  ;;  %4312 = vmatpush.bf16.msra.mxu1 %v7084_v62  ;;  %v7441_v62 = vld [vmem:[#allocation9 + $0x8] sm:$0xf0] }
 0x283   : > { %v9480_v49 = vpop.f32.mrf.mxu2  ;;  %v7444_v61 = vor.u32 %v8352_v25, %v7441_v62 }
 0x285   : > { %v4096_v54 = vpop.f32.mrf.mxu0 }
 0x286   : > { %4746 = vmatpush.bf16.msrb.mxu0 %v7440_v31  ;;  %4313 = vmatpush.bf16.msra.mxu1 %v7068_v35  ;;  %v7556_v31 = vor.u32 %v8380_v20, %v7553_v28  ;;  %v8378_v35 = vld [vmem:[#allocation9 + $0xd4] sm:$0xf]  ;;  %v7599_v54 = vld [vmem:[#allocation9 + $0x140] sm:$0xf] }
 0x287   : > { %v8398_v20 = vld [vmem:[#allocation9 + $0x174] sm:$0xf] }
 0x288   : > { %v7628_v30 = vor.u32 %v8398_v20, %v7625_v46 }
 0x289   : > { %4314 = vmatmul.bf16.vlgmr.msra.gmra.mxu1 %v9423_v6  ;;  %v8358_v6 = vld [vmem:[#allocation9 + $0x34] sm:$0xf] }
 0x28a   : > { %4791 = vmatpush.bf16.msra.mxu0 %v7500_v32  ;;  %4752 = vmatpush.bf16.msrb.mxu1 %v7560_v17  ;;  %v7468_v23 = vor.u32 %v8358_v6, %v7465_v59  ;;  %v7545_v17 = vld [vmem:[#allocation9 + $0xd8] sm:$0xf0]  ;;  %v7532_v6 = vor.u32 %v8374_v48, %v7529_v52  ;;  %v8372_v59 = vld [vmem:[#allocation9 + $0xa4] sm:$0xf]  ;;  %v8411_v52 = vld [vmem:[#allocation9 + $0x1d4] sm:$0xf0] }
 0x28b   : > { %v4174_v8 = vpop.f32.mrf.mxu2 }
 0x28d   : > { %v9482_v3 = vpop.f32.mrf.mxu0 }
 0x28e   : > { %4792 = vmatpush.bf16.msra.mxu0 %v7492_v42  ;;  %4753 = vmatpush.bf16.msrb.mxu1 %v7552_v41  ;;  %v7548_v41 = vor.u32 %v8378_v35, %v7545_v17  ;;  %v8376_v42 = vld [vmem:[#allocation9 + $0xc4] sm:$0xf]  ;;  %v4147_v25 = vadd.f32 %v9482_v3, %v9473_v22  ;;  %v7687_v22 = vld [vmem:[#allocation9 + $0x1f0] sm:$0xf]  ;;  %v8415_v3 = vld [vmem:[#allocation9 + $0x1f4] sm:$0xf0] }
 0x28f   : > { %v7540_v47 = vor.u32 %v8376_v42, %v7537_v39  ;;  %v8396_v17 = vld [vmem:[#allocation9 + $0x164] sm:$0xf]  ;;  %v7688_v33 = vor.u32 %v8415_v3, %v7687_v22  ;;  %v8401_v22 = vld [vmem:[#allocation9 + $0x184] sm:$0xf0] }
 0x290   : > { %v7620_v42 = vor.u32 %v8396_v17, %v7617_v34  ;;  %v8414_v17 = vld [vmem:[#allocation9 + $0x1f4] sm:$0xf] }
 0x291   : > { %4778 = vmatpush.bf16.msrb.mxu3 %v7688_v33 }
 0x292   : > { %4793 = vmatpush.bf16.msra.mxu0 %v7484_v45  ;;  %4754 = vmatpush.bf16.msrb.mxu1 %v7544_v18  ;;  %v4095_v18 = vadd.f32 %v9477_v40, %v9467_v10  ;;  %v8391_v10 = vld [vmem:[#allocation9 + $0x134] sm:$0xf0] }
 0x293   : > { %v7592_v5 = vor.u32 %v8391_v10, %v7591_v4  ;;  %v7593_v10 = vld [vmem:[#allocation9 + $0x138] sm:$0xf0] }
 0x295   : > { %v4148_v37 = vpop.f32.mrf.mxu0 }
 0x296   : > { %4794 = vmatpush.bf16.msra.mxu0 %v7476_v56  ;;  %4755 = vmatpush.bf16.msrb.mxu1 %v7536_v55  ;;  %v8393_v55 = vld [vmem:[#allocation9 + $0x144] sm:$0xf0] }
 0x297   : > { %v7600_v56 = vor.u32 %v8393_v55, %v7599_v54  ;;  %v8392_v54 = vld [vmem:[#allocation9 + $0x144] sm:$0xf] }
 0x299   : > { %4768 = vmatpush.bf16.msrb.mxu2 %v7600_v56  ;;  %v7601_v56 = vld [vmem:[#allocation9 + $0x148] sm:$0xf0] }
 0x29a   : > { %4795 = vmatpush.bf16.msra.mxu0 %v7468_v23  ;;  %4756 = vmatpush.bf16.msrb.mxu1 %v7528_v1  ;;  %v7521_v23 = vld [vmem:[#allocation9 + $0xa8] sm:$0xf0] }
 0x29b   : > { %v7524_v9 = vor.u32 %v8372_v59, %v7521_v23  ;;  %v7663_v59 = vld [vmem:[#allocation9 + $0x1c0] sm:$0xf]  ;;  %v8390_v23 = vld [vmem:[#allocation9 + $0x134] sm:$0xf] }
 0x29d   : > { %v9486_v36 = vpop.f32.mrf.mxu0  ;;  %4769 = vmatpush.bf16.msrb.mxu2 %v7592_v5  ;;  %v7655_v5 = vld [vmem:[#allocation9 + $0x1b0] sm:$0xf] }
 0x29e   : > { %4796 = vmatpush.bf16.msra.mxu0 %v7460_v51  ;;  %4757 = vmatpush.bf16.msrb.mxu1 %v7520_v57  ;;  %v7513_v57 = vld [vmem:[#allocation9 + $0x98] sm:$0xf0]  ;;  %v7583_v51 = vld [vmem:[#allocation9 + $0x120] sm:$0xf] }
 0x29f   : > { %v9484_v21 = vpop.f32.mrf.mxu2  ;;  %v7584_v2 = vor.u32 %v8389_v63, %v7583_v51  ;;  %v7516_v12 = vor.u32 %v8370_v7, %v7513_v57  ;;  %v7585_v51 = vld [vmem:[#allocation9 + $0x128] sm:$0xf0] }
 0x2a1   : > { %4770 = vmatpush.bf16.msrb.mxu2 %v7584_v2 }
 0x2a2   : > { %4797 = vmatpush.bf16.msra.mxu0 %v7452_v14  ;;  %4758 = vmatpush.bf16.msrb.mxu1 %v7512_v13  ;;  %v8368_v13 = vld [vmem:[#allocation9 + $0x84] sm:$0xf]  ;;  %v7505_v14 = vld [vmem:[#allocation9 + $0x88] sm:$0xf0] }
 0x2a3   : > { %v7508_v37 = vor.u32 %v8368_v13, %v7505_v14 }
 0x2a5   : > { %v4107_v45 = vpop.f32.mrf.mxu1  ;;  %v4200_v0 = vpop.f32.mrf.mxu0  ;;  %4771 = vmatpush.bf16.msrb.mxu2 %v7576_v24  ;;  %v7648_v24 = vor.u32 %v8405_v16, %v7647_v15 }
 0x2a6   : > { %4798 = vmatpush.bf16.msra.mxu0 %v7444_v61  ;;  %4759 = vmatpush.bf16.msrb.mxu1 %v7504_v26  ;;  %v4108_v50 = vadd.f32 %v4107_v45, %v4095_v18  ;;  %v7567_v61 = vld [vmem:[#allocation9 + $0x100] sm:$0xf]  ;;  %v7680_v18 = vor.u32 %v8413_v44, %v7679_v43  ;;  %v7609_v45 = vld [vmem:[#allocation9 + $0x158] sm:$0xf0]  ;;  %v7604_v0 = vor.u32 %v8392_v54, %v7601_v56  ;;  %v8410_v44 = vld [vmem:[#allocation9 + $0x1d4] sm:$0xf] }
 0x2a7   : > { %v4226_v32 = vpop.f32.mrf.mxu2  ;;  %v8435_v56 = vld [vmem:[#allocation12 + $0x18] sm:$0xff] }
 0x2a8   : > { %v4345_v58 = vmax.f32 %v4108_v50, 0.0  ;;  %4779 = vmatpush.bf16.msrb.mxu3 %v7680_v18  ;;  %v7671_v50 = vld [vmem:[#allocation9 + $0x1d0] sm:$0xf] }
 0x2a9   : > { %v7672_v55 = vor.u32 %v8411_v52, %v7671_v50  ;;  %v7665_v52 = vld [vmem:[#allocation9 + $0x1c8] sm:$0xf0] }
 0x2aa   : > { %4804 = vmatpush.bf16.msra.mxu1 %v7564_v27  ;;  %v4349_v1 = vpack.c.bf16 %v4345_v58, %v4345_v58  ;;  %v8385_v27 = vld [vmem:[#allocation9 + $0x104] sm:$0xf0] }
 0x2ab   : > { %v4185_v40 = vpop.f32.mrf.mxu3  ;;  %v7568_v28 = vor.u32 %v8385_v27, %v7567_v61  ;;  %v8384_v61 = vld [vmem:[#allocation9 + $0x104] sm:$0xf]  ;;  %v7569_v27 = vld [vmem:[#allocation9 + $0x108] sm:$0xf0] }
 0x2ac   : > { %4747 = vmatmul.bf16.vlgmr.msrb.gmra.mxu0 %v4349_v1  ;;  %4780 = vmatpush.bf16.msrb.mxu3 %v7672_v55 }
 0x2ad   : > { %v4109_v8 = vpop.f32.mrf.mxu1  ;;  %4772 = vmatpush.bf16.msrb.mxu2 %v7568_v28 }
 0x2ae   : > { %4805 = vmatpush.bf16.msra.mxu1 %v7556_v31  ;;  %v8407_v8 = vld [vmem:[#allocation9 + $0x1b4] sm:$0xf0] }
 0x2af   : > { %v7656_v57 = vor.u32 %v8407_v8, %v7655_v5  ;;  %v7641_v5 = vld [vmem:[#allocation9 + $0x198] sm:$0xf0]  ;;  %v8433_v8 = vld [vmem:[#allocation12 + $0x8] sm:$0xff] }
 0x2b1   : > { %4817 = vmatpush.bf16.msra.mxu2 %v7628_v30 }
 0x2b2   : > { %4806 = vmatpush.bf16.msra.mxu1 %v7548_v41 }
 0x2b3   : > { %v4187_v60 = vpop.f32.mrf.mxu3 }
 0x2b4   : > { %v8386_v60 = vld [vmem:[#allocation9 + $0x114] sm:$0xf] }
 0x2b5   : > { %v4159_v62 = vpop.f32.mrf.mxu1  ;;  %4818 = vmatpush.bf16.msra.mxu2 %v7620_v42  ;;  %v8412_v42 = vld [vmem:[#allocation9 + $0x1e4] sm:$0xf] }
 0x2b6   : > { %4807 = vmatpush.bf16.msra.mxu1 %v7540_v47  ;;  %v4160_v26 = vadd.f32 %v4159_v62, %v4147_v25  ;;  %v7612_v47 = vor.u32 %v8394_v19, %v7609_v45  ;;  %v7577_v25 = vld [vmem:[#allocation9 + $0x118] sm:$0xf0]  ;;  %v7639_v62 = vld [vmem:[#allocation9 + $0x190] sm:$0xf] }
 0x2b7   : > { %v7673_v19 = vld [vmem:[#allocation9 + $0x1d8] sm:$0xf0] }
 0x2b8   : > { %v4173_v29 = vadd.f32 %v9480_v49, %v4160_v26  ;;  %v7580_v26 = vor.u32 %v8386_v60, %v7577_v25  ;;  %v7676_v45 = vor.u32 %v8410_v44, %v7673_v19  ;;  %v8441_v44 = vld [vmem:[#allocation13 + $0x28] sm:$0xff] }
 0x2b9   : > { %4819 = vmatpush.bf16.msra.mxu2 %v7612_v47  ;;  %v8421_v19 = vld [vmem:[#allocation10 + $0x28] sm:$0xff] }
 0x2ba   : > { %4808 = vmatpush.bf16.msra.mxu1 %v7532_v6  ;;  %v4186_v35 = vadd.f32 %v4185_v40, %v4173_v29  ;;  %v7596_v40 = vor.u32 %v8390_v23, %v7593_v10  ;;  %v7572_v29 = vor.u32 %v8384_v61, %v7569_v27  ;;  %v8404_v23 = vld [vmem:[#allocation9 + $0x1a4] sm:$0xf]  ;;  %v5003_v27 = vld [vmem:[%s9300_s15] sm:$0xf] }
 0x2bb   : > { %v9495_v32 = vpop.f32.mrf.mxu3 }
 0x2bc   : > { %v4346_v38 = vmax.f32 %v4186_v35, 0.0  ;;  %4799 = vmatmul.bf16.vlgmr.msra.gmra.mxu0 %v4349_v1  ;;  %v8409_v1 = vld [vmem:[#allocation9 + $0x1c4] sm:$0xf0]  ;;  %v7631_v35 = vld [vmem:[#allocation9 + $0x180] sm:$0xf] }
 0x2bd   : > { %v4161_v41 = vpop.f32.mrf.mxu1  ;;  %4820 = vmatpush.bf16.msra.mxu2 %v7604_v0  ;;  %v7664_v4 = vor.u32 %v8409_v1, %v7663_v59  ;;  %v7632_v3 = vor.u32 %v8401_v22, %v7631_v35  ;;  %v8434_v1 = vld [vmem:[#allocation12 + $0x10] sm:$0xff] }
 0x2be   : > { %4809 = vmatpush.bf16.msra.mxu1 %v7524_v9  ;;  %v4350_v39 = vpack.c.bf16 %v4346_v38, %v4346_v38  ;;  %v8388_v9 = vld [vmem:[#allocation9 + $0x124] sm:$0xf]  ;;  %v7689_v38 = vld [vmem:[#allocation9 + $0x1f8] sm:$0xf0] }
 0x2bf   : > { %v9490_v11 = vpop.f32.mrf.mxu2  ;;  %4781 = vmatpush.bf16.msrb.mxu3 %v7664_v4  ;;  %v7588_v63 = vor.u32 %v8388_v9, %v7585_v51  ;;  %v7692_v34 = vor.u32 %v8414_v17, %v7689_v38  ;;  %v7649_v4 = vld [vmem:[#allocation9 + $0x1a8] sm:$0xf0]  ;;  %v8400_v51 = vld [vmem:[#allocation9 + $0x184] sm:$0xf]  ;;  %v4418_v17 = vperm.slane %v9469_v53, 2  ;;  %v8439_v53 = vld [vmem:[#allocation13 + $0x18] sm:$0xff] }
 0x2c0   : > { %4760 = vmatmul.bf16.vlgmr.msrb.gmra.mxu1 %v4350_v39  ;;  %v7652_v10 = vor.u32 %v8404_v23, %v7649_v4  ;;  %v8425_v23 = vld [vmem:[#allocation10 + $0x48] sm:$0xff] }
 0x2c1   : > { %4821 = vmatpush.bf16.msra.mxu2 %v7596_v40  ;;  %v8402_v40 = vld [vmem:[#allocation9 + $0x194] sm:$0xf] }
 0x2c2   : > { %4810 = vmatpush.bf16.msra.mxu1 %v7516_v12  ;;  %v8618_v12 = vld [vmem:[#allocation19 + $0x10] sm:$0xff] }
 0x2c3   : > { %v4239_v48 = vpop.f32.mrf.mxu3  ;;  %v3071_v13 = vperm.slane %v8618_v12, 1  ;;  %4782 = vmatpush.bf16.msrb.mxu3 %v7656_v57  ;;  %v7644_v57 = vor.u32 %v8402_v40, %v7641_v5  ;;  %v8459_v5 = vld [vmem:[#allocation16 + $0x38] sm:$0xff] }
 0x2c5   : > { %v4211_v58 = vpop.f32.mrf.mxu1  ;;  %4822 = vmatpush.bf16.msra.mxu2 %v7588_v63  ;;  %v4199_v28 = vadd.f32 %v9486_v36, %v3071_v13  ;;  %v7681_v36 = vld [vmem:[#allocation9 + $0x1e8] sm:$0xf0]  ;;  %v8619_v13 = vld [vmem:[#allocation19 + $0x18] sm:$0xff] }
 0x2c6   : > { %4811 = vmatpush.bf16.msra.mxu1 %v7508_v37  ;;  %v9497_v49 = vpop.f32.mrf.mxu0  ;;  %v8403_v37 = vld [vmem:[#allocation9 + $0x194] sm:$0xf0]  ;;  %v7684_v43 = vor.u32 %v8412_v42, %v7681_v36  ;;  %v7633_v63 = vld [vmem:[#allocation9 + $0x188] sm:$0xf0]  ;;  %v3072_v15 = vperm.slane %v8619_v13, 1  ;;  %v8442_v36 = vld [vmem:[#allocation13 + $0x30] sm:$0xff] }
 0x2c7   : > { %v4278_v31 = vpop.f32.mrf.mxu2  ;;  %4783 = vmatpush.bf16.msrb.mxu3 %v7648_v24  ;;  %v7640_v20 = vor.u32 %v8403_v37, %v7639_v62  ;;  %v4212_v30 = vadd.f32 %v4211_v58, %v4199_v28  ;;  %v7636_v12 = vor.u32 %v8400_v51, %v7633_v63  ;;  %v8423_v42 = vld [vmem:[#allocation10 + $0x38] sm:$0xff]  ;;  %v8457_v63 = vld [vmem:[#allocation16 + $0x28] sm:$0xff] }
 0x2c8   : > { %v4277_v16 = vadd.f32 %v9490_v11, %v3072_v15  ;;  %4976 = vmatpush.bf16.msrb.mxu0 %v8423_v42 }
 0x2c9   : > { %4823 = vmatpush.bf16.msra.mxu2 %v7580_v26  ;;  %v4225_v33 = vadd.f32 %v9484_v21, %v4212_v30  ;;  %v8408_v21 = vld [vmem:[#allocation9 + $0x1c4] sm:$0xf] }
 0x2ca   : > { %v7668_v55 = vor.u32 %v8408_v21, %v7665_v52  ;;  %v9511_v30 = vld [vmem:[#allocation19] sm:$0xff]  ;;  %v8418_v21 = vld [vmem:[#allocation10 + $0x10] sm:$0xff] }
 0x2cb   : > { %4784 = vmatpush.bf16.msrb.mxu3 %v7640_v20  ;;  %v4417_v11 = vperm.slane %v9511_v30, 2  ;;  %v8430_v52 = vld [vmem:[#allocation10 + $0x70] sm:$0xff]  ;;  %v5012_v51 = vperm.slane %v9511_v30, 4  ;;  %v5072_v42 = vperm.slane %v9511_v30, 5 }
 0x2cd   : > { %v4213_v2 = vpop.f32.mrf.mxu1  ;;  %4824 = vmatpush.bf16.msra.mxu2 %v7572_v29 }
 0x2ce   : > { %v4252_v6 = vpop.f32.mrf.mxu0  ;;  %v9499_v7 = vpop.f32.mrf.mxu3  ;;  %v8432_v2 = vld [vmem:[#allocation12] sm:$0xff] }
 0x2cf   : > { %4785 = vmatpush.bf16.msrb.mxu3 %v7632_v3  ;;  %v7657_v6 = vld [vmem:[#allocation9 + $0x1b8] sm:$0xf0]  ;;  %v4290_v60 = vadd.f32 %v9499_v7, %v4277_v16 }
 0x2d0   : > { %4812 = vmatmul.bf16.vlgmr.msra.gmra.mxu1 %v4350_v39  ;;  %v4238_v39 = vadd.f32 %v9495_v32, %v4225_v33  ;;  %v8406_v32 = vld [vmem:[#allocation9 + $0x1b4] sm:$0xf] }
 0x2d2   : > { %v4251_v18 = vadd.f32 %v9497_v49, %v4238_v39  ;;  %v7660_v49 = vor.u32 %v8406_v32, %v7657_v6  ;;  %v8416_v32 = vld [vmem:[#allocation10] sm:$0xff] }
 0x2d3   : > { %4830 = vmatpush.bf16.msra.mxu3 %v7692_v34  ;;  %v8428_v6 = vld [vmem:[#allocation10 + $0x60] sm:$0xff] }
 0x2d6   : > { %v4291_v46 = vpop.f32.mrf.mxu3 }
 0x2d7   : > { %4831 = vmatpush.bf16.msra.mxu3 %v7684_v43  ;;  %v8422_v43 = vld [vmem:[#allocation10 + $0x30] sm:$0xff] }
 0x2d8   : > { %4977 = vmatpush.bf16.msrb.mxu0 %v8422_v43 }
 0x2db   : > { %4832 = vmatpush.bf16.msra.mxu3 %v7676_v45  ;;  %v8420_v45 = vld [vmem:[#allocation10 + $0x20] sm:$0xff] }
 0x2dc   : > { %4978 = vmatpush.bf16.msrb.mxu0 %v8421_v19 }
 0x2df   : > { %v9501_v14 = vpop.f32.mrf.mxu2  ;;  %4833 = vmatpush.bf16.msra.mxu3 %v7668_v55  ;;  %v8417_v55 = vld [vmem:[#allocation10 + $0x8] sm:$0xff] }
 0x2e0   : > { %4979 = vmatpush.bf16.msrb.mxu0 %v8420_v45 }
 0x2e3   : > { %4834 = vmatpush.bf16.msra.mxu3 %v7660_v49  ;;  %v8426_v49 = vld [vmem:[#allocation10 + $0x50] sm:$0xff] }
 0x2e6   : > { %v4302_v41 = vpop.f32.mrf.mxu0  ;;  %v4263_v47 = vpop.f32.mrf.mxu1 }
 0x2e7   : > { %v4330_v31 = vpop.f32.mrf.mxu2  ;;  %v4264_v48 = vadd.f32 %v4263_v47, %v4251_v18  ;;  %4835 = vmatpush.bf16.msra.mxu3 %v7652_v10  ;;  %v4303_v24 = vadd.f32 %v4302_v41, %v4290_v60  ;;  %v8443_v41 = vld [vmem:[#allocation13 + $0x38] sm:$0xff]  ;;  %v8440_v18 = vld [vmem:[#allocation13 + $0x20] sm:$0xff] }
 0x2e8   : > { %v8419_v47 = vld [vmem:[#allocation10 + $0x18] sm:$0xff]  ;;  %v8424_v10 = vld [vmem:[#allocation10 + $0x40] sm:$0xff] }
 0x2e9   : > { %v4347_v54 = vmax.f32 %v4264_v48, 0.0  ;;  %v8431_v48 = vld [vmem:[#allocation10 + $0x78] sm:$0xff]  ;;  %4980 = vmatpush.bf16.msrb.mxu0 %v8419_v47 }
 0x2ea   : > { %4989 = vmatpush.bf16.msrb.mxu1 %v8431_v48 }
 0x2eb   : > { %v4351_v58 = vpack.c.bf16 %v4347_v54, %v4347_v54  ;;  %4836 = vmatpush.bf16.msra.mxu3 %v7644_v57  ;;  %v8437_v54 = vld [vmem:[#allocation13 + $0x8] sm:$0xff]  ;;  %v8450_v57 = vld [vmem:[#allocation15 + $0x30] sm:$0xff] }
 0x2ed   : > { %4773 = vmatmul.bf16.vlgmr.msrb.gmra.mxu2 %v4351_v58  ;;  %4981 = vmatpush.bf16.msrb.mxu0 %v8418_v21 }
 0x2ee   : > { %v4304_v50 = vpop.f32.mrf.mxu0  ;;  %v4341_v0 = vpop.f32.mrf.mxu3  ;;  %5045 = vmatpush.bf16.msrb.mxu2 %v8435_v56  ;;  %4990 = vmatpush.bf16.msrb.mxu1 %v8430_v52  ;;  %v8429_v56 = vld [vmem:[#allocation10 + $0x68] sm:$0xff] }
 0x2ef   : > { %v4265_v59 = vpop.f32.mrf.mxu1  ;;  %4837 = vmatpush.bf16.msra.mxu3 %v7636_v12  ;;  %v8438_v50 = vld [vmem:[#allocation13 + $0x10] sm:$0xff] }
 0x2f0   : > { %v8427_v59 = vld [vmem:[#allocation10 + $0x58] sm:$0xff] }
 0x2f1   : > { %4982 = vmatpush.bf16.msrb.mxu0 %v8417_v55  ;;  %v5294_v55 = vld [vmem:[#allocation18] sm:$0x1] }
 0x2f2   : > { %5046 = vmatpush.bf16.msrb.mxu2 %v8434_v1  ;;  %4991 = vmatpush.bf16.msrb.mxu1 %v8429_v56  ;;  %v5291_v56 = vperm.slane %v9511_v30, 6 }
 0x2f5   : > { %4983 = vmatpush.bf16.msrb.mxu0 %v8416_v32 }
 0x2f6   : > { %v4343_v9 = vpop.f32.mrf.mxu3  ;;  %5047 = vmatpush.bf16.msrb.mxu2 %v8433_v8  ;;  %4992 = vmatpush.bf16.msrb.mxu1 %v8428_v6  ;;  %v8451_v8 = vld [vmem:[#allocation15 + $0x38] sm:$0xff] }
 0x2f7   : > { %v8458_v9 = vld [vmem:[#allocation16 + $0x30] sm:$0xff] }
 0x2f9   : > { %5278 = vmatpush.bf16.msra.mxu0 %v8451_v8 }
 0x2fa   : > { %5048 = vmatpush.bf16.msrb.mxu2 %v8432_v2  ;;  %4993 = vmatpush.bf16.msrb.mxu1 %v8427_v59 }
 0x2fd   : > { %4825 = vmatmul.bf16.vlgmr.msra.gmra.mxu2 %v4351_v58  ;;  %5279 = vmatpush.bf16.msra.mxu0 %v8450_v57 }
 0x2fe   : > { %4994 = vmatpush.bf16.msrb.mxu1 %v8426_v49  ;;  %5217 = vmatpush.bf16.msra.mxu2 %v8459_v5 }
 0x302   : > { %4995 = vmatpush.bf16.msrb.mxu1 %v8425_v23  ;;  %5218 = vmatpush.bf16.msra.mxu2 %v8458_v9 }
 0x306   : > { %v4315_v25 = vpop.f32.mrf.mxu1  ;;  %4996 = vmatpush.bf16.msrb.mxu1 %v8424_v10  ;;  %5219 = vmatpush.bf16.msra.mxu2 %v8457_v63  ;;  %v5300_v10 = vperm.slane %v9511_v30, 7 }
 0x307   : > { %v4316_v62 = vadd.f32 %v4315_v25, %v4303_v24  ;;  %v8456_v24 = vld [vmem:[#allocation16 + $0x20] sm:$0xff] }
 0x309   : > { %v4329_v37 = vadd.f32 %v9501_v14, %v4316_v62 }
 0x30a   : > { %5220 = vmatpush.bf16.msra.mxu2 %v8456_v24 }
 0x30b   : > { %v4342_v26 = vadd.f32 %v4341_v0, %v4329_v37  ;;  %v8436_v0 = vld [vmem:[#allocation13] sm:$0xff] }
 0x30d   : > { %v4348_v61 = vmax.f32 %v4342_v26, 0.0  ;;  %7773 = vmatmul.msk.bf16.vlgmr.msrb.gmra.mxu2 %vm5037_vm0, %v5003_v27  ;;  %v8455_v26 = vld [vmem:[#allocation16 + $0x18] sm:$0xff] }
 0x30e   : > { %v4317_v20 = vpop.f32.mrf.mxu1  ;;  %5221 = vmatpush.bf16.msra.mxu2 %v8455_v26 }
 0x30f   : > { %v4352_v28 = vpack.c.bf16 %v4348_v61, %v4348_v61 }
 0x311   : > { %4786 = vmatmul.bf16.vlgmr.msrb.gmra.mxu3 %v4352_v28 }
 0x312   : > { %5121 = vmatpush.bf16.msrb.mxu3 %v8443_v41 }
 0x316   : > { %5122 = vmatpush.bf16.msrb.mxu3 %v8442_v36 }
 0x31a   : > { %5123 = vmatpush.bf16.msrb.mxu3 %v8441_v44 }
 0x31e   : > { %5124 = vmatpush.bf16.msrb.mxu3 %v8440_v18  ;;  %v4879_v18 = vperm.slane %v9511_v30, 3 }
 0x321   : > { %4838 = vmatmul.bf16.vlgmr.msra.gmra.mxu3 %v4352_v28 }
 0x322   : > { %5125 = vmatpush.bf16.msrb.mxu3 %v8439_v53 }
 0x326   : > { %5126 = vmatpush.bf16.msrb.mxu3 %v8438_v50 }
 0x329   : > { %v4748_v46 = vpop.f32.mrf.mxu0 }
 0x32a   : > { %v4749_v31 = vadd.f32 %v4748_v46, %v4417_v11  ;;  %5127 = vmatpush.bf16.msrb.mxu3 %v8437_v54 }
 0x32e   : > { %5128 = vmatpush.bf16.msrb.mxu3 %v8436_v0 }
 0x331   : > { %v4750_v29 = vpop.f32.mrf.mxu0 }
 0x339   : > { %v4800_v7 = vpop.f32.mrf.mxu0 }
 0x33a   : > { %v4801_v38 = vadd.f32 %v4800_v7, %v4418_v17  ;;  %v8452_v17 = vld [vmem:[#allocation16] sm:$0xff] }
 0x33d   : > { %v4761_v35 = vpop.f32.mrf.mxu1 }
 0x33e   : > { %v9514_v22 = vadd.f32 %v4761_v35, %v4749_v31  ;;  %v8449_v31 = vld [vmem:[#allocation15 + $0x28] sm:$0xff]  ;;  %v8454_v35 = vld [vmem:[#allocation16 + $0x10] sm:$0xff] }
 0x33f   : > { %5280 = vmatpush.bf16.msra.mxu0 %v8449_v31  ;;  %5222 = vmatpush.bf16.msra.mxu2 %v8454_v35 }
 0x341   : > { %v4802_v14 = vpop.f32.mrf.mxu0 }
 0x342   : > { %v8453_v14 = vld [vmem:[#allocation16 + $0x8] sm:$0xff] }
 0x343   : > { %5223 = vmatpush.bf16.msra.mxu2 %v8453_v14 }
 0x345   : > { %v4763_v3 = vpop.f32.mrf.mxu1 }
 0x346   : > { %v8447_v3 = vld [vmem:[#allocation15 + $0x18] sm:$0xff] }
 0x347   : > { %5224 = vmatpush.bf16.msra.mxu2 %v8452_v17 }
 0x34d   : > { %v4813_v33 = vpop.f32.mrf.mxu1 }
 0x34e   : > { %v9517_v34 = vadd.f32 %v4813_v33, %v4801_v38  ;;  %v8446_v38 = vld [vmem:[#allocation15 + $0x10] sm:$0xff]  ;;  %v8445_v33 = vld [vmem:[#allocation15 + $0x8] sm:$0xff] }
 0x355   : > { %v4815_v39 = vpop.f32.mrf.mxu1 }
 0x370   : > { %v4774_v58 = vpop.f32.mrf.mxu2 }
 0x371   : > { %v4775_v2 = vadd.f32 %v4774_v58, %v9514_v22  ;;  %v8448_v22 = vld [vmem:[#allocation15 + $0x20] sm:$0xff]  ;;  %v5295_v58 = vunpack.c.l.bf16 %v5294_v55 }
 0x372   : > { %5281 = vmatpush.bf16.msra.mxu0 %v8448_v22 }
 0x376   : > { %5282 = vmatpush.bf16.msra.mxu0 %v8447_v3 }
 0x378   : > { %v4776_v1 = vpop.f32.mrf.mxu2 }
 0x379   : > { %v5296_v1 = vperm.slane %v5295_v58, 0 }
 0x37a   : > { %5283 = vmatpush.bf16.msra.mxu0 %v8446_v38 }
 0x37e   : > { %5284 = vmatpush.bf16.msra.mxu0 %v8445_v33 }
 0x380   : > { %v4826_v4 = vpop.f32.mrf.mxu2 }
 0x381   : > { %v4827_v20 = vadd.f32 %v4826_v4, %v9517_v34  ;;  %v8444_v34 = vld [vmem:[#allocation15] sm:$0xff] }
 0x382   : > { %5285 = vmatpush.bf16.msra.mxu0 %v8444_v34 }
 0x388   : > { %v4828_v40 = vpop.f32.mrf.mxu2 }
 0x390   : > { %v5050_v12 = vpop.f32.mrf.mxu2 }
 0x391   : > { %v5051_v13 = vadd.f32 %v5050_v12, %v5012_v51 }
 0x393   : > { %v5054_v60 = vmax.f32 %v5051_v13, 0.0 }
 0x394   : > { %v4787_v15 = vpop.f32.mrf.mxu3 }
 0x395   : > { %v4788_v16 = vadd.f32 %v4787_v15, %v4775_v2  ;;  %v5055_v62 = vpack.c.bf16 %v5054_v60, %v5054_v60 }
 0x397   : > { %v4843_v25 = vmax.f32 %v4788_v16, 0.0  ;;  %5129 = vmatmul.bf16.vlgmr.msrb.gmra.mxu3 %v5055_v62 }
 0x398   : > { %v5052_v61 = vpop.f32.mrf.mxu2 }
 0x399   : > { %v4845_v37 = vpack.c.bf16 %v4843_v25, %v4843_v25 }
 0x39b   : > { %4984 = vmatmul.bf16.vlgmr.msrb.gmra.mxu0 %v4845_v37 }
 0x39c   : > { %v4789_v27 = vpop.f32.mrf.mxu3 }
 0x3a4   : > { %v4839_v28 = vpop.f32.mrf.mxu3 }
 0x3a5   : > { %v4840_v46 = vadd.f32 %v4839_v28, %v4827_v20 }
 0x3a7   : > { %v4844_v29 = vmax.f32 %v4840_v46, 0.0 }
 0x3a9   : > { %v4846_v11 = vpack.c.bf16 %v4844_v29, %v4844_v29 }
 0x3ab   : > { %4997 = vmatmul.bf16.vlgmr.msrb.gmra.mxu1 %v4846_v11 }
 0x3ac   : > { %v4841_v7 = vpop.f32.mrf.mxu3 }
 0x418   : > { %v4985_v41 = vpop.f32.mrf.mxu0 }
 0x419   : > { %v4986_v53 = vadd.f32 %v4985_v41, %v4879_v18 }
 0x41a   : > { %v5130_v36 = vpop.f32.mrf.mxu3 }
 0x41b   : > { %v5131_v39 = vadd.f32 %v5130_v36, %v5072_v42 }
 0x41d   : > { %v5134_v43 = vmax.f32 %v5131_v39, 0.0 }
 0x41f   : > { %v5152_v19 = vpack.c.bf16 %v5134_v43, %v5134_v43 }
 0x420   : > { %v4987_v44 = vpop.f32.mrf.mxu0 }
 0x421   : > { %5225 = vmatmul.bf16.vlgmr.msra.gmra.mxu2 %v5152_v19 }
 0x422   : > { %v5132_v45 = vpop.f32.mrf.mxu3 }
 0x428   : > { %v4998_v47 = vpop.f32.mrf.mxu1 }
 0x429   : > { %v4999_v48 = vadd.f32 %v4998_v47, %v4986_v53 }
 0x42b   : > { %v5002_v50 = vmax.f32 %v4999_v48, 0.0 }
 0x42d   : > { %v5135_v21 = vpack.c.bf16 %v5002_v50, %v5002_v50 }
 0x42f   : > { %5286 = vmatmul.bf16.vlgmr.msra.gmra.mxu0 %v5135_v21 }
 0x430   : > { %v5000_v52 = vpop.f32.mrf.mxu1 }
 0x4a4   : > { %v5226_v54 = vpop.f32.mrf.mxu2 }
 0x4ac   : > { %v5287_v0 = vpop.f32.mrf.mxu0  ;;  %v5228_v6 = vpop.f32.mrf.mxu2 }
 0x4ad   : > { %v5288_v32 = vadd.f32 %v5287_v0, %v5226_v54 }
 0x4af   : > { %v5292_v59 = vadd.f32 %v5291_v56, %v5288_v32 }
 0x4b1   : > { %v5293_v49 = vmax.f32 %v5292_v59, 0.0 }
 0x4b3   : > { %v5297_v23 = vmul.f32 %v5296_v1, %v5293_v49 }
 0x4b4   : > { %v5289_v4 = vpop.f32.mrf.mxu0 }
 0x4b5   : > { %5298 = vadd.xlane.f32.xlu0 %v5297_v23 }
 0x528   : > { %v5299_v40 = vpop.xlane.xlu0 %5298 }
 0x529   : > { %v5301_v5 = vadd.f32 %v5300_v10, %v5299_v40 }
 0x52b   : > { %v5302_v8 = vmax.f32 %v5301_v5, 0.0 }
 0x52d   : > { %5304 = vst.msk [vmem:[%s631_s18] sm:$0xff] %vm5303_vm1, %v5302_v8 }
 0x52e PF: > { %p30_p3 = scmp.ge.s32.totalorder %s9232_s13, 5   ;;  %s9579_s21 = smov %s9035_s22 }
 0x52f   : > { %s9580_s22 = smov %s9039_s23  ;;  %s9581_s23 = smov %s9244_s3 }
 0x530   : > { %s9582_s24 = smov %s9232_s13  ;;  %32 = sbr.rel (!%p30_p3) target bundleno = 18 (0x12), region = 161 }
 0x535   :  { %5324 = vsyncpa [#allocation3], 1 }
 0x536   :  { %5326 = vsyncpa [#allocation3 + $0x1], 1 }
 0x537   :  { %5327 = vsyncpa [#allocation5], 1 }
 0x538   :  { %5329 = vsyncpa [#allocation5 + $0x1], 1 }
 0x539   :  { %5330 = vsyncpa [#allocation8], 1 }
 0x53a   :  { %5331 = vsyncpa [#allocation11], 1 }
 0x53b   :  { %5332 = vsyncpa [#allocation14], 1 }
 0x53c   :  { %5333 = vsyncpa [#allocation17], 1 }
 0x53d   :  { %5334 = vsyncpa [#allocation20], 1 }

</bundles_post_ra>
